<compile_context>
chip_gen: v7x
topology: tpu7x:2x2x1
jax: 0.10.0
libtpu: 0.0.40
codegen_flags: <defaults>
</compile_context>

<pallas_src>
import jax
import jax.numpy as jnp
from jax.experimental import pallas as pl
from jax.experimental.pallas import tpu as pltpu

H = W = 7
N_SPATIAL = H * W        # 49 spatial positions (7x7 maps, as in the original)
C  = 128                 # backbone feature channels   (original STPN: 1024)
D1 = 128                 # stcb1 output dim            (original: 1024)
D3 = 512                 # stcb3 output dim            (original: 4096)
NUM_CLASSES = 2
NEG_SLOPE = 0.01         # torch.nn.LeakyReLU() default

assert C == D1, "column-packing of the stcb forward matrices assumes C == D1"


# ------------------------------ fused kernel ------------------------------- #

def _stpn_kernel(feats_ref, f1_ref, inv1_ref, f3_hbm, inv3_hbm,
                 wfc_ref, bfc_ref, out_ref,
                 f3_vmem, inv3_vmem, sem):
    """Entire STPN head: stcb1 -> pooling -> stcb3 -> lrelu/tanh -> fc."""
    b = pl.program_id(0)

    # Stage-3 constant prefetch: start the HBM->VMEM DMA before any compute so
    # it overlaps stcb1 / pooling.  The VMEM scratch persists across grid
    # iterations, so only the first iteration fetches (and waits).
    cp_f3 = pltpu.make_async_copy(f3_hbm, f3_vmem, sem.at[0])
    cp_i3 = pltpu.make_async_copy(inv3_hbm, inv3_vmem, sem.at[1])

    @pl.when(b == 0)
    def _start_prefetch():
        cp_f3.start()
        cp_i3.start()

    def cbp(xs, fwd_ref, inv_ref, d):
        # Compact bilinear pooling with the count-sketch folded into the DFT.
        # fwd_ref packs one (K, 2d) block = [S@cos | -S@sin] per input along
        # the lane axis (slices are 128-aligned -> free); one bf16 dot per
        # input yields [Re | Im] of its sketch spectrum.  The complex
        # pointwise product stays f32.  The inverse DFT (1/d folded in,
        # inv_ref = [cos/d ; -sin/d]) is two accumulated dots on sublane-
        # aligned row slices — no (rows, 2d) concat is materialized.
        pr = pi = None
        for i, x in enumerate(xs):
            spec = jnp.dot(x.astype(jnp.bfloat16),
                           fwd_ref[:, 2 * d * i: 2 * d * (i + 1)],
                           preferred_element_type=jnp.float32)
            fr, fi = spec[:, :d], spec[:, d:]
            if pr is None:
                pr, pi = fr, fi
            else:
                pr, pi = pr * fr - pi * fi, pr * fi + pi * fr
        return (jnp.dot(pr.astype(jnp.bfloat16), inv_ref[:d, :],
                        preferred_element_type=jnp.float32)
                + jnp.dot(pi.astype(jnp.bfloat16), inv_ref[d:, :],
                          preferred_element_type=jnp.float32))

    rgb = feats_ref[0, 0, :, :]
    of1 = feats_ref[0, 1, :, :]
    of2 = feats_ref[0, 2, :, :]
    of3 = feats_ref[0, 3, :, :]

    # of = stcb1(of1, of2, of3); torch.mean(of, 0) over a batch of 1 is a no-op.
    of = cbp([of1, of2, of3], f1_ref, inv1_ref, D1)            # (49, D1)

    # avgPool1 / avgPool2 : global (7,7) average pooling.
    inv_n = 1.0 / N_SPATIAL
    spat = jnp.sum(rgb, axis=0, keepdims=True) * inv_n         # (1, C)
    temp = jnp.sum(of, axis=0, keepdims=True) * inv_n          # (1, D1)

    # TODO(synk): the att1 = stcb2(rgb, of) -> conv1 -> conv2 -> Softmax2d ->
    # wtPool branch is omitted: Softmax2d over the single conv2 output channel
    # is identically 1.0, so wtPool(att1 * rgb) == avgPool1(rgb) == spat and
    # the branch has exactly zero effect on the output.  Restore it if conv2
    # ever emits more than one channel.
    att = spat                                                 # (1, C)

    # Make sure the stage-3 constants have landed before stcb3.
    @pl.when(b == 0)
    def _wait_prefetch():
        cp_f3.wait()
        cp_i3.wait()

    # spatemp = stcb3(spat, temp, att)
    spatemp = cbp([spat, temp, att], f3_vmem, inv3_vmem, D3)   # (1, D3)

    # lrelu -> tanh -> dropout(eval) -> fc
    # TODO(synk): nn.Dropout(0.5) is the identity in eval mode; training-mode
    # random masking is not applied here.
    x = jnp.where(spatemp >= 0.0, spatemp, NEG_SLOPE * spatemp)
    x = jnp.tanh(x)
    out_ref[...] = (jnp.dot(x, wfc_ref[...], preferred_element_type=jnp.float32)
                    + bfc_ref[...])


def stpn_head(feats, p):
    """Fused STPN head.

    feats: (B, 4, 49, C) f32, stacked [rgb, of1, of2, of3] channels-last maps.
    Grid over B ("arbitrary": sequential, so the b==0 prefetch/residency is
    valid for any B); stage-1 constants stay VMEM-resident via constant
    index_maps, stage-3 constants are manually prefetched from HBM.
    """
    B = feats.shape[0]
    grid_spec = pltpu.PrefetchScalarGridSpec(
        num_scalar_prefetch=0,
        grid=(B,),
        in_specs=[
            pl.BlockSpec((1, 4, N_SPATIAL, C), lambda b: (b, 0, 0, 0)),
            pl.BlockSpec((C, 3 * 2 * D1), lambda b: (0, 0)),   # f1 pack (resident)
            pl.BlockSpec((2 * D1, D1),    lambda b: (0, 0)),   # inv1    (resident)
            pl.BlockSpec(memory_space=pl.ANY),                 # f3 pack (manual DMA)
            pl.BlockSpec(memory_space=pl.ANY),                 # inv3    (manual DMA)
            pl.BlockSpec((D3, NUM_CLASSES), lambda b: (0, 0)),
            pl.BlockSpec((1, NUM_CLASSES),  lambda b: (0, 0)),
        ],
        out_specs=pl.BlockSpec((1, NUM_CLASSES), lambda b: (b, 0)),
        scratch_shapes=[
            pltpu.VMEM((C, 3 * 2 * D3), jnp.bfloat16),         # f3 landing buffer
            pltpu.VMEM((2 * D3, D3), jnp.bfloat16),            # inv3 landing buffer
            pltpu.SemaphoreType.DMA((2,)),
        ],
    )
    return pl.pallas_call(
        _stpn_kernel,
        out_shape=jax.ShapeDtypeStruct((B, NUM_CLASSES), jnp.float32),
        grid_spec=grid_spec,
        compiler_params=pltpu.CompilerParams(
            dimension_semantics=("arbitrary",)),
    )(feats, p["f1"], p["inv1"], p["f3"], p["inv3"], p["wfc"], p["bfc"])


# ------------------------------ parameters --------------------------------- #

def _sketch(key, in_dim, out_dim):
    """Dense count-sketch matrix: S[c, h[c]] = s[c], s in {-1,+1}."""
    kh, ks = jax.random.split(key)
    h = jax.random.randint(kh, (in_dim,), 0, out_dim)
    s = (jax.random.randint(ks, (in_dim,), 0, 2) * 2 - 1).astype(jnp.float32)
    m = jnp.zeros((in_dim, out_dim), jnp.float32)
    return m.at[jnp.arange(in_dim), h].set(s)


def _dft(d):
    k = jnp.arange(d, dtype=jnp.float32)
    ang = (2.0 * jnp.pi / d) * (k[:, None] * k[None, :])
    return jnp.cos(ang), jnp.sin(ang)


def _fold_fwd(sketch, cos, sin):
    """Count-sketch folded into the forward DFT: x @ S @ [cos | -sin]."""
    return jnp.concatenate([sketch @ cos, -(sketch @ sin)], axis=-1)   # (K, 2D)


def _fold_inv(cos, sin, d):
    """Stacked inverse DFT [cos; -sin] with the 1/d normalisation folded in."""
    return jnp.concatenate([cos, -sin], axis=0) / d                    # (2D, D)


def init_params(key):
    ks = jax.random.split(key, 8)
    cos1, sin1 = _dft(D1)
    cos3, sin3 = _dft(D3)

    p = {}
    # stcb1 (3-way CBP, C -> D1): three folded forward matrices packed
    # column-wise into a single array -> one DMA, static 128-aligned slices.
    p["f1"] = jnp.concatenate(
        [_fold_fwd(_sketch(ks[i], C, D1), cos1, sin1) for i in range(3)],
        axis=-1).astype(jnp.bfloat16)                          # (C, 3*2*D1)
    p["inv1"] = _fold_inv(cos1, sin1, D1).astype(jnp.bfloat16)  # (2*D1, D1)

    # stcb3 (3-way CBP, inputs spat(C), temp(D1), att(C); C == D1).
    p["f3"] = jnp.concatenate(
        [_fold_fwd(_sketch(ks[3], C, D3), cos3, sin3),
         _fold_fwd(_sketch(ks[4], D1, D3), cos3, sin3),
         _fold_fwd(_sketch(ks[5], C, D3), cos3, sin3)],
        axis=-1).astype(jnp.bfloat16)                          # (C, 3*2*D3)
    p["inv3"] = _fold_inv(cos3, sin3, D3).astype(jnp.bfloat16)  # (2*D3, D3)

    # TODO(synk): stcb2 / conv1 / conv2 parameters are not materialized: the
    # 1-channel Softmax2d makes that whole branch an exact no-op on the output.

    p["wfc"] = 0.05 * jax.random.normal(ks[6], (D3, NUM_CLASSES), jnp.float32)
    p["bfc"] = 0.05 * jax.random.normal(ks[7], (1, NUM_CLASSES), jnp.float32)
    return p


# ------------------------------- forward ----------------------------------- #

@jax.jit
def stpn_forward(rgb_feat, of1_feat, of2_feat, of3_feat, p):
    # TODO(synk): the bninception(pretrained='imagenet') backbones (cnn1..cnn4)
    # are not translated; this forward consumes the (1, C, 7, 7) feature maps
    # they would emit.
    def to_mat(x):                                   # NCHW (1,C,7,7) -> (49, C)
        return x[0].reshape(x.shape[1], -1).T
    feats = jnp.stack([to_mat(rgb_feat), to_mat(of1_feat),
                       to_mat(of2_feat), to_mat(of3_feat)], axis=0)[None]
    logits = stpn_head(feats, p)                     # (1, NUM_CLASSES)
    return logits[0]                                 # squeeze -> (NUM_CLASSES,)


if __name__ == "__main__":
    key = jax.random.PRNGKey(0)
    k_in, k_par = jax.random.split(key)
    kin = jax.random.split(k_in, 4)
    rgb_feat = jax.random.normal(kin[0], (1, C, H, W), jnp.float32)
    of1_feat = jax.random.normal(kin[1], (1, C, H, W), jnp.float32)
    of2_feat = jax.random.normal(kin[2], (1, C, H, W), jnp.float32)
    of3_feat = jax.random.normal(kin[3], (1, C, H, W), jnp.float32)
    params = init_params(k_par)

    out = stpn_forward(rgb_feat, of1_feat, of2_feat, of3_feat, params)
    out = jax.block_until_ready(out)
    assert out.shape == (NUM_CLASSES,)
    assert bool(jnp.all(jnp.isfinite(out)))
    print("KERNEL_OK")
</pallas_src>

<mosaic_0001>
module attributes {stable_mosaic.version = 11 : i64} {
  func.func @_stpn_kernel(%arg0: i32, %arg1: memref<1x4x49x128xf32, #tpu.memory_space<vmem>>, %arg2: memref<128x768xbf16, #tpu.memory_space<vmem>>, %arg3: memref<256x128xbf16, #tpu.memory_space<vmem>>, %arg4: memref<128x3072xbf16, #tpu.memory_space<any>>, %arg5: memref<1024x512xbf16, #tpu.memory_space<any>>, %arg6: memref<512x2xf32, #tpu.memory_space<vmem>>, %arg7: memref<1x2xf32, #tpu.memory_space<vmem>>, %arg8: memref<1x2xf32, #tpu.memory_space<vmem>>, %arg9: memref<128x3072xbf16, #tpu.memory_space<vmem>>, %arg10: memref<1024x512xbf16, #tpu.memory_space<vmem>>, %arg11: memref<2x!tpu.dma_semaphore, #tpu.memory_space<semaphore_mem>>) attributes {dimension_semantics = [#tpu.dimension_semantics<arbitrary>], iteration_bounds = array<i64: 1>, scalar_prefetch = 0 : i64, scratch_operands = 3 : i64, tpu.core_type = #tpu.core_type<tc>, window_params = [{transform_indices = @transform_0, window_bounds = array<i64: 1, 4, 49, 128>}, {pipeline_mode = #tpu.pipeline_mode<synchronous>, transform_indices = @transform_1, window_bounds = array<i64: 128, 768>}, {pipeline_mode = #tpu.pipeline_mode<synchronous>, transform_indices = @transform_2, window_bounds = array<i64: 256, 128>}, {}, {}, {pipeline_mode = #tpu.pipeline_mode<synchronous>, transform_indices = @transform_5, window_bounds = array<i64: 512, 2>}, {pipeline_mode = #tpu.pipeline_mode<synchronous>, transform_indices = @transform_6, window_bounds = array<i64: 1, 2>}, {transform_indices = @transform_7, window_bounds = array<i64: 1, 2>}]} {
    %c0_i32 = arith.constant 0 : i32
    %0 = arith.cmpi eq, %arg0, %c0_i32 : i32
    %1 = arith.extui %0 : i1 to i32
    %c0_i32_0 = arith.constant 0 : i32
    %c1_i32 = arith.constant 1 : i32
    %c0_i32_1 = arith.constant 0 : i32
    %2 = arith.cmpi ne, %1, %c0_i32_1 : i32
    scf.if %2 {
      %101 = tpu.memref_slice %arg11[%c0_i32_0] : memref<2x!tpu.dma_semaphore, #tpu.memory_space<semaphore_mem>> -> memref<1x!tpu.dma_semaphore, #tpu.memory_space<semaphore_mem>>
      %102 = tpu.memref_squeeze %101 : memref<1x!tpu.dma_semaphore, #tpu.memory_space<semaphore_mem>> -> memref<!tpu.dma_semaphore, #tpu.memory_space<semaphore_mem>>
      tpu.enqueue_dma source(%arg4 : memref<128x3072xbf16, #tpu.memory_space<any>>) target(%arg9 : memref<128x3072xbf16, #tpu.memory_space<vmem>>) target_semaphore(%102 : memref<!tpu.dma_semaphore, #tpu.memory_space<semaphore_mem>>)
      %103 = tpu.memref_slice %arg11[%c1_i32] : memref<2x!tpu.dma_semaphore, #tpu.memory_space<semaphore_mem>> -> memref<1x!tpu.dma_semaphore, #tpu.memory_space<semaphore_mem>>
      %104 = tpu.memref_squeeze %103 : memref<1x!tpu.dma_semaphore, #tpu.memory_space<semaphore_mem>> -> memref<!tpu.dma_semaphore, #tpu.memory_space<semaphore_mem>>
      tpu.enqueue_dma source(%arg5 : memref<1024x512xbf16, #tpu.memory_space<any>>) target(%arg10 : memref<1024x512xbf16, #tpu.memory_space<vmem>>) target_semaphore(%104 : memref<!tpu.dma_semaphore, #tpu.memory_space<semaphore_mem>>)
    } else {
    }
    %c0 = arith.constant 0 : index
    %c0_2 = arith.constant 0 : index
    %c0_3 = arith.constant 0 : index
    %c0_4 = arith.constant 0 : index
    %3 = vector.load %arg1[%c0, %c0_2, %c0_3, %c0_4] : memref<1x4x49x128xf32, #tpu.memory_space<vmem>>, vector<1x1x49x128xf32>
    %4 = vector.shape_cast %3 : vector<1x1x49x128xf32> to vector<49x128xf32>
    %c0_5 = arith.constant 0 : index
    %c1 = arith.constant 1 : index
    %c0_6 = arith.constant 0 : index
    %c0_7 = arith.constant 0 : index
    %5 = vector.load %arg1[%c0_5, %c1, %c0_6, %c0_7] : memref<1x4x49x128xf32, #tpu.memory_space<vmem>>, vector<1x1x49x128xf32>
    %6 = vector.shape_cast %5 : vector<1x1x49x128xf32> to vector<49x128xf32>
    %c0_8 = arith.constant 0 : index
    %c2 = arith.constant 2 : index
    %c0_9 = arith.constant 0 : index
    %c0_10 = arith.constant 0 : index
    %7 = vector.load %arg1[%c0_8, %c2, %c0_9, %c0_10] : memref<1x4x49x128xf32, #tpu.memory_space<vmem>>, vector<1x1x49x128xf32>
    %8 = vector.shape_cast %7 : vector<1x1x49x128xf32> to vector<49x128xf32>
    %c0_11 = arith.constant 0 : index
    %c3 = arith.constant 3 : index
    %c0_12 = arith.constant 0 : index
    %c0_13 = arith.constant 0 : index
    %9 = vector.load %arg1[%c0_11, %c3, %c0_12, %c0_13] : memref<1x4x49x128xf32, #tpu.memory_space<vmem>>, vector<1x1x49x128xf32>
    %10 = vector.shape_cast %9 : vector<1x1x49x128xf32> to vector<49x128xf32>
    %11 = arith.truncf %6 : vector<49x128xf32> to vector<49x128xbf16>
    %c0_14 = arith.constant 0 : index
    %c0_15 = arith.constant 0 : index
    %12 = vector.load %arg2[%c0_14, %c0_15] : memref<128x768xbf16, #tpu.memory_space<vmem>>, vector<128x256xbf16>
    %cst = arith.constant dense<0.000000e+00> : vector<49x256xf32>
    %13 = tpu.matmul %11, %12, %cst {dimension_numbers = #tpu.dot_dimension_numbers<[1], [0], [0], [1], [0, 0, 1, 1], [], []>} : vector<49x128xbf16>, vector<128x256xbf16>, vector<49x256xf32> -> vector<49x256xf32>
    %14 = vector.extract_strided_slice %13 {offsets = [0, 0], sizes = [49, 128], strides = [1, 1]} : vector<49x256xf32> to vector<49x128xf32>
    %15 = vector.extract_strided_slice %13 {offsets = [0, 128], sizes = [49, 128], strides = [1, 1]} : vector<49x256xf32> to vector<49x128xf32>
    %16 = arith.truncf %8 : vector<49x128xf32> to vector<49x128xbf16>
    %c0_16 = arith.constant 0 : index
    %c256 = arith.constant 256 : index
    %17 = vector.load %arg2[%c0_16, %c256] : memref<128x768xbf16, #tpu.memory_space<vmem>>, vector<128x256xbf16>
    %cst_17 = arith.constant dense<0.000000e+00> : vector<49x256xf32>
    %18 = tpu.matmul %16, %17, %cst_17 {dimension_numbers = #tpu.dot_dimension_numbers<[1], [0], [0], [1], [0, 0, 1, 1], [], []>} : vector<49x128xbf16>, vector<128x256xbf16>, vector<49x256xf32> -> vector<49x256xf32>
    %19 = vector.extract_strided_slice %18 {offsets = [0, 0], sizes = [49, 128], strides = [1, 1]} : vector<49x256xf32> to vector<49x128xf32>
    %20 = vector.extract_strided_slice %18 {offsets = [0, 128], sizes = [49, 128], strides = [1, 1]} : vector<49x256xf32> to vector<49x128xf32>
    %21 = arith.mulf %14, %19 : vector<49x128xf32>
    %22 = arith.mulf %15, %20 : vector<49x128xf32>
    %23 = arith.subf %21, %22 : vector<49x128xf32>
    %24 = arith.mulf %14, %20 : vector<49x128xf32>
    %25 = arith.mulf %15, %19 : vector<49x128xf32>
    %26 = arith.addf %24, %25 : vector<49x128xf32>
    %27 = arith.truncf %10 : vector<49x128xf32> to vector<49x128xbf16>
    %c0_18 = arith.constant 0 : index
    %c512 = arith.constant 512 : index
    %28 = vector.load %arg2[%c0_18, %c512] : memref<128x768xbf16, #tpu.memory_space<vmem>>, vector<128x256xbf16>
    %cst_19 = arith.constant dense<0.000000e+00> : vector<49x256xf32>
    %29 = tpu.matmul %27, %28, %cst_19 {dimension_numbers = #tpu.dot_dimension_numbers<[1], [0], [0], [1], [0, 0, 1, 1], [], []>} : vector<49x128xbf16>, vector<128x256xbf16>, vector<49x256xf32> -> vector<49x256xf32>
    %30 = vector.extract_strided_slice %29 {offsets = [0, 0], sizes = [49, 128], strides = [1, 1]} : vector<49x256xf32> to vector<49x128xf32>
    %31 = vector.extract_strided_slice %29 {offsets = [0, 128], sizes = [49, 128], strides = [1, 1]} : vector<49x256xf32> to vector<49x128xf32>
    %32 = arith.mulf %23, %30 : vector<49x128xf32>
    %33 = arith.mulf %26, %31 : vector<49x128xf32>
    %34 = arith.subf %32, %33 : vector<49x128xf32>
    %35 = arith.mulf %23, %31 : vector<49x128xf32>
    %36 = arith.mulf %26, %30 : vector<49x128xf32>
    %37 = arith.addf %35, %36 : vector<49x128xf32>
    %38 = arith.truncf %34 : vector<49x128xf32> to vector<49x128xbf16>
    %c0_20 = arith.constant 0 : index
    %c0_21 = arith.constant 0 : index
    %39 = vector.load %arg3[%c0_20, %c0_21] : memref<256x128xbf16, #tpu.memory_space<vmem>>, vector<128x128xbf16>
    %cst_22 = arith.constant dense<0.000000e+00> : vector<49x128xf32>
    %40 = tpu.matmul %38, %39, %cst_22 {dimension_numbers = #tpu.dot_dimension_numbers<[1], [0], [0], [1], [0, 0, 1, 1], [], []>} : vector<49x128xbf16>, vector<128x128xbf16>, vector<49x128xf32> -> vector<49x128xf32>
    %41 = arith.truncf %37 : vector<49x128xf32> to vector<49x128xbf16>
    %c128 = arith.constant 128 : index
    %c0_23 = arith.constant 0 : index
    %42 = vector.load %arg3[%c128, %c0_23] : memref<256x128xbf16, #tpu.memory_space<vmem>>, vector<128x128xbf16>
    %cst_24 = arith.constant dense<0.000000e+00> : vector<49x128xf32>
    %43 = tpu.matmul %41, %42, %cst_24 {dimension_numbers = #tpu.dot_dimension_numbers<[1], [0], [0], [1], [0, 0, 1, 1], [], []>} : vector<49x128xbf16>, vector<128x128xbf16>, vector<49x128xf32> -> vector<49x128xf32>
    %44 = arith.addf %40, %43 : vector<49x128xf32>
    %cst_25 = arith.constant dense<0.000000e+00> : vector<128xf32>
    %45 = vector.multi_reduction <add>, %4, %cst_25 [0] : vector<49x128xf32> to vector<128xf32>
    %46 = vector.shape_cast %45 : vector<128xf32> to vector<1x128xf32>
    %cst_26 = arith.constant 0.0204081628 : f32
    %47 = vector.broadcast %cst_26 : f32 to vector<1x128xf32>
    %48 = arith.mulf %46, %47 : vector<1x128xf32>
    %cst_27 = arith.constant dense<0.000000e+00> : vector<128xf32>
    %49 = vector.multi_reduction <add>, %44, %cst_27 [0] : vector<49x128xf32> to vector<128xf32>
    %50 = vector.shape_cast %49 : vector<128xf32> to vector<1x128xf32>
    %cst_28 = arith.constant 0.0204081628 : f32
    %51 = vector.broadcast %cst_28 : f32 to vector<1x128xf32>
    %52 = arith.mulf %50, %51 : vector<1x128xf32>
    %c0_i32_29 = arith.constant 0 : i32
    %53 = arith.cmpi eq, %arg0, %c0_i32_29 : i32
    %54 = arith.extui %53 : i1 to i32
    %c0_i32_30 = arith.constant 0 : i32
    %c1_i32_31 = arith.constant 1 : i32
    %c0_i32_32 = arith.constant 0 : i32
    %55 = arith.cmpi ne, %54, %c0_i32_32 : i32
    scf.if %55 {
      %101 = tpu.memref_slice %arg11[%c0_i32_30] : memref<2x!tpu.dma_semaphore, #tpu.memory_space<semaphore_mem>> -> memref<1x!tpu.dma_semaphore, #tpu.memory_space<semaphore_mem>>
      %102 = tpu.memref_squeeze %101 : memref<1x!tpu.dma_semaphore, #tpu.memory_space<semaphore_mem>> -> memref<!tpu.dma_semaphore, #tpu.memory_space<semaphore_mem>>
      tpu.wait_dma2 semaphore(%102 : memref<!tpu.dma_semaphore, #tpu.memory_space<semaphore_mem>>) src(%arg4 : memref<128x3072xbf16, #tpu.memory_space<any>>) dst(%arg9 : memref<128x3072xbf16, #tpu.memory_space<vmem>>)
      %103 = tpu.memref_slice %arg11[%c1_i32_31] : memref<2x!tpu.dma_semaphore, #tpu.memory_space<semaphore_mem>> -> memref<1x!tpu.dma_semaphore, #tpu.memory_space<semaphore_mem>>
      %104 = tpu.memref_squeeze %103 : memref<1x!tpu.dma_semaphore, #tpu.memory_space<semaphore_mem>> -> memref<!tpu.dma_semaphore, #tpu.memory_space<semaphore_mem>>
      tpu.wait_dma2 semaphore(%104 : memref<!tpu.dma_semaphore, #tpu.memory_space<semaphore_mem>>) src(%arg5 : memref<1024x512xbf16, #tpu.memory_space<any>>) dst(%arg10 : memref<1024x512xbf16, #tpu.memory_space<vmem>>)
    } else {
    }
    %56 = arith.truncf %48 : vector<1x128xf32> to vector<1x128xbf16>
    %c0_33 = arith.constant 0 : index
    %c0_34 = arith.constant 0 : index
    %57 = vector.load %arg9[%c0_33, %c0_34] : memref<128x3072xbf16, #tpu.memory_space<vmem>>, vector<128x1024xbf16>
    %cst_35 = arith.constant dense<0.000000e+00> : vector<1x1024xf32>
    %58 = tpu.matmul %56, %57, %cst_35 {dimension_numbers = #tpu.dot_dimension_numbers<[1], [0], [0], [1], [0, 0, 1, 1], [], []>} : vector<1x128xbf16>, vector<128x1024xbf16>, vector<1x1024xf32> -> vector<1x1024xf32>
    %59 = vector.extract_strided_slice %58 {offsets = [0, 0], sizes = [1, 512], strides = [1, 1]} : vector<1x1024xf32> to vector<1x512xf32>
    %60 = vector.extract_strided_slice %58 {offsets = [0, 512], sizes = [1, 512], strides = [1, 1]} : vector<1x1024xf32> to vector<1x512xf32>
    %61 = arith.truncf %52 : vector<1x128xf32> to vector<1x128xbf16>
    %c0_36 = arith.constant 0 : index
    %c1024 = arith.constant 1024 : index
    %62 = vector.load %arg9[%c0_36, %c1024] : memref<128x3072xbf16, #tpu.memory_space<vmem>>, vector<128x1024xbf16>
    %cst_37 = arith.constant dense<0.000000e+00> : vector<1x1024xf32>
    %63 = tpu.matmul %61, %62, %cst_37 {dimension_numbers = #tpu.dot_dimension_numbers<[1], [0], [0], [1], [0, 0, 1, 1], [], []>} : vector<1x128xbf16>, vector<128x1024xbf16>, vector<1x1024xf32> -> vector<1x1024xf32>
    %64 = vector.extract_strided_slice %63 {offsets = [0, 0], sizes = [1, 512], strides = [1, 1]} : vector<1x1024xf32> to vector<1x512xf32>
    %65 = vector.extract_strided_slice %63 {offsets = [0, 512], sizes = [1, 512], strides = [1, 1]} : vector<1x1024xf32> to vector<1x512xf32>
    %66 = arith.mulf %59, %64 : vector<1x512xf32>
    %67 = arith.mulf %60, %65 : vector<1x512xf32>
    %68 = arith.subf %66, %67 : vector<1x512xf32>
    %69 = arith.mulf %59, %65 : vector<1x512xf32>
    %70 = arith.mulf %60, %64 : vector<1x512xf32>
    %71 = arith.addf %69, %70 : vector<1x512xf32>
    %72 = arith.truncf %48 : vector<1x128xf32> to vector<1x128xbf16>
    %c0_38 = arith.constant 0 : index
    %c2048 = arith.constant 2048 : index
    %73 = vector.load %arg9[%c0_38, %c2048] : memref<128x3072xbf16, #tpu.memory_space<vmem>>, vector<128x1024xbf16>
    %cst_39 = arith.constant dense<0.000000e+00> : vector<1x1024xf32>
    %74 = tpu.matmul %72, %73, %cst_39 {dimension_numbers = #tpu.dot_dimension_numbers<[1], [0], [0], [1], [0, 0, 1, 1], [], []>} : vector<1x128xbf16>, vector<128x1024xbf16>, vector<1x1024xf32> -> vector<1x1024xf32>
    %75 = vector.extract_strided_slice %74 {offsets = [0, 0], sizes = [1, 512], strides = [1, 1]} : vector<1x1024xf32> to vector<1x512xf32>
    %76 = vector.extract_strided_slice %74 {offsets = [0, 512], sizes = [1, 512], strides = [1, 1]} : vector<1x1024xf32> to vector<1x512xf32>
    %77 = arith.mulf %68, %75 : vector<1x512xf32>
    %78 = arith.mulf %71, %76 : vector<1x512xf32>
    %79 = arith.subf %77, %78 : vector<1x512xf32>
    %80 = arith.mulf %68, %76 : vector<1x512xf32>
    %81 = arith.mulf %71, %75 : vector<1x512xf32>
    %82 = arith.addf %80, %81 : vector<1x512xf32>
    %83 = arith.truncf %79 : vector<1x512xf32> to vector<1x512xbf16>
    %c0_40 = arith.constant 0 : index
    %c0_41 = arith.constant 0 : index
    %84 = vector.load %arg10[%c0_40, %c0_41] : memref<1024x512xbf16, #tpu.memory_space<vmem>>, vector<512x512xbf16>
    %cst_42 = arith.constant dense<0.000000e+00> : vector<1x512xf32>
    %85 = tpu.matmul %83, %84, %cst_42 {dimension_numbers = #tpu.dot_dimension_numbers<[1], [0], [0], [1], [0, 0, 1, 1], [], []>} : vector<1x512xbf16>, vector<512x512xbf16>, vector<1x512xf32> -> vector<1x512xf32>
    %86 = arith.truncf %82 : vector<1x512xf32> to vector<1x512xbf16>
    %c512_43 = arith.constant 512 : index
    %c0_44 = arith.constant 0 : index
    %87 = vector.load %arg10[%c512_43, %c0_44] : memref<1024x512xbf16, #tpu.memory_space<vmem>>, vector<512x512xbf16>
    %cst_45 = arith.constant dense<0.000000e+00> : vector<1x512xf32>
    %88 = tpu.matmul %86, %87, %cst_45 {dimension_numbers = #tpu.dot_dimension_numbers<[1], [0], [0], [1], [0, 0, 1, 1], [], []>} : vector<1x512xbf16>, vector<512x512xbf16>, vector<1x512xf32> -> vector<1x512xf32>
    %89 = arith.addf %85, %88 : vector<1x512xf32>
    %cst_46 = arith.constant 0.000000e+00 : f32
    %90 = vector.broadcast %cst_46 : f32 to vector<1x512xf32>
    %91 = arith.cmpf oge, %89, %90 : vector<1x512xf32>
    %cst_47 = arith.constant 0.00999999977 : f32
    %92 = vector.broadcast %cst_47 : f32 to vector<1x512xf32>
    %93 = arith.mulf %92, %89 : vector<1x512xf32>
    %94 = arith.select %91, %89, %93 : vector<1x512xi1>, vector<1x512xf32>
    %95 = math.tanh %94 : vector<1x512xf32>
    %c0_48 = arith.constant 0 : index
    %c0_49 = arith.constant 0 : index
    %96 = vector.load %arg6[%c0_48, %c0_49] : memref<512x2xf32, #tpu.memory_space<vmem>>, vector<512x2xf32>
    %cst_50 = arith.constant dense<0.000000e+00> : vector<1x2xf32>
    %97 = tpu.matmul %95, %96, %cst_50 {dimension_numbers = #tpu.dot_dimension_numbers<[1], [0], [0], [1], [0, 0, 1, 1], [], []>} : vector<1x512xf32>, vector<512x2xf32>, vector<1x2xf32> -> vector<1x2xf32>
    %c0_51 = arith.constant 0 : index
    %c0_52 = arith.constant 0 : index
    %98 = vector.load %arg7[%c0_51, %c0_52] : memref<1x2xf32, #tpu.memory_space<vmem>>, vector<1x2xf32>
    %99 = arith.addf %97, %98 : vector<1x2xf32>
    %c0_53 = arith.constant 0 : index
    %c0_54 = arith.constant 0 : index
    %100 = vector.load %arg8[%c0_53, %c0_54] : memref<1x2xf32, #tpu.memory_space<vmem>>, vector<1x2xf32>
    tpu.vector_store %arg8[%c0_53, %c0_54], %99 {strides = array<i32>} : memref<1x2xf32, #tpu.memory_space<vmem>>, vector<1x2xf32>,
    return
  }
  func.func @transform_0(%arg0: i32) -> (i32, i32, i32, i32) {
    %c0_i32 = arith.constant 0 : i32
    %c0_i32_0 = arith.constant 0 : i32
    %c0_i32_1 = arith.constant 0 : i32
    %c0_i32_2 = arith.constant 0 : i32
    return %arg0, %c0_i32, %c0_i32_0, %c0_i32_1 : i32, i32, i32, i32
  }
  func.func @transform_1(%arg0: i32) -> (i32, i32) {
    %c0_i32 = arith.constant 0 : i32
    %c0_i32_0 = arith.constant 0 : i32
    %c0_i32_1 = arith.constant 0 : i32
    return %c0_i32, %c0_i32_0 : i32, i32
  }
  func.func @transform_2(%arg0: i32) -> (i32, i32) {
    %c0_i32 = arith.constant 0 : i32
    %c0_i32_0 = arith.constant 0 : i32
    %c0_i32_1 = arith.constant 0 : i32
    return %c0_i32, %c0_i32_0 : i32, i32
  }
  func.func @transform_5(%arg0: i32) -> (i32, i32) {
    %c0_i32 = arith.constant 0 : i32
    %c0_i32_0 = arith.constant 0 : i32
    %c0_i32_1 = arith.constant 0 : i32
    return %c0_i32, %c0_i32_0 : i32, i32
  }
  func.func @transform_6(%arg0: i32) -> (i32, i32) {
    %c0_i32 = arith.constant 0 : i32
    %c0_i32_0 = arith.constant 0 : i32
    %c0_i32_1 = arith.constant 0 : i32
    return %c0_i32, %c0_i32_0 : i32, i32
  }
  func.func @transform_7(%arg0: i32) -> (i32, i32) {
    %c0_i32 = arith.constant 0 : i32
    %c0_i32_0 = arith.constant 0 : i32
    return %arg0, %c0_i32 : i32, i32
  }
}

</mosaic_0001>

<bundles_post_ra>
// kernel: squeeze.5
= control target key start
LH: loop header
LB: loop body
LE: loop exit
PB: predicated region body
PF: predicated region fallthrough
CT: control target
= control target key end

     0   :  { %s92_s0 = inlined_call_operand.vmem [shape: f32[128,7,7], index: 0, kind: input, shape index: {}]   ;;  %s93_s1 = inlined_call_operand.vmem [shape: f32[128,49], index: 1, kind: output, shape index: {}]  }
   0x1   :  { %v2_v0 = vld [vmem:[%s92_s0] sm:$0x7f]   ;;  %v28_v1 = vld [vmem:[%s92_s0 + $0x8] sm:$0x7f]   ;;  %v30_v2 = vld [vmem:[%s92_s0 + $0x10] sm:$0x7f]  }
   0x2   :  { %3 = vst [vmem:[%s93_s1] sm:$0x7f] %v2_v0   ;;  %29 = vst [vmem:[%s93_s1 + $0x7] sm:$0x7f] %v28_v1   ;;  %v32_v3 = vld [vmem:[%s92_s0 + $0x18] sm:$0x7f]  }
   0x3   :  { %31 = vst [vmem:[%s93_s1 + $0xe] sm:$0x7f] %v30_v2   ;;  %v34_v4 = vld [vmem:[%s92_s0 + $0x20] sm:$0x7f]   ;;  %v36_v5 = vld [vmem:[%s92_s0 + $0x28] sm:$0x7f]  }
   0x4   :  { %33 = vst [vmem:[%s93_s1 + $0x15] sm:$0x7f] %v32_v3   ;;  %35 = vst [vmem:[%s93_s1 + $0x1c] sm:$0x7f] %v34_v4   ;;  %v38_v6 = vld [vmem:[%s92_s0 + $0x30] sm:$0x7f]  }
   0x5   :  { %37 = vst [vmem:[%s93_s1 + $0x23] sm:$0x7f] %v36_v5   ;;  %39 = vst [vmem:[%s93_s1 + $0x2a] sm:$0x7f] %v38_v6  }

// kernel: stpn_forward.1
= control target key start
LH: loop header
LB: loop body
LE: loop exit
PB: predicated region body
PF: predicated region fallthrough
CT: control target
= control target key end

     0   :  { %12 = vsyncpa [#allocation6], 0  ;;  %s6363_s0 = inlined_call_operand.vmem [shape: f32[1,4,49,128], index: 0, kind: input, shape index: {}]   ;;  %s6364_s1 = inlined_call_operand.hbm [shape: bf16[128,768], index: 1, kind: input, shape index: {}]   ;;  %s6365_s2 = inlined_call_operand.vmem [shape: bf16[256,128], index: 2, kind: input, shape index: {}]   ;;  %s6366_s3 = inlined_call_operand.vmem [shape: bf16[128,3072], index: 3, kind: input, shape index: {}]   ;;  %s6367_s4 = inlined_call_operand.hbm [shape: bf16[1024,512], index: 4, kind: input, shape index: {}]   ;;  %s6368_s5 = inlined_call_operand.vmem [shape: f32[512,2], index: 5, kind: input, shape index: {}]   ;;  %s6369_s6 = inlined_call_operand.vmem [shape: f32[1,2], index: 6, kind: input, shape index: {}]   ;;  %s6370_s7 = inlined_call_operand.hbm [shape: f32[1,2], index: 7, kind: output, shape index: {}]  }
   0x1   :  { %13 = vsyncpa [#allocation7], 0  ;;  %s4671_s24 = smov [#allocation5]   ;;  %s4619_s28 = scalar_lea.hbm %s6364_s1, 6144 }
   0x2   :  { %s21_s25 = sshll.u32 %s4671_s24, 4  ;;  %p4620_p0 = scmp.ne.s32.totalorder %s6364_s1, %s4619_s28  ;;  %s22_s25 = int_to_ptr.vmem [resolvable:$true] %s21_s25 }
   0x3   :  { %p4623_p1 = scmp.lt.u32.totalorder %s4619_s28, %s6364_s1 }
   0x5   :  { %p4625_p2 = pnand %p4623_p1, %p4620_p0 }
   0x7   :  { %4628 = shalt.err (!%p4625_p2)
}
   0x8   :  { %s4629_s10 = scalar_lea.vmem %s22_s25, 6144  ;;  %p4634_p4 = scmp.lt.s32.totalorder %s22_s25, %s22_s25 }
   0x9   :  { %p4630_p3 = scmp.ne.s32.totalorder %s22_s25, %s4629_s10  ;;  %p4635_p5 = scmp.lt.s32.totalorder %s4629_s10, %s4629_s10 }
   0xb   :  { %p4636_p6 = por %p4635_p5, %p4634_p4 }
   0xd   :  { %p4637_p7 = pnand %p4636_p6, %p4630_p3 }
   0xf   :  { %4640 = shalt.err (!%p4637_p7)
}
  0x10   :  { %s4672_s11 = smov 384   ;;  %s4673_s12 = smov 24  }
  0x11   :  { %27 = dma.hbm_to_vmem [thread:$0]  %s6364_s1, 6144, %s22_s25, [#allocation6], %s4672_s11, %s4672_s11, %s4673_s12  }
  0x12   :  { %4663 = dma.done.wait [#allocation6], 6144  }
  0x13   :  { %4664 = vsyncadd [#allocation6], 4294961152 }
  0x14   :  { %v59_v0 = vld [vmem:[%s6366_s3] sm:$0xf]  ;;  %v63_v2 = vld [vmem:[%s6366_s3 + $0x4] sm:$0xf]  ;;  %v67_v4 = vld [vmem:[%s6366_s3 + $0x8] sm:$0xf] }
  0x15   :  { %v61_v1 = vld [vmem:[%s6366_s3 + $0x60] sm:$0xf]  ;;  %60 = vst [vmem:[#allocation2] sm:$0xf] %v59_v0  ;;  %64 = vst [vmem:[#allocation2 + $0x8] sm:$0xf] %v63_v2 }
  0x16   :  { %62 = vst [vmem:[#allocation2 + $0x4] sm:$0xf] %v61_v1  ;;  %v65_v3 = vld [vmem:[%s6366_s3 + $0x64] sm:$0xf]  ;;  %v69_v5 = vld [vmem:[%s6366_s3 + $0x68] sm:$0xf] }
  0x17   :  { %66 = vst [vmem:[#allocation2 + $0xc] sm:$0xf] %v65_v3  ;;  %68 = vst [vmem:[#allocation2 + $0x10] sm:$0xf] %v67_v4  ;;  %v71_v6 = vld [vmem:[%s6366_s3 + $0xc] sm:$0xf] }
  0x18   :  { %70 = vst [vmem:[#allocation2 + $0x14] sm:$0xf] %v69_v5  ;;  %v73_v7 = vld [vmem:[%s6366_s3 + $0x6c] sm:$0xf]  ;;  %v75_v8 = vld [vmem:[%s6366_s3 + $0x10] sm:$0xf] }
  0x19   :  { %72 = vst [vmem:[#allocation2 + $0x18] sm:$0xf] %v71_v6  ;;  %74 = vst [vmem:[#allocation2 + $0x1c] sm:$0xf] %v73_v7  ;;  %v77_v9 = vld [vmem:[%s6366_s3 + $0x70] sm:$0xf] }
  0x1a   :  { %76 = vst [vmem:[#allocation2 + $0x20] sm:$0xf] %v75_v8  ;;  %v79_v10 = vld [vmem:[%s6366_s3 + $0x14] sm:$0xf]  ;;  %78 = vst [vmem:[#allocation2 + $0x24] sm:$0xf] %v77_v9 }
  0x1b   :  { %v81_v11 = vld [vmem:[%s6366_s3 + $0x74] sm:$0xf]  ;;  %80 = vst [vmem:[#allocation2 + $0x28] sm:$0xf] %v79_v10  ;;  %v83_v12 = vld [vmem:[%s6366_s3 + $0x18] sm:$0xf] }
  0x1c   :  { %82 = vst [vmem:[#allocation2 + $0x2c] sm:$0xf] %v81_v11  ;;  %v85_v13 = vld [vmem:[%s6366_s3 + $0x78] sm:$0xf]  ;;  %v87_v14 = vld [vmem:[%s6366_s3 + $0x1c] sm:$0xf] }
  0x1d   :  { %84 = vst [vmem:[#allocation2 + $0x30] sm:$0xf] %v83_v12  ;;  %86 = vst [vmem:[#allocation2 + $0x34] sm:$0xf] %v85_v13  ;;  %v89_v15 = vld [vmem:[%s6366_s3 + $0x7c] sm:$0xf] }
  0x1e   :  { %88 = vst [vmem:[#allocation2 + $0x38] sm:$0xf] %v87_v14  ;;  %v91_v16 = vld [vmem:[%s6366_s3 + $0x20] sm:$0xf]  ;;  %90 = vst [vmem:[#allocation2 + $0x3c] sm:$0xf] %v89_v15 }
  0x1f   :  { %v93_v17 = vld [vmem:[%s6366_s3 + $0x80] sm:$0xf]  ;;  %92 = vst [vmem:[#allocation2 + $0x40] sm:$0xf] %v91_v16  ;;  %v95_v18 = vld [vmem:[%s6366_s3 + $0x24] sm:$0xf] }
  0x20   :  { %94 = vst [vmem:[#allocation2 + $0x44] sm:$0xf] %v93_v17  ;;  %v97_v19 = vld [vmem:[%s6366_s3 + $0x84] sm:$0xf]  ;;  %v99_v20 = vld [vmem:[%s6366_s3 + $0x28] sm:$0xf] }
  0x21   :  { %96 = vst [vmem:[#allocation2 + $0x48] sm:$0xf] %v95_v18  ;;  %98 = vst [vmem:[#allocation2 + $0x4c] sm:$0xf] %v97_v19  ;;  %v101_v21 = vld [vmem:[%s6366_s3 + $0x88] sm:$0xf] }
  0x22   :  { %100 = vst [vmem:[#allocation2 + $0x50] sm:$0xf] %v99_v20  ;;  %v103_v22 = vld [vmem:[%s6366_s3 + $0x2c] sm:$0xf]  ;;  %102 = vst [vmem:[#allocation2 + $0x54] sm:$0xf] %v101_v21 }
  0x23   :  { %v105_v23 = vld [vmem:[%s6366_s3 + $0x8c] sm:$0xf]  ;;  %104 = vst [vmem:[#allocation2 + $0x58] sm:$0xf] %v103_v22  ;;  %v107_v24 = vld [vmem:[%s6366_s3 + $0x30] sm:$0xf] }
  0x24   :  { %106 = vst [vmem:[#allocation2 + $0x5c] sm:$0xf] %v105_v23  ;;  %v109_v25 = vld [vmem:[%s6366_s3 + $0x90] sm:$0xf]  ;;  %v111_v26 = vld [vmem:[%s6366_s3 + $0x34] sm:$0xf] }
  0x25   :  { %108 = vst [vmem:[#allocation2 + $0x60] sm:$0xf] %v107_v24  ;;  %110 = vst [vmem:[#allocation2 + $0x64] sm:$0xf] %v109_v25  ;;  %v113_v27 = vld [vmem:[%s6366_s3 + $0x94] sm:$0xf] }
  0x26   :  { %112 = vst [vmem:[#allocation2 + $0x68] sm:$0xf] %v111_v26  ;;  %v115_v28 = vld [vmem:[%s6366_s3 + $0x38] sm:$0xf]  ;;  %114 = vst [vmem:[#allocation2 + $0x6c] sm:$0xf] %v113_v27 }
  0x27   :  { %v117_v29 = vld [vmem:[%s6366_s3 + $0x98] sm:$0xf]  ;;  %116 = vst [vmem:[#allocation2 + $0x70] sm:$0xf] %v115_v28  ;;  %v119_v30 = vld [vmem:[%s6366_s3 + $0x3c] sm:$0xf] }
  0x28   :  { %118 = vst [vmem:[#allocation2 + $0x74] sm:$0xf] %v117_v29  ;;  %v121_v31 = vld [vmem:[%s6366_s3 + $0x9c] sm:$0xf]  ;;  %v123_v32 = vld [vmem:[%s6366_s3 + $0x40] sm:$0xf] }
  0x29   :  { %120 = vst [vmem:[#allocation2 + $0x78] sm:$0xf] %v119_v30  ;;  %122 = vst [vmem:[#allocation2 + $0x7c] sm:$0xf] %v121_v31  ;;  %v125_v33 = vld [vmem:[%s6366_s3 + $0xa0] sm:$0xf] }
  0x2a   :  { %124 = vst [vmem:[#allocation2 + $0x80] sm:$0xf] %v123_v32  ;;  %v127_v34 = vld [vmem:[%s6366_s3 + $0x44] sm:$0xf]  ;;  %126 = vst [vmem:[#allocation2 + $0x84] sm:$0xf] %v125_v33 }
  0x2b   :  { %v129_v35 = vld [vmem:[%s6366_s3 + $0xa4] sm:$0xf]  ;;  %128 = vst [vmem:[#allocation2 + $0x88] sm:$0xf] %v127_v34  ;;  %v131_v36 = vld [vmem:[%s6366_s3 + $0x48] sm:$0xf] }
  0x2c   :  { %130 = vst [vmem:[#allocation2 + $0x8c] sm:$0xf] %v129_v35  ;;  %v133_v37 = vld [vmem:[%s6366_s3 + $0xa8] sm:$0xf]  ;;  %v135_v38 = vld [vmem:[%s6366_s3 + $0x4c] sm:$0xf] }
  0x2d   :  { %132 = vst [vmem:[#allocation2 + $0x90] sm:$0xf] %v131_v36  ;;  %134 = vst [vmem:[#allocation2 + $0x94] sm:$0xf] %v133_v37  ;;  %v137_v39 = vld [vmem:[%s6366_s3 + $0xac] sm:$0xf] }
  0x2e   :  { %136 = vst [vmem:[#allocation2 + $0x98] sm:$0xf] %v135_v38  ;;  %v139_v40 = vld [vmem:[%s6366_s3 + $0x50] sm:$0xf]  ;;  %138 = vst [vmem:[#allocation2 + $0x9c] sm:$0xf] %v137_v39 }
  0x2f   :  { %v141_v41 = vld [vmem:[%s6366_s3 + $0xb0] sm:$0xf]  ;;  %140 = vst [vmem:[#allocation2 + $0xa0] sm:$0xf] %v139_v40  ;;  %v143_v42 = vld [vmem:[%s6366_s3 + $0x54] sm:$0xf] }
  0x30   :  { %142 = vst [vmem:[#allocation2 + $0xa4] sm:$0xf] %v141_v41  ;;  %v145_v43 = vld [vmem:[%s6366_s3 + $0xb4] sm:$0xf]  ;;  %v147_v44 = vld [vmem:[%s6366_s3 + $0x58] sm:$0xf] }
  0x31   :  { %144 = vst [vmem:[#allocation2 + $0xa8] sm:$0xf] %v143_v42  ;;  %146 = vst [vmem:[#allocation2 + $0xac] sm:$0xf] %v145_v43  ;;  %v149_v45 = vld [vmem:[%s6366_s3 + $0xb8] sm:$0xf] }
  0x32   :  { %148 = vst [vmem:[#allocation2 + $0xb0] sm:$0xf] %v147_v44  ;;  %v151_v46 = vld [vmem:[%s6366_s3 + $0x5c] sm:$0xf]  ;;  %150 = vst [vmem:[#allocation2 + $0xb4] sm:$0xf] %v149_v45 }
  0x33   :  { %v153_v47 = vld [vmem:[%s6366_s3 + $0xbc] sm:$0xff]   ;;  %152 = vst [vmem:[#allocation2 + $0xb8] sm:$0xf] %v151_v46  ;;  %v159_v49 = vld [vmem:[%s6366_s3 + $0xc4] sm:$0xf] }
  0x34   :  { %154 = vst [vmem:[#allocation2 + $0xbc] sm:$0xff] %v153_v47   ;;  %v157_v48 = vld [vmem:[%s6366_s3 + $0x120] sm:$0xf]  ;;  %v161_v50 = vld [vmem:[%s6366_s3 + $0x124] sm:$0xf] }
  0x35   :  { %158 = vst [vmem:[#allocation2 + $0xc4] sm:$0xf] %v157_v48  ;;  %160 = vst [vmem:[#allocation2 + $0xc8] sm:$0xf] %v159_v49  ;;  %v163_v51 = vld [vmem:[%s6366_s3 + $0xc8] sm:$0xf] }
  0x36   :  { %162 = vst [vmem:[#allocation2 + $0xcc] sm:$0xf] %v161_v50  ;;  %v165_v52 = vld [vmem:[%s6366_s3 + $0x128] sm:$0xf]  ;;  %v167_v53 = vld [vmem:[%s6366_s3 + $0xcc] sm:$0xf] }
  0x37   :  { %164 = vst [vmem:[#allocation2 + $0xd0] sm:$0xf] %v163_v51  ;;  %166 = vst [vmem:[#allocation2 + $0xd4] sm:$0xf] %v165_v52  ;;  %v169_v54 = vld [vmem:[%s6366_s3 + $0x12c] sm:$0xf] }
  0x38   :  { %168 = vst [vmem:[#allocation2 + $0xd8] sm:$0xf] %v167_v53  ;;  %v171_v55 = vld [vmem:[%s6366_s3 + $0xd0] sm:$0xf]  ;;  %170 = vst [vmem:[#allocation2 + $0xdc] sm:$0xf] %v169_v54 }
  0x39   :  { %v173_v56 = vld [vmem:[%s6366_s3 + $0x130] sm:$0xf]  ;;  %172 = vst [vmem:[#allocation2 + $0xe0] sm:$0xf] %v171_v55  ;;  %v175_v57 = vld [vmem:[%s6366_s3 + $0xd4] sm:$0xf] }
  0x3a   :  { %174 = vst [vmem:[#allocation2 + $0xe4] sm:$0xf] %v173_v56  ;;  %v177_v58 = vld [vmem:[%s6366_s3 + $0x134] sm:$0xf]  ;;  %v179_v59 = vld [vmem:[%s6366_s3 + $0xd8] sm:$0xf] }
  0x3b   :  { %176 = vst [vmem:[#allocation2 + $0xe8] sm:$0xf] %v175_v57  ;;  %178 = vst [vmem:[#allocation2 + $0xec] sm:$0xf] %v177_v58  ;;  %v181_v60 = vld [vmem:[%s6366_s3 + $0x138] sm:$0xf] }
  0x3c   :  { %180 = vst [vmem:[#allocation2 + $0xf0] sm:$0xf] %v179_v59  ;;  %v183_v61 = vld [vmem:[%s6366_s3 + $0xdc] sm:$0xf]  ;;  %182 = vst [vmem:[#allocation2 + $0xf4] sm:$0xf] %v181_v60 }
  0x3d   :  { %v185_v62 = vld [vmem:[%s6366_s3 + $0x13c] sm:$0xf]  ;;  %184 = vst [vmem:[#allocation2 + $0xf8] sm:$0xf] %v183_v61  ;;  %v187_v63 = vld [vmem:[%s6366_s3 + $0xe0] sm:$0xf] }
  0x3e   :  { %186 = vst [vmem:[#allocation2 + $0xfc] sm:$0xf] %v185_v62  ;;  %v189_v0 = vld [vmem:[%s6366_s3 + $0x140] sm:$0xf]  ;;  %v191_v1 = vld [vmem:[%s6366_s3 + $0xe4] sm:$0xf] }
  0x3f   :  { %188 = vst [vmem:[#allocation2 + $0x100] sm:$0xf] %v187_v63  ;;  %190 = vst [vmem:[#allocation2 + $0x104] sm:$0xf] %v189_v0  ;;  %v193_v2 = vld [vmem:[%s6366_s3 + $0x144] sm:$0xf] }
  0x40   :  { %192 = vst [vmem:[#allocation2 + $0x108] sm:$0xf] %v191_v1  ;;  %v195_v3 = vld [vmem:[%s6366_s3 + $0xe8] sm:$0xf]  ;;  %194 = vst [vmem:[#allocation2 + $0x10c] sm:$0xf] %v193_v2 }
  0x41   :  { %v197_v4 = vld [vmem:[%s6366_s3 + $0x148] sm:$0xf]  ;;  %196 = vst [vmem:[#allocation2 + $0x110] sm:$0xf] %v195_v3  ;;  %v199_v5 = vld [vmem:[%s6366_s3 + $0xec] sm:$0xf] }
  0x42   :  { %198 = vst [vmem:[#allocation2 + $0x114] sm:$0xf] %v197_v4  ;;  %v201_v6 = vld [vmem:[%s6366_s3 + $0x14c] sm:$0xf]  ;;  %v203_v7 = vld [vmem:[%s6366_s3 + $0xf0] sm:$0xf] }
  0x43   :  { %200 = vst [vmem:[#allocation2 + $0x118] sm:$0xf] %v199_v5  ;;  %202 = vst [vmem:[#allocation2 + $0x11c] sm:$0xf] %v201_v6  ;;  %v205_v8 = vld [vmem:[%s6366_s3 + $0x150] sm:$0xf] }
  0x44   :  { %204 = vst [vmem:[#allocation2 + $0x120] sm:$0xf] %v203_v7  ;;  %v207_v9 = vld [vmem:[%s6366_s3 + $0xf4] sm:$0xf]  ;;  %206 = vst [vmem:[#allocation2 + $0x124] sm:$0xf] %v205_v8 }
  0x45   :  { %v209_v10 = vld [vmem:[%s6366_s3 + $0x154] sm:$0xf]  ;;  %208 = vst [vmem:[#allocation2 + $0x128] sm:$0xf] %v207_v9  ;;  %v211_v11 = vld [vmem:[%s6366_s3 + $0xf8] sm:$0xf] }
  0x46   :  { %210 = vst [vmem:[#allocation2 + $0x12c] sm:$0xf] %v209_v10  ;;  %v213_v12 = vld [vmem:[%s6366_s3 + $0x158] sm:$0xf]  ;;  %v215_v13 = vld [vmem:[%s6366_s3 + $0xfc] sm:$0xf] }
  0x47   :  { %212 = vst [vmem:[#allocation2 + $0x130] sm:$0xf] %v211_v11  ;;  %214 = vst [vmem:[#allocation2 + $0x134] sm:$0xf] %v213_v12  ;;  %v217_v14 = vld [vmem:[%s6366_s3 + $0x15c] sm:$0xf] }
  0x48   :  { %216 = vst [vmem:[#allocation2 + $0x138] sm:$0xf] %v215_v13  ;;  %v219_v15 = vld [vmem:[%s6366_s3 + $0x100] sm:$0xf]  ;;  %218 = vst [vmem:[#allocation2 + $0x13c] sm:$0xf] %v217_v14 }
  0x49   :  { %v221_v16 = vld [vmem:[%s6366_s3 + $0x160] sm:$0xf]  ;;  %220 = vst [vmem:[#allocation2 + $0x140] sm:$0xf] %v219_v15  ;;  %v223_v17 = vld [vmem:[%s6366_s3 + $0x104] sm:$0xf] }
  0x4a   :  { %222 = vst [vmem:[#allocation2 + $0x144] sm:$0xf] %v221_v16  ;;  %v225_v18 = vld [vmem:[%s6366_s3 + $0x164] sm:$0xf]  ;;  %v227_v19 = vld [vmem:[%s6366_s3 + $0x108] sm:$0xf] }
  0x4b   :  { %224 = vst [vmem:[#allocation2 + $0x148] sm:$0xf] %v223_v17  ;;  %226 = vst [vmem:[#allocation2 + $0x14c] sm:$0xf] %v225_v18  ;;  %v229_v20 = vld [vmem:[%s6366_s3 + $0x168] sm:$0xf] }
  0x4c   :  { %228 = vst [vmem:[#allocation2 + $0x150] sm:$0xf] %v227_v19  ;;  %v231_v21 = vld [vmem:[%s6366_s3 + $0x10c] sm:$0xf]  ;;  %230 = vst [vmem:[#allocation2 + $0x154] sm:$0xf] %v229_v20 }
  0x4d   :  { %v233_v22 = vld [vmem:[%s6366_s3 + $0x16c] sm:$0xf]  ;;  %232 = vst [vmem:[#allocation2 + $0x158] sm:$0xf] %v231_v21  ;;  %v235_v23 = vld [vmem:[%s6366_s3 + $0x110] sm:$0xf] }
  0x4e   :  { %234 = vst [vmem:[#allocation2 + $0x15c] sm:$0xf] %v233_v22  ;;  %v237_v24 = vld [vmem:[%s6366_s3 + $0x170] sm:$0xf]  ;;  %v239_v25 = vld [vmem:[%s6366_s3 + $0x114] sm:$0xf] }
  0x4f   :  { %236 = vst [vmem:[#allocation2 + $0x160] sm:$0xf] %v235_v23  ;;  %238 = vst [vmem:[#allocation2 + $0x164] sm:$0xf] %v237_v24  ;;  %v241_v26 = vld [vmem:[%s6366_s3 + $0x174] sm:$0xf] }
  0x50   :  { %240 = vst [vmem:[#allocation2 + $0x168] sm:$0xf] %v239_v25  ;;  %v243_v27 = vld [vmem:[%s6366_s3 + $0x118] sm:$0xf]  ;;  %242 = vst [vmem:[#allocation2 + $0x16c] sm:$0xf] %v241_v26 }
  0x51   :  { %v245_v28 = vld [vmem:[%s6366_s3 + $0x178] sm:$0xf]  ;;  %244 = vst [vmem:[#allocation2 + $0x170] sm:$0xf] %v243_v27  ;;  %v247_v29 = vld [vmem:[%s6366_s3 + $0x11c] sm:$0xf] }
  0x52   :  { %246 = vst [vmem:[#allocation2 + $0x174] sm:$0xf] %v245_v28  ;;  %v249_v30 = vld [vmem:[%s6366_s3 + $0x17c] sm:$0xff]   ;;  %248 = vst [vmem:[#allocation2 + $0x178] sm:$0xf] %v247_v29 }
  0x53   :  { %v253_v31 = vld [vmem:[%s6366_s3 + $0x1e0] sm:$0xf]  ;;  %250 = vst [vmem:[#allocation2 + $0x17c] sm:$0xff] %v249_v30   ;;  %v255_v32 = vld [vmem:[%s6366_s3 + $0x184] sm:$0xf] }
  0x54   :  { %254 = vst [vmem:[#allocation2 + $0x184] sm:$0xf] %v253_v31  ;;  %v257_v33 = vld [vmem:[%s6366_s3 + $0x1e4] sm:$0xf]  ;;  %v259_v34 = vld [vmem:[%s6366_s3 + $0x188] sm:$0xf] }
  0x55   :  { %256 = vst [vmem:[#allocation2 + $0x188] sm:$0xf] %v255_v32  ;;  %258 = vst [vmem:[#allocation2 + $0x18c] sm:$0xf] %v257_v33  ;;  %v261_v35 = vld [vmem:[%s6366_s3 + $0x1e8] sm:$0xf] }
  0x56   :  { %260 = vst [vmem:[#allocation2 + $0x190] sm:$0xf] %v259_v34  ;;  %v263_v36 = vld [vmem:[%s6366_s3 + $0x18c] sm:$0xf]  ;;  %262 = vst [vmem:[#allocation2 + $0x194] sm:$0xf] %v261_v35 }
  0x57   :  { %v265_v37 = vld [vmem:[%s6366_s3 + $0x1ec] sm:$0xf]  ;;  %264 = vst [vmem:[#allocation2 + $0x198] sm:$0xf] %v263_v36  ;;  %v267_v38 = vld [vmem:[%s6366_s3 + $0x190] sm:$0xf] }
  0x58   :  { %266 = vst [vmem:[#allocation2 + $0x19c] sm:$0xf] %v265_v37  ;;  %v269_v39 = vld [vmem:[%s6366_s3 + $0x1f0] sm:$0xf]  ;;  %v271_v40 = vld [vmem:[%s6366_s3 + $0x194] sm:$0xf] }
  0x59   :  { %268 = vst [vmem:[#allocation2 + $0x1a0] sm:$0xf] %v267_v38  ;;  %270 = vst [vmem:[#allocation2 + $0x1a4] sm:$0xf] %v269_v39  ;;  %v273_v41 = vld [vmem:[%s6366_s3 + $0x1f4] sm:$0xf] }
  0x5a   :  { %272 = vst [vmem:[#allocation2 + $0x1a8] sm:$0xf] %v271_v40  ;;  %v275_v42 = vld [vmem:[%s6366_s3 + $0x198] sm:$0xf]  ;;  %274 = vst [vmem:[#allocation2 + $0x1ac] sm:$0xf] %v273_v41 }
  0x5b   :  { %v277_v43 = vld [vmem:[%s6366_s3 + $0x1f8] sm:$0xf]  ;;  %276 = vst [vmem:[#allocation2 + $0x1b0] sm:$0xf] %v275_v42  ;;  %v279_v44 = vld [vmem:[%s6366_s3 + $0x19c] sm:$0xf] }
  0x5c   :  { %278 = vst [vmem:[#allocation2 + $0x1b4] sm:$0xf] %v277_v43  ;;  %v281_v45 = vld [vmem:[%s6366_s3 + $0x1fc] sm:$0xf]  ;;  %v283_v46 = vld [vmem:[%s6366_s3 + $0x1a0] sm:$0xf] }
  0x5d   :  { %280 = vst [vmem:[#allocation2 + $0x1b8] sm:$0xf] %v279_v44  ;;  %282 = vst [vmem:[#allocation2 + $0x1bc] sm:$0xf] %v281_v45  ;;  %v285_v47 = vld [vmem:[%s6366_s3 + $0x200] sm:$0xf] }
  0x5e   :  { %284 = vst [vmem:[#allocation2 + $0x1c0] sm:$0xf] %v283_v46  ;;  %v287_v48 = vld [vmem:[%s6366_s3 + $0x1a4] sm:$0xf]  ;;  %286 = vst [vmem:[#allocation2 + $0x1c4] sm:$0xf] %v285_v47 }
  0x5f   :  { %v289_v49 = vld [vmem:[%s6366_s3 + $0x204] sm:$0xf]  ;;  %288 = vst [vmem:[#allocation2 + $0x1c8] sm:$0xf] %v287_v48  ;;  %v291_v50 = vld [vmem:[%s6366_s3 + $0x1a8] sm:$0xf] }
  0x60   :  { %290 = vst [vmem:[#allocation2 + $0x1cc] sm:$0xf] %v289_v49  ;;  %v293_v51 = vld [vmem:[%s6366_s3 + $0x208] sm:$0xf]  ;;  %v295_v52 = vld [vmem:[%s6366_s3 + $0x1ac] sm:$0xf] }
  0x61   :  { %292 = vst [vmem:[#allocation2 + $0x1d0] sm:$0xf] %v291_v50  ;;  %294 = vst [vmem:[#allocation2 + $0x1d4] sm:$0xf] %v293_v51  ;;  %v297_v53 = vld [vmem:[%s6366_s3 + $0x20c] sm:$0xf] }
  0x62   :  { %296 = vst [vmem:[#allocation2 + $0x1d8] sm:$0xf] %v295_v52  ;;  %v299_v54 = vld [vmem:[%s6366_s3 + $0x1b0] sm:$0xf]  ;;  %298 = vst [vmem:[#allocation2 + $0x1dc] sm:$0xf] %v297_v53 }
  0x63   :  { %v301_v55 = vld [vmem:[%s6366_s3 + $0x210] sm:$0xf]  ;;  %300 = vst [vmem:[#allocation2 + $0x1e0] sm:$0xf] %v299_v54  ;;  %v303_v56 = vld [vmem:[%s6366_s3 + $0x1b4] sm:$0xf] }
  0x64   :  { %302 = vst [vmem:[#allocation2 + $0x1e4] sm:$0xf] %v301_v55  ;;  %v305_v57 = vld [vmem:[%s6366_s3 + $0x214] sm:$0xf]  ;;  %v307_v58 = vld [vmem:[%s6366_s3 + $0x1b8] sm:$0xf] }
  0x65   :  { %304 = vst [vmem:[#allocation2 + $0x1e8] sm:$0xf] %v303_v56  ;;  %306 = vst [vmem:[#allocation2 + $0x1ec] sm:$0xf] %v305_v57  ;;  %v309_v59 = vld [vmem:[%s6366_s3 + $0x218] sm:$0xf] }
  0x66   :  { %308 = vst [vmem:[#allocation2 + $0x1f0] sm:$0xf] %v307_v58  ;;  %v311_v60 = vld [vmem:[%s6366_s3 + $0x1bc] sm:$0xf]  ;;  %310 = vst [vmem:[#allocation2 + $0x1f4] sm:$0xf] %v309_v59 }
  0x67   :  { %v313_v61 = vld [vmem:[%s6366_s3 + $0x21c] sm:$0xf]  ;;  %312 = vst [vmem:[#allocation2 + $0x1f8] sm:$0xf] %v311_v60  ;;  %v315_v62 = vld [vmem:[%s6366_s3 + $0x1c0] sm:$0xf] }
  0x68   :  { %314 = vst [vmem:[#allocation2 + $0x1fc] sm:$0xf] %v313_v61  ;;  %v317_v63 = vld [vmem:[%s6366_s3 + $0x220] sm:$0xf]  ;;  %v319_v0 = vld [vmem:[%s6366_s3 + $0x1c4] sm:$0xf] }
  0x69   :  { %316 = vst [vmem:[#allocation2 + $0x200] sm:$0xf] %v315_v62  ;;  %318 = vst [vmem:[#allocation2 + $0x204] sm:$0xf] %v317_v63  ;;  %v321_v1 = vld [vmem:[%s6366_s3 + $0x224] sm:$0xf] }
  0x6a   :  { %320 = vst [vmem:[#allocation2 + $0x208] sm:$0xf] %v319_v0  ;;  %v323_v2 = vld [vmem:[%s6366_s3 + $0x1c8] sm:$0xf]  ;;  %322 = vst [vmem:[#allocation2 + $0x20c] sm:$0xf] %v321_v1 }
  0x6b   :  { %v325_v3 = vld [vmem:[%s6366_s3 + $0x228] sm:$0xf]  ;;  %324 = vst [vmem:[#allocation2 + $0x210] sm:$0xf] %v323_v2  ;;  %v327_v4 = vld [vmem:[%s6366_s3 + $0x1cc] sm:$0xf] }
  0x6c   :  { %326 = vst [vmem:[#allocation2 + $0x214] sm:$0xf] %v325_v3  ;;  %v329_v5 = vld [vmem:[%s6366_s3 + $0x22c] sm:$0xf]  ;;  %v331_v6 = vld [vmem:[%s6366_s3 + $0x1d0] sm:$0xf] }
  0x6d   :  { %328 = vst [vmem:[#allocation2 + $0x218] sm:$0xf] %v327_v4  ;;  %330 = vst [vmem:[#allocation2 + $0x21c] sm:$0xf] %v329_v5  ;;  %v333_v7 = vld [vmem:[%s6366_s3 + $0x230] sm:$0xf] }
  0x6e   :  { %332 = vst [vmem:[#allocation2 + $0x220] sm:$0xf] %v331_v6  ;;  %v335_v8 = vld [vmem:[%s6366_s3 + $0x1d4] sm:$0xf]  ;;  %334 = vst [vmem:[#allocation2 + $0x224] sm:$0xf] %v333_v7 }
  0x6f   :  { %v337_v9 = vld [vmem:[%s6366_s3 + $0x234] sm:$0xf]  ;;  %336 = vst [vmem:[#allocation2 + $0x228] sm:$0xf] %v335_v8  ;;  %v339_v10 = vld [vmem:[%s6366_s3 + $0x1d8] sm:$0xf] }
  0x70   :  { %338 = vst [vmem:[#allocation2 + $0x22c] sm:$0xf] %v337_v9  ;;  %v341_v11 = vld [vmem:[%s6366_s3 + $0x238] sm:$0xf]  ;;  %v343_v12 = vld [vmem:[%s6366_s3 + $0x1dc] sm:$0xf] }
  0x71   :  { %340 = vst [vmem:[#allocation2 + $0x230] sm:$0xf] %v339_v10  ;;  %342 = vst [vmem:[#allocation2 + $0x234] sm:$0xf] %v341_v11  ;;  %v345_v13 = vld [vmem:[%s6366_s3 + $0x23c] sm:$0xff]  }
  0x72   :  { %344 = vst [vmem:[#allocation2 + $0x238] sm:$0xf] %v343_v12  ;;  %v349_v14 = vld [vmem:[%s6366_s3 + $0x2a0] sm:$0xf]  ;;  %v351_v15 = vld [vmem:[%s6366_s3 + $0x244] sm:$0xf] }
  0x73   :  { %346 = vst [vmem:[#allocation2 + $0x23c] sm:$0xff] %v345_v13   ;;  %350 = vst [vmem:[#allocation2 + $0x244] sm:$0xf] %v349_v14  ;;  %v353_v16 = vld [vmem:[%s6366_s3 + $0x2a4] sm:$0xf]  ;;  %v441_v60 = vld [vmem:[%s6366_s3 + $0x2fc] sm:$0xff]  }
  0x74   :  { %352 = vst [vmem:[#allocation2 + $0x248] sm:$0xf] %v351_v15  ;;  %v355_v17 = vld [vmem:[%s6366_s3 + $0x248] sm:$0xf]  ;;  %354 = vst [vmem:[#allocation2 + $0x24c] sm:$0xf] %v353_v16 }
  0x75   :  { %v357_v18 = vld [vmem:[%s6366_s3 + $0x2a8] sm:$0xf]  ;;  %356 = vst [vmem:[#allocation2 + $0x250] sm:$0xf] %v355_v17  ;;  %v359_v19 = vld [vmem:[%s6366_s3 + $0x24c] sm:$0xf] }
  0x76   :  { %358 = vst [vmem:[#allocation2 + $0x254] sm:$0xf] %v357_v18  ;;  %v361_v20 = vld [vmem:[%s6366_s3 + $0x2ac] sm:$0xf]  ;;  %v363_v21 = vld [vmem:[%s6366_s3 + $0x250] sm:$0xf] }
  0x77   :  { %360 = vst [vmem:[#allocation2 + $0x258] sm:$0xf] %v359_v19  ;;  %362 = vst [vmem:[#allocation2 + $0x25c] sm:$0xf] %v361_v20  ;;  %v365_v22 = vld [vmem:[%s6366_s3 + $0x2b0] sm:$0xf] }
  0x78   :  { %364 = vst [vmem:[#allocation2 + $0x260] sm:$0xf] %v363_v21  ;;  %v367_v23 = vld [vmem:[%s6366_s3 + $0x254] sm:$0xf]  ;;  %366 = vst [vmem:[#allocation2 + $0x264] sm:$0xf] %v365_v22 }
  0x79   :  { %v369_v24 = vld [vmem:[%s6366_s3 + $0x2b4] sm:$0xf]  ;;  %368 = vst [vmem:[#allocation2 + $0x268] sm:$0xf] %v367_v23  ;;  %v371_v25 = vld [vmem:[%s6366_s3 + $0x258] sm:$0xf] }
  0x7a   :  { %370 = vst [vmem:[#allocation2 + $0x26c] sm:$0xf] %v369_v24  ;;  %v373_v26 = vld [vmem:[%s6366_s3 + $0x2b8] sm:$0xf]  ;;  %v375_v27 = vld [vmem:[%s6366_s3 + $0x25c] sm:$0xf] }
  0x7b   :  { %372 = vst [vmem:[#allocation2 + $0x270] sm:$0xf] %v371_v25  ;;  %374 = vst [vmem:[#allocation2 + $0x274] sm:$0xf] %v373_v26  ;;  %v377_v28 = vld [vmem:[%s6366_s3 + $0x2bc] sm:$0xf] }
  0x7c   :  { %376 = vst [vmem:[#allocation2 + $0x278] sm:$0xf] %v375_v27  ;;  %v379_v29 = vld [vmem:[%s6366_s3 + $0x260] sm:$0xf]  ;;  %378 = vst [vmem:[#allocation2 + $0x27c] sm:$0xf] %v377_v28 }
  0x7d   :  { %v381_v30 = vld [vmem:[%s6366_s3 + $0x2c0] sm:$0xf]  ;;  %380 = vst [vmem:[#allocation2 + $0x280] sm:$0xf] %v379_v29  ;;  %v383_v31 = vld [vmem:[%s6366_s3 + $0x264] sm:$0xf] }
  0x7e   :  { %382 = vst [vmem:[#allocation2 + $0x284] sm:$0xf] %v381_v30  ;;  %v385_v32 = vld [vmem:[%s6366_s3 + $0x2c4] sm:$0xf]  ;;  %v387_v33 = vld [vmem:[%s6366_s3 + $0x268] sm:$0xf] }
  0x7f   :  { %384 = vst [vmem:[#allocation2 + $0x288] sm:$0xf] %v383_v31  ;;  %386 = vst [vmem:[#allocation2 + $0x28c] sm:$0xf] %v385_v32  ;;  %v389_v34 = vld [vmem:[%s6366_s3 + $0x2c8] sm:$0xf] }
  0x80   :  { %388 = vst [vmem:[#allocation2 + $0x290] sm:$0xf] %v387_v33  ;;  %v391_v35 = vld [vmem:[%s6366_s3 + $0x26c] sm:$0xf]  ;;  %390 = vst [vmem:[#allocation2 + $0x294] sm:$0xf] %v389_v34 }
  0x81   :  { %v393_v36 = vld [vmem:[%s6366_s3 + $0x2cc] sm:$0xf]  ;;  %392 = vst [vmem:[#allocation2 + $0x298] sm:$0xf] %v391_v35  ;;  %v395_v37 = vld [vmem:[%s6366_s3 + $0x270] sm:$0xf] }
  0x82   :  { %394 = vst [vmem:[#allocation2 + $0x29c] sm:$0xf] %v393_v36  ;;  %v397_v38 = vld [vmem:[%s6366_s3 + $0x2d0] sm:$0xf]  ;;  %v399_v39 = vld [vmem:[%s6366_s3 + $0x274] sm:$0xf] }
  0x83   :  { %396 = vst [vmem:[#allocation2 + $0x2a0] sm:$0xf] %v395_v37  ;;  %398 = vst [vmem:[#allocation2 + $0x2a4] sm:$0xf] %v397_v38  ;;  %v401_v40 = vld [vmem:[%s6366_s3 + $0x2d4] sm:$0xf] }
  0x84   :  { %400 = vst [vmem:[#allocation2 + $0x2a8] sm:$0xf] %v399_v39  ;;  %v403_v41 = vld [vmem:[%s6366_s3 + $0x278] sm:$0xf]  ;;  %402 = vst [vmem:[#allocation2 + $0x2ac] sm:$0xf] %v401_v40 }
  0x85   :  { %v405_v42 = vld [vmem:[%s6366_s3 + $0x2d8] sm:$0xf]  ;;  %404 = vst [vmem:[#allocation2 + $0x2b0] sm:$0xf] %v403_v41  ;;  %v407_v43 = vld [vmem:[%s6366_s3 + $0x27c] sm:$0xf] }
  0x86   :  { %406 = vst [vmem:[#allocation2 + $0x2b4] sm:$0xf] %v405_v42  ;;  %v409_v44 = vld [vmem:[%s6366_s3 + $0x2dc] sm:$0xf]  ;;  %v411_v45 = vld [vmem:[%s6366_s3 + $0x280] sm:$0xf] }
  0x87   :  { %408 = vst [vmem:[#allocation2 + $0x2b8] sm:$0xf] %v407_v43  ;;  %410 = vst [vmem:[#allocation2 + $0x2bc] sm:$0xf] %v409_v44  ;;  %v413_v46 = vld [vmem:[%s6366_s3 + $0x2e0] sm:$0xf] }
  0x88   :  { %412 = vst [vmem:[#allocation2 + $0x2c0] sm:$0xf] %v411_v45  ;;  %v415_v47 = vld [vmem:[%s6366_s3 + $0x284] sm:$0xf]  ;;  %414 = vst [vmem:[#allocation2 + $0x2c4] sm:$0xf] %v413_v46 }
  0x89   :  { %v417_v48 = vld [vmem:[%s6366_s3 + $0x2e4] sm:$0xf]  ;;  %416 = vst [vmem:[#allocation2 + $0x2c8] sm:$0xf] %v415_v47  ;;  %v419_v49 = vld [vmem:[%s6366_s3 + $0x288] sm:$0xf] }
  0x8a   :  { %418 = vst [vmem:[#allocation2 + $0x2cc] sm:$0xf] %v417_v48  ;;  %v421_v50 = vld [vmem:[%s6366_s3 + $0x2e8] sm:$0xf]  ;;  %v423_v51 = vld [vmem:[%s6366_s3 + $0x28c] sm:$0xf] }
  0x8b   :  { %420 = vst [vmem:[#allocation2 + $0x2d0] sm:$0xf] %v419_v49  ;;  %422 = vst [vmem:[#allocation2 + $0x2d4] sm:$0xf] %v421_v50  ;;  %v425_v52 = vld [vmem:[%s6366_s3 + $0x2ec] sm:$0xf] }
  0x8c   :  { %424 = vst [vmem:[#allocation2 + $0x2d8] sm:$0xf] %v423_v51  ;;  %v427_v53 = vld [vmem:[%s6366_s3 + $0x290] sm:$0xf]  ;;  %426 = vst [vmem:[#allocation2 + $0x2dc] sm:$0xf] %v425_v52 }
  0x8d   :  { %v429_v54 = vld [vmem:[%s6366_s3 + $0x2f0] sm:$0xf]  ;;  %428 = vst [vmem:[#allocation2 + $0x2e0] sm:$0xf] %v427_v53  ;;  %v431_v55 = vld [vmem:[%s6366_s3 + $0x294] sm:$0xf] }
  0x8e   :  { %430 = vst [vmem:[#allocation2 + $0x2e4] sm:$0xf] %v429_v54  ;;  %v433_v56 = vld [vmem:[%s6366_s3 + $0x2f4] sm:$0xf]  ;;  %v435_v57 = vld [vmem:[%s6366_s3 + $0x298] sm:$0xf] }
  0x8f   :  { %432 = vst [vmem:[#allocation2 + $0x2e8] sm:$0xf] %v431_v55  ;;  %434 = vst [vmem:[#allocation2 + $0x2ec] sm:$0xf] %v433_v56  ;;  %v437_v58 = vld [vmem:[%s6366_s3 + $0x2f8] sm:$0xf] }
  0x90   :  { %436 = vst [vmem:[#allocation2 + $0x2f0] sm:$0xf] %v435_v57  ;;  %v439_v59 = vld [vmem:[%s6366_s3 + $0x29c] sm:$0xf]  ;;  %438 = vst [vmem:[#allocation2 + $0x2f4] sm:$0xf] %v437_v58 }
  0x91   :  { %440 = vst [vmem:[#allocation2 + $0x2f8] sm:$0xf] %v439_v59  ;;  %442 = vst [vmem:[#allocation2 + $0x2fc] sm:$0xff] %v441_v60   ;;  %v445_v61 = vld [vmem:[%s6366_s3 + $0x360] sm:$0xf] }
  0x92   :  { %v447_v62 = vld [vmem:[%s6366_s3 + $0x304] sm:$0xf]  ;;  %446 = vst [vmem:[#allocation2 + $0x304] sm:$0xf] %v445_v61  ;;  %v451_v0 = vld [vmem:[%s6366_s3 + $0x308] sm:$0xf] }
  0x93   :  { %v449_v63 = vld [vmem:[%s6366_s3 + $0x364] sm:$0xf]  ;;  %448 = vst [vmem:[#allocation2 + $0x308] sm:$0xf] %v447_v62  ;;  %v453_v1 = vld [vmem:[%s6366_s3 + $0x368] sm:$0xf] }
  0x94   :  { %450 = vst [vmem:[#allocation2 + $0x30c] sm:$0xf] %v449_v63  ;;  %v455_v2 = vld [vmem:[%s6366_s3 + $0x30c] sm:$0xf]  ;;  %452 = vst [vmem:[#allocation2 + $0x310] sm:$0xf] %v451_v0 }
  0x95   :  { %454 = vst [vmem:[#allocation2 + $0x314] sm:$0xf] %v453_v1  ;;  %456 = vst [vmem:[#allocation2 + $0x318] sm:$0xf] %v455_v2  ;;  %v457_v3 = vld [vmem:[%s6366_s3 + $0x36c] sm:$0xf] }
  0x96   :  { %v459_v4 = vld [vmem:[%s6366_s3 + $0x310] sm:$0xf]  ;;  %458 = vst [vmem:[#allocation2 + $0x31c] sm:$0xf] %v457_v3  ;;  %v463_v6 = vld [vmem:[%s6366_s3 + $0x314] sm:$0xf] }
  0x97   :  { %v461_v5 = vld [vmem:[%s6366_s3 + $0x370] sm:$0xf]  ;;  %460 = vst [vmem:[#allocation2 + $0x320] sm:$0xf] %v459_v4  ;;  %v465_v7 = vld [vmem:[%s6366_s3 + $0x374] sm:$0xf] }
  0x98   :  { %462 = vst [vmem:[#allocation2 + $0x324] sm:$0xf] %v461_v5  ;;  %v467_v8 = vld [vmem:[%s6366_s3 + $0x318] sm:$0xf]  ;;  %464 = vst [vmem:[#allocation2 + $0x328] sm:$0xf] %v463_v6 }
  0x99   :  { %466 = vst [vmem:[#allocation2 + $0x32c] sm:$0xf] %v465_v7  ;;  %468 = vst [vmem:[#allocation2 + $0x330] sm:$0xf] %v467_v8  ;;  %v469_v9 = vld [vmem:[%s6366_s3 + $0x378] sm:$0xf] }
  0x9a   :  { %v471_v10 = vld [vmem:[%s6366_s3 + $0x31c] sm:$0xf]  ;;  %470 = vst [vmem:[#allocation2 + $0x334] sm:$0xf] %v469_v9  ;;  %v475_v12 = vld [vmem:[%s6366_s3 + $0x320] sm:$0xf] }
  0x9b   :  { %v473_v11 = vld [vmem:[%s6366_s3 + $0x37c] sm:$0xf]  ;;  %472 = vst [vmem:[#allocation2 + $0x338] sm:$0xf] %v471_v10  ;;  %v477_v13 = vld [vmem:[%s6366_s3 + $0x380] sm:$0xf] }
  0x9c   :  { %474 = vst [vmem:[#allocation2 + $0x33c] sm:$0xf] %v473_v11  ;;  %v479_v14 = vld [vmem:[%s6366_s3 + $0x324] sm:$0xf]  ;;  %476 = vst [vmem:[#allocation2 + $0x340] sm:$0xf] %v475_v12 }
  0x9d   :  { %478 = vst [vmem:[#allocation2 + $0x344] sm:$0xf] %v477_v13  ;;  %480 = vst [vmem:[#allocation2 + $0x348] sm:$0xf] %v479_v14  ;;  %v481_v15 = vld [vmem:[%s6366_s3 + $0x384] sm:$0xf] }
  0x9e   :  { %v483_v16 = vld [vmem:[%s6366_s3 + $0x328] sm:$0xf]  ;;  %482 = vst [vmem:[#allocation2 + $0x34c] sm:$0xf] %v481_v15  ;;  %v487_v18 = vld [vmem:[%s6366_s3 + $0x32c] sm:$0xf] }
  0x9f   :  { %v485_v17 = vld [vmem:[%s6366_s3 + $0x388] sm:$0xf]  ;;  %484 = vst [vmem:[#allocation2 + $0x350] sm:$0xf] %v483_v16  ;;  %v489_v19 = vld [vmem:[%s6366_s3 + $0x38c] sm:$0xf] }
  0xa0   :  { %486 = vst [vmem:[#allocation2 + $0x354] sm:$0xf] %v485_v17  ;;  %v491_v20 = vld [vmem:[%s6366_s3 + $0x330] sm:$0xf]  ;;  %488 = vst [vmem:[#allocation2 + $0x358] sm:$0xf] %v487_v18 }
  0xa1   :  { %490 = vst [vmem:[#allocation2 + $0x35c] sm:$0xf] %v489_v19  ;;  %492 = vst [vmem:[#allocation2 + $0x360] sm:$0xf] %v491_v20  ;;  %v493_v21 = vld [vmem:[%s6366_s3 + $0x390] sm:$0xf] }
  0xa2   :  { %v495_v22 = vld [vmem:[%s6366_s3 + $0x334] sm:$0xf]  ;;  %494 = vst [vmem:[#allocation2 + $0x364] sm:$0xf] %v493_v21  ;;  %v499_v24 = vld [vmem:[%s6366_s3 + $0x338] sm:$0xf] }
  0xa3   :  { %v497_v23 = vld [vmem:[%s6366_s3 + $0x394] sm:$0xf]  ;;  %496 = vst [vmem:[#allocation2 + $0x368] sm:$0xf] %v495_v22  ;;  %v501_v25 = vld [vmem:[%s6366_s3 + $0x398] sm:$0xf] }
  0xa4   :  { %498 = vst [vmem:[#allocation2 + $0x36c] sm:$0xf] %v497_v23  ;;  %v503_v26 = vld [vmem:[%s6366_s3 + $0x33c] sm:$0xf]  ;;  %500 = vst [vmem:[#allocation2 + $0x370] sm:$0xf] %v499_v24 }
  0xa5   :  { %502 = vst [vmem:[#allocation2 + $0x374] sm:$0xf] %v501_v25  ;;  %504 = vst [vmem:[#allocation2 + $0x378] sm:$0xf] %v503_v26  ;;  %v505_v27 = vld [vmem:[%s6366_s3 + $0x39c] sm:$0xf] }
  0xa6   :  { %v507_v28 = vld [vmem:[%s6366_s3 + $0x340] sm:$0xf]  ;;  %506 = vst [vmem:[#allocation2 + $0x37c] sm:$0xf] %v505_v27  ;;  %v511_v30 = vld [vmem:[%s6366_s3 + $0x344] sm:$0xf] }
  0xa7   :  { %v509_v29 = vld [vmem:[%s6366_s3 + $0x3a0] sm:$0xf]  ;;  %508 = vst [vmem:[#allocation2 + $0x380] sm:$0xf] %v507_v28  ;;  %v513_v31 = vld [vmem:[%s6366_s3 + $0x3a4] sm:$0xf] }
  0xa8   :  { %510 = vst [vmem:[#allocation2 + $0x384] sm:$0xf] %v509_v29  ;;  %v515_v32 = vld [vmem:[%s6366_s3 + $0x348] sm:$0xf]  ;;  %512 = vst [vmem:[#allocation2 + $0x388] sm:$0xf] %v511_v30 }
  0xa9   :  { %514 = vst [vmem:[#allocation2 + $0x38c] sm:$0xf] %v513_v31  ;;  %516 = vst [vmem:[#allocation2 + $0x390] sm:$0xf] %v515_v32  ;;  %v517_v33 = vld [vmem:[%s6366_s3 + $0x3a8] sm:$0xf] }
  0xaa   :  { %v519_v34 = vld [vmem:[%s6366_s3 + $0x34c] sm:$0xf]  ;;  %518 = vst [vmem:[#allocation2 + $0x394] sm:$0xf] %v517_v33  ;;  %v523_v36 = vld [vmem:[%s6366_s3 + $0x350] sm:$0xf] }
  0xab   :  { %v521_v35 = vld [vmem:[%s6366_s3 + $0x3ac] sm:$0xf]  ;;  %520 = vst [vmem:[#allocation2 + $0x398] sm:$0xf] %v519_v34  ;;  %v525_v37 = vld [vmem:[%s6366_s3 + $0x3b0] sm:$0xf] }
  0xac   :  { %522 = vst [vmem:[#allocation2 + $0x39c] sm:$0xf] %v521_v35  ;;  %v527_v38 = vld [vmem:[%s6366_s3 + $0x354] sm:$0xf]  ;;  %524 = vst [vmem:[#allocation2 + $0x3a0] sm:$0xf] %v523_v36 }
  0xad   :  { %526 = vst [vmem:[#allocation2 + $0x3a4] sm:$0xf] %v525_v37  ;;  %528 = vst [vmem:[#allocation2 + $0x3a8] sm:$0xf] %v527_v38  ;;  %v529_v39 = vld [vmem:[%s6366_s3 + $0x3b4] sm:$0xf] }
  0xae   :  { %v531_v40 = vld [vmem:[%s6366_s3 + $0x358] sm:$0xf]  ;;  %530 = vst [vmem:[#allocation2 + $0x3ac] sm:$0xf] %v529_v39  ;;  %v535_v42 = vld [vmem:[%s6366_s3 + $0x35c] sm:$0xf] }
  0xaf   :  { %v533_v41 = vld [vmem:[%s6366_s3 + $0x3b8] sm:$0xf]  ;;  %532 = vst [vmem:[#allocation2 + $0x3b0] sm:$0xf] %v531_v40  ;;  %v537_v43 = vld [vmem:[%s6366_s3 + $0x3bc] sm:$0xff]  }
  0xb0   :  { %534 = vst [vmem:[#allocation2 + $0x3b4] sm:$0xf] %v533_v41  ;;  %v541_v44 = vld [vmem:[%s6366_s3 + $0x420] sm:$0xf]  ;;  %536 = vst [vmem:[#allocation2 + $0x3b8] sm:$0xf] %v535_v42 }
  0xb1   :  { %538 = vst [vmem:[#allocation2 + $0x3bc] sm:$0xff] %v537_v43   ;;  %542 = vst [vmem:[#allocation2 + $0x3c4] sm:$0xf] %v541_v44  ;;  %v543_v45 = vld [vmem:[%s6366_s3 + $0x3c4] sm:$0xf]  ;;  %v633_v26 = vld [vmem:[%s6366_s3 + $0x47c] sm:$0xff]  }
  0xb2   :  { %v545_v46 = vld [vmem:[%s6366_s3 + $0x424] sm:$0xf]  ;;  %v547_v47 = vld [vmem:[%s6366_s3 + $0x3c8] sm:$0xf]  ;;  %544 = vst [vmem:[#allocation2 + $0x3c8] sm:$0xf] %v543_v45 }
  0xb3   :  { %546 = vst [vmem:[#allocation2 + $0x3cc] sm:$0xf] %v545_v46  ;;  %548 = vst [vmem:[#allocation2 + $0x3d0] sm:$0xf] %v547_v47  ;;  %v549_v48 = vld [vmem:[%s6366_s3 + $0x428] sm:$0xf] }
  0xb4   :  { %v551_v49 = vld [vmem:[%s6366_s3 + $0x3cc] sm:$0xf]  ;;  %550 = vst [vmem:[#allocation2 + $0x3d4] sm:$0xf] %v549_v48  ;;  %v555_v51 = vld [vmem:[%s6366_s3 + $0x3d0] sm:$0xf] }
  0xb5   :  { %v553_v50 = vld [vmem:[%s6366_s3 + $0x42c] sm:$0xf]  ;;  %552 = vst [vmem:[#allocation2 + $0x3d8] sm:$0xf] %v551_v49  ;;  %v557_v52 = vld [vmem:[%s6366_s3 + $0x430] sm:$0xf] }
  0xb6   :  { %554 = vst [vmem:[#allocation2 + $0x3dc] sm:$0xf] %v553_v50  ;;  %v559_v53 = vld [vmem:[%s6366_s3 + $0x3d4] sm:$0xf]  ;;  %556 = vst [vmem:[#allocation2 + $0x3e0] sm:$0xf] %v555_v51 }
  0xb7   :  { %558 = vst [vmem:[#allocation2 + $0x3e4] sm:$0xf] %v557_v52  ;;  %560 = vst [vmem:[#allocation2 + $0x3e8] sm:$0xf] %v559_v53  ;;  %v561_v54 = vld [vmem:[%s6366_s3 + $0x434] sm:$0xf] }
  0xb8   :  { %v563_v55 = vld [vmem:[%s6366_s3 + $0x3d8] sm:$0xf]  ;;  %562 = vst [vmem:[#allocation2 + $0x3ec] sm:$0xf] %v561_v54  ;;  %v567_v57 = vld [vmem:[%s6366_s3 + $0x3dc] sm:$0xf] }
  0xb9   :  { %v565_v56 = vld [vmem:[%s6366_s3 + $0x438] sm:$0xf]  ;;  %564 = vst [vmem:[#allocation2 + $0x3f0] sm:$0xf] %v563_v55  ;;  %v569_v58 = vld [vmem:[%s6366_s3 + $0x43c] sm:$0xf] }
  0xba   :  { %566 = vst [vmem:[#allocation2 + $0x3f4] sm:$0xf] %v565_v56  ;;  %v571_v59 = vld [vmem:[%s6366_s3 + $0x3e0] sm:$0xf]  ;;  %568 = vst [vmem:[#allocation2 + $0x3f8] sm:$0xf] %v567_v57 }
  0xbb   :  { %570 = vst [vmem:[#allocation2 + $0x3fc] sm:$0xf] %v569_v58  ;;  %572 = vst [vmem:[#allocation2 + $0x400] sm:$0xf] %v571_v59  ;;  %v573_v60 = vld [vmem:[%s6366_s3 + $0x440] sm:$0xf] }
  0xbc   :  { %v575_v61 = vld [vmem:[%s6366_s3 + $0x3e4] sm:$0xf]  ;;  %574 = vst [vmem:[#allocation2 + $0x404] sm:$0xf] %v573_v60  ;;  %v579_v63 = vld [vmem:[%s6366_s3 + $0x3e8] sm:$0xf] }
  0xbd   :  { %v577_v62 = vld [vmem:[%s6366_s3 + $0x444] sm:$0xf]  ;;  %576 = vst [vmem:[#allocation2 + $0x408] sm:$0xf] %v575_v61  ;;  %v581_v0 = vld [vmem:[%s6366_s3 + $0x448] sm:$0xf] }
  0xbe   :  { %578 = vst [vmem:[#allocation2 + $0x40c] sm:$0xf] %v577_v62  ;;  %v583_v1 = vld [vmem:[%s6366_s3 + $0x3ec] sm:$0xf]  ;;  %580 = vst [vmem:[#allocation2 + $0x410] sm:$0xf] %v579_v63 }
  0xbf   :  { %582 = vst [vmem:[#allocation2 + $0x414] sm:$0xf] %v581_v0  ;;  %584 = vst [vmem:[#allocation2 + $0x418] sm:$0xf] %v583_v1  ;;  %v585_v2 = vld [vmem:[%s6366_s3 + $0x44c] sm:$0xf] }
  0xc0   :  { %v587_v3 = vld [vmem:[%s6366_s3 + $0x3f0] sm:$0xf]  ;;  %586 = vst [vmem:[#allocation2 + $0x41c] sm:$0xf] %v585_v2  ;;  %v591_v5 = vld [vmem:[%s6366_s3 + $0x3f4] sm:$0xf] }
  0xc1   :  { %v589_v4 = vld [vmem:[%s6366_s3 + $0x450] sm:$0xf]  ;;  %588 = vst [vmem:[#allocation2 + $0x420] sm:$0xf] %v587_v3  ;;  %v593_v6 = vld [vmem:[%s6366_s3 + $0x454] sm:$0xf] }
  0xc2   :  { %590 = vst [vmem:[#allocation2 + $0x424] sm:$0xf] %v589_v4  ;;  %v595_v7 = vld [vmem:[%s6366_s3 + $0x3f8] sm:$0xf]  ;;  %592 = vst [vmem:[#allocation2 + $0x428] sm:$0xf] %v591_v5 }
  0xc3   :  { %594 = vst [vmem:[#allocation2 + $0x42c] sm:$0xf] %v593_v6  ;;  %596 = vst [vmem:[#allocation2 + $0x430] sm:$0xf] %v595_v7  ;;  %v597_v8 = vld [vmem:[%s6366_s3 + $0x458] sm:$0xf] }
  0xc4   :  { %v599_v9 = vld [vmem:[%s6366_s3 + $0x3fc] sm:$0xf]  ;;  %598 = vst [vmem:[#allocation2 + $0x434] sm:$0xf] %v597_v8  ;;  %v603_v11 = vld [vmem:[%s6366_s3 + $0x400] sm:$0xf] }
  0xc5   :  { %v601_v10 = vld [vmem:[%s6366_s3 + $0x45c] sm:$0xf]  ;;  %600 = vst [vmem:[#allocation2 + $0x438] sm:$0xf] %v599_v9  ;;  %v605_v12 = vld [vmem:[%s6366_s3 + $0x460] sm:$0xf] }
  0xc6   :  { %602 = vst [vmem:[#allocation2 + $0x43c] sm:$0xf] %v601_v10  ;;  %v607_v13 = vld [vmem:[%s6366_s3 + $0x404] sm:$0xf]  ;;  %604 = vst [vmem:[#allocation2 + $0x440] sm:$0xf] %v603_v11 }
  0xc7   :  { %606 = vst [vmem:[#allocation2 + $0x444] sm:$0xf] %v605_v12  ;;  %608 = vst [vmem:[#allocation2 + $0x448] sm:$0xf] %v607_v13  ;;  %v609_v14 = vld [vmem:[%s6366_s3 + $0x464] sm:$0xf] }
  0xc8   :  { %v611_v15 = vld [vmem:[%s6366_s3 + $0x408] sm:$0xf]  ;;  %610 = vst [vmem:[#allocation2 + $0x44c] sm:$0xf] %v609_v14  ;;  %v615_v17 = vld [vmem:[%s6366_s3 + $0x40c] sm:$0xf] }
  0xc9   :  { %v613_v16 = vld [vmem:[%s6366_s3 + $0x468] sm:$0xf]  ;;  %612 = vst [vmem:[#allocation2 + $0x450] sm:$0xf] %v611_v15  ;;  %v617_v18 = vld [vmem:[%s6366_s3 + $0x46c] sm:$0xf] }
  0xca   :  { %614 = vst [vmem:[#allocation2 + $0x454] sm:$0xf] %v613_v16  ;;  %v619_v19 = vld [vmem:[%s6366_s3 + $0x410] sm:$0xf]  ;;  %616 = vst [vmem:[#allocation2 + $0x458] sm:$0xf] %v615_v17 }
  0xcb   :  { %618 = vst [vmem:[#allocation2 + $0x45c] sm:$0xf] %v617_v18  ;;  %620 = vst [vmem:[#allocation2 + $0x460] sm:$0xf] %v619_v19  ;;  %v621_v20 = vld [vmem:[%s6366_s3 + $0x470] sm:$0xf] }
  0xcc   :  { %v623_v21 = vld [vmem:[%s6366_s3 + $0x414] sm:$0xf]  ;;  %622 = vst [vmem:[#allocation2 + $0x464] sm:$0xf] %v621_v20  ;;  %v627_v23 = vld [vmem:[%s6366_s3 + $0x418] sm:$0xf] }
  0xcd   :  { %v625_v22 = vld [vmem:[%s6366_s3 + $0x474] sm:$0xf]  ;;  %624 = vst [vmem:[#allocation2 + $0x468] sm:$0xf] %v623_v21  ;;  %v629_v24 = vld [vmem:[%s6366_s3 + $0x478] sm:$0xf] }
  0xce   :  { %626 = vst [vmem:[#allocation2 + $0x46c] sm:$0xf] %v625_v22  ;;  %v631_v25 = vld [vmem:[%s6366_s3 + $0x41c] sm:$0xf]  ;;  %628 = vst [vmem:[#allocation2 + $0x470] sm:$0xf] %v627_v23 }
  0xcf   :  { %630 = vst [vmem:[#allocation2 + $0x474] sm:$0xf] %v629_v24  ;;  %632 = vst [vmem:[#allocation2 + $0x478] sm:$0xf] %v631_v25  ;;  %v637_v27 = vld [vmem:[%s6366_s3 + $0x4e0] sm:$0xf] }
  0xd0   :  { %v639_v28 = vld [vmem:[%s6366_s3 + $0x484] sm:$0xf]  ;;  %634 = vst [vmem:[#allocation2 + $0x47c] sm:$0xff] %v633_v26   ;;  %638 = vst [vmem:[#allocation2 + $0x484] sm:$0xf] %v637_v27  ;;  %v729_v9 = vld [vmem:[%s6366_s3 + $0x53c] sm:$0xff]  }
  0xd1   :  { %640 = vst [vmem:[#allocation2 + $0x488] sm:$0xf] %v639_v28  ;;  %v641_v29 = vld [vmem:[%s6366_s3 + $0x4e4] sm:$0xf]  ;;  %v643_v30 = vld [vmem:[%s6366_s3 + $0x488] sm:$0xf] }
  0xd2   :  { %v645_v31 = vld [vmem:[%s6366_s3 + $0x4e8] sm:$0xf]  ;;  %642 = vst [vmem:[#allocation2 + $0x48c] sm:$0xf] %v641_v29  ;;  %644 = vst [vmem:[#allocation2 + $0x490] sm:$0xf] %v643_v30 }
  0xd3   :  { %646 = vst [vmem:[#allocation2 + $0x494] sm:$0xf] %v645_v31  ;;  %v647_v32 = vld [vmem:[%s6366_s3 + $0x48c] sm:$0xf]  ;;  %v651_v34 = vld [vmem:[%s6366_s3 + $0x490] sm:$0xf] }
  0xd4   :  { %v649_v33 = vld [vmem:[%s6366_s3 + $0x4ec] sm:$0xf]  ;;  %648 = vst [vmem:[#allocation2 + $0x498] sm:$0xf] %v647_v32  ;;  %652 = vst [vmem:[#allocation2 + $0x4a0] sm:$0xf] %v651_v34 }
  0xd5   :  { %650 = vst [vmem:[#allocation2 + $0x49c] sm:$0xf] %v649_v33  ;;  %v653_v35 = vld [vmem:[%s6366_s3 + $0x4f0] sm:$0xf]  ;;  %v655_v36 = vld [vmem:[%s6366_s3 + $0x494] sm:$0xf] }
  0xd6   :  { %v657_v37 = vld [vmem:[%s6366_s3 + $0x4f4] sm:$0xf]  ;;  %654 = vst [vmem:[#allocation2 + $0x4a4] sm:$0xf] %v653_v35  ;;  %656 = vst [vmem:[#allocation2 + $0x4a8] sm:$0xf] %v655_v36 }
  0xd7   :  { %658 = vst [vmem:[#allocation2 + $0x4ac] sm:$0xf] %v657_v37  ;;  %v659_v38 = vld [vmem:[%s6366_s3 + $0x498] sm:$0xf]  ;;  %v663_v40 = vld [vmem:[%s6366_s3 + $0x49c] sm:$0xf] }
  0xd8   :  { %v661_v39 = vld [vmem:[%s6366_s3 + $0x4f8] sm:$0xf]  ;;  %660 = vst [vmem:[#allocation2 + $0x4b0] sm:$0xf] %v659_v38  ;;  %664 = vst [vmem:[#allocation2 + $0x4b8] sm:$0xf] %v663_v40 }
  0xd9   :  { %662 = vst [vmem:[#allocation2 + $0x4b4] sm:$0xf] %v661_v39  ;;  %v665_v41 = vld [vmem:[%s6366_s3 + $0x4fc] sm:$0xf]  ;;  %v667_v42 = vld [vmem:[%s6366_s3 + $0x4a0] sm:$0xf] }
  0xda   :  { %v669_v43 = vld [vmem:[%s6366_s3 + $0x500] sm:$0xf]  ;;  %666 = vst [vmem:[#allocation2 + $0x4bc] sm:$0xf] %v665_v41  ;;  %668 = vst [vmem:[#allocation2 + $0x4c0] sm:$0xf] %v667_v42 }
  0xdb   :  { %670 = vst [vmem:[#allocation2 + $0x4c4] sm:$0xf] %v669_v43  ;;  %v671_v44 = vld [vmem:[%s6366_s3 + $0x4a4] sm:$0xf]  ;;  %v675_v46 = vld [vmem:[%s6366_s3 + $0x4a8] sm:$0xf] }
  0xdc   :  { %v673_v45 = vld [vmem:[%s6366_s3 + $0x504] sm:$0xf]  ;;  %672 = vst [vmem:[#allocation2 + $0x4c8] sm:$0xf] %v671_v44  ;;  %676 = vst [vmem:[#allocation2 + $0x4d0] sm:$0xf] %v675_v46 }
  0xdd   :  { %674 = vst [vmem:[#allocation2 + $0x4cc] sm:$0xf] %v673_v45  ;;  %v677_v47 = vld [vmem:[%s6366_s3 + $0x508] sm:$0xf]  ;;  %v679_v48 = vld [vmem:[%s6366_s3 + $0x4ac] sm:$0xf] }
  0xde   :  { %v681_v49 = vld [vmem:[%s6366_s3 + $0x50c] sm:$0xf]  ;;  %678 = vst [vmem:[#allocation2 + $0x4d4] sm:$0xf] %v677_v47  ;;  %680 = vst [vmem:[#allocation2 + $0x4d8] sm:$0xf] %v679_v48 }
  0xdf   :  { %682 = vst [vmem:[#allocation2 + $0x4dc] sm:$0xf] %v681_v49  ;;  %v683_v50 = vld [vmem:[%s6366_s3 + $0x4b0] sm:$0xf]  ;;  %v687_v52 = vld [vmem:[%s6366_s3 + $0x4b4] sm:$0xf] }
  0xe0   :  { %v685_v51 = vld [vmem:[%s6366_s3 + $0x510] sm:$0xf]  ;;  %684 = vst [vmem:[#allocation2 + $0x4e0] sm:$0xf] %v683_v50  ;;  %688 = vst [vmem:[#allocation2 + $0x4e8] sm:$0xf] %v687_v52 }
  0xe1   :  { %686 = vst [vmem:[#allocation2 + $0x4e4] sm:$0xf] %v685_v51  ;;  %v689_v53 = vld [vmem:[%s6366_s3 + $0x514] sm:$0xf]  ;;  %v691_v54 = vld [vmem:[%s6366_s3 + $0x4b8] sm:$0xf] }
  0xe2   :  { %v693_v55 = vld [vmem:[%s6366_s3 + $0x518] sm:$0xf]  ;;  %690 = vst [vmem:[#allocation2 + $0x4ec] sm:$0xf] %v689_v53  ;;  %692 = vst [vmem:[#allocation2 + $0x4f0] sm:$0xf] %v691_v54 }
  0xe3   :  { %694 = vst [vmem:[#allocation2 + $0x4f4] sm:$0xf] %v693_v55  ;;  %v695_v56 = vld [vmem:[%s6366_s3 + $0x4bc] sm:$0xf]  ;;  %v699_v58 = vld [vmem:[%s6366_s3 + $0x4c0] sm:$0xf] }
  0xe4   :  { %v697_v57 = vld [vmem:[%s6366_s3 + $0x51c] sm:$0xf]  ;;  %696 = vst [vmem:[#allocation2 + $0x4f8] sm:$0xf] %v695_v56  ;;  %700 = vst [vmem:[#allocation2 + $0x500] sm:$0xf] %v699_v58 }
  0xe5   :  { %698 = vst [vmem:[#allocation2 + $0x4fc] sm:$0xf] %v697_v57  ;;  %v701_v59 = vld [vmem:[%s6366_s3 + $0x520] sm:$0xf]  ;;  %v703_v60 = vld [vmem:[%s6366_s3 + $0x4c4] sm:$0xf] }
  0xe6   :  { %v705_v61 = vld [vmem:[%s6366_s3 + $0x524] sm:$0xf]  ;;  %702 = vst [vmem:[#allocation2 + $0x504] sm:$0xf] %v701_v59  ;;  %704 = vst [vmem:[#allocation2 + $0x508] sm:$0xf] %v703_v60 }
  0xe7   :  { %706 = vst [vmem:[#allocation2 + $0x50c] sm:$0xf] %v705_v61  ;;  %v707_v62 = vld [vmem:[%s6366_s3 + $0x4c8] sm:$0xf]  ;;  %v711_v0 = vld [vmem:[%s6366_s3 + $0x4cc] sm:$0xf] }
  0xe8   :  { %v709_v63 = vld [vmem:[%s6366_s3 + $0x528] sm:$0xf]  ;;  %708 = vst [vmem:[#allocation2 + $0x510] sm:$0xf] %v707_v62  ;;  %712 = vst [vmem:[#allocation2 + $0x518] sm:$0xf] %v711_v0 }
  0xe9   :  { %710 = vst [vmem:[#allocation2 + $0x514] sm:$0xf] %v709_v63  ;;  %v713_v1 = vld [vmem:[%s6366_s3 + $0x52c] sm:$0xf]  ;;  %v715_v2 = vld [vmem:[%s6366_s3 + $0x4d0] sm:$0xf] }
  0xea   :  { %v717_v3 = vld [vmem:[%s6366_s3 + $0x530] sm:$0xf]  ;;  %714 = vst [vmem:[#allocation2 + $0x51c] sm:$0xf] %v713_v1  ;;  %716 = vst [vmem:[#allocation2 + $0x520] sm:$0xf] %v715_v2 }
  0xeb   :  { %718 = vst [vmem:[#allocation2 + $0x524] sm:$0xf] %v717_v3  ;;  %v719_v4 = vld [vmem:[%s6366_s3 + $0x4d4] sm:$0xf]  ;;  %v723_v6 = vld [vmem:[%s6366_s3 + $0x4d8] sm:$0xf] }
  0xec   :  { %v721_v5 = vld [vmem:[%s6366_s3 + $0x534] sm:$0xf]  ;;  %720 = vst [vmem:[#allocation2 + $0x528] sm:$0xf] %v719_v4  ;;  %724 = vst [vmem:[#allocation2 + $0x530] sm:$0xf] %v723_v6 }
  0xed   :  { %722 = vst [vmem:[#allocation2 + $0x52c] sm:$0xf] %v721_v5  ;;  %v725_v7 = vld [vmem:[%s6366_s3 + $0x538] sm:$0xf]  ;;  %v727_v8 = vld [vmem:[%s6366_s3 + $0x4dc] sm:$0xf] }
  0xee   :  { %726 = vst [vmem:[#allocation2 + $0x534] sm:$0xf] %v725_v7  ;;  %728 = vst [vmem:[#allocation2 + $0x538] sm:$0xf] %v727_v8  ;;  %v733_v10 = vld [vmem:[%s6366_s3 + $0x5a0] sm:$0xf] }
  0xef   :  { %730 = vst [vmem:[#allocation2 + $0x53c] sm:$0xff] %v729_v9   ;;  %v735_v11 = vld [vmem:[%s6366_s3 + $0x544] sm:$0xf]  ;;  %734 = vst [vmem:[#allocation2 + $0x544] sm:$0xf] %v733_v10 }
  0xf0   :  { %v737_v12 = vld [vmem:[%s6366_s3 + $0x5a4] sm:$0xf]  ;;  %736 = vst [vmem:[#allocation2 + $0x548] sm:$0xf] %v735_v11  ;;  %v739_v13 = vld [vmem:[%s6366_s3 + $0x548] sm:$0xf] }
  0xf1   :  { %738 = vst [vmem:[#allocation2 + $0x54c] sm:$0xf] %v737_v12  ;;  %v741_v14 = vld [vmem:[%s6366_s3 + $0x5a8] sm:$0xf]  ;;  %v743_v15 = vld [vmem:[%s6366_s3 + $0x54c] sm:$0xf] }
  0xf2   :  { %740 = vst [vmem:[#allocation2 + $0x550] sm:$0xf] %v739_v13  ;;  %742 = vst [vmem:[#allocation2 + $0x554] sm:$0xf] %v741_v14  ;;  %v745_v16 = vld [vmem:[%s6366_s3 + $0x5ac] sm:$0xf] }
  0xf3   :  { %744 = vst [vmem:[#allocation2 + $0x558] sm:$0xf] %v743_v15  ;;  %v747_v17 = vld [vmem:[%s6366_s3 + $0x550] sm:$0xf]  ;;  %746 = vst [vmem:[#allocation2 + $0x55c] sm:$0xf] %v745_v16 }
  0xf4   :  { %v749_v18 = vld [vmem:[%s6366_s3 + $0x5b0] sm:$0xf]  ;;  %748 = vst [vmem:[#allocation2 + $0x560] sm:$0xf] %v747_v17  ;;  %v751_v19 = vld [vmem:[%s6366_s3 + $0x554] sm:$0xf] }
  0xf5   :  { %750 = vst [vmem:[#allocation2 + $0x564] sm:$0xf] %v749_v18  ;;  %v753_v20 = vld [vmem:[%s6366_s3 + $0x5b4] sm:$0xf]  ;;  %v755_v21 = vld [vmem:[%s6366_s3 + $0x558] sm:$0xf] }
  0xf6   :  { %752 = vst [vmem:[#allocation2 + $0x568] sm:$0xf] %v751_v19  ;;  %754 = vst [vmem:[#allocation2 + $0x56c] sm:$0xf] %v753_v20  ;;  %v757_v22 = vld [vmem:[%s6366_s3 + $0x5b8] sm:$0xf] }
  0xf7   :  { %756 = vst [vmem:[#allocation2 + $0x570] sm:$0xf] %v755_v21  ;;  %v759_v23 = vld [vmem:[%s6366_s3 + $0x55c] sm:$0xf]  ;;  %758 = vst [vmem:[#allocation2 + $0x574] sm:$0xf] %v757_v22 }
  0xf8   :  { %v761_v24 = vld [vmem:[%s6366_s3 + $0x5bc] sm:$0xf]  ;;  %760 = vst [vmem:[#allocation2 + $0x578] sm:$0xf] %v759_v23  ;;  %v763_v25 = vld [vmem:[%s6366_s3 + $0x560] sm:$0xf] }
  0xf9   :  { %762 = vst [vmem:[#allocation2 + $0x57c] sm:$0xf] %v761_v24  ;;  %v765_v26 = vld [vmem:[%s6366_s3 + $0x5c0] sm:$0xf]  ;;  %v767_v27 = vld [vmem:[%s6366_s3 + $0x564] sm:$0xf] }
  0xfa   :  { %764 = vst [vmem:[#allocation2 + $0x580] sm:$0xf] %v763_v25  ;;  %766 = vst [vmem:[#allocation2 + $0x584] sm:$0xf] %v765_v26  ;;  %v769_v28 = vld [vmem:[%s6366_s3 + $0x5c4] sm:$0xf] }
  0xfb   :  { %768 = vst [vmem:[#allocation2 + $0x588] sm:$0xf] %v767_v27  ;;  %v771_v29 = vld [vmem:[%s6366_s3 + $0x568] sm:$0xf]  ;;  %770 = vst [vmem:[#allocation2 + $0x58c] sm:$0xf] %v769_v28 }
  0xfc   :  { %v773_v30 = vld [vmem:[%s6366_s3 + $0x5c8] sm:$0xf]  ;;  %772 = vst [vmem:[#allocation2 + $0x590] sm:$0xf] %v771_v29  ;;  %v775_v31 = vld [vmem:[%s6366_s3 + $0x56c] sm:$0xf] }
  0xfd   :  { %774 = vst [vmem:[#allocation2 + $0x594] sm:$0xf] %v773_v30  ;;  %v777_v32 = vld [vmem:[%s6366_s3 + $0x5cc] sm:$0xf]  ;;  %v779_v33 = vld [vmem:[%s6366_s3 + $0x570] sm:$0xf] }
  0xfe   :  { %776 = vst [vmem:[#allocation2 + $0x598] sm:$0xf] %v775_v31  ;;  %778 = vst [vmem:[#allocation2 + $0x59c] sm:$0xf] %v777_v32  ;;  %v781_v34 = vld [vmem:[%s6366_s3 + $0x5d0] sm:$0xf] }
  0xff   :  { %780 = vst [vmem:[#allocation2 + $0x5a0] sm:$0xf] %v779_v33  ;;  %v783_v35 = vld [vmem:[%s6366_s3 + $0x574] sm:$0xf]  ;;  %782 = vst [vmem:[#allocation2 + $0x5a4] sm:$0xf] %v781_v34 }
 0x100   :  { %v785_v36 = vld [vmem:[%s6366_s3 + $0x5d4] sm:$0xf]  ;;  %784 = vst [vmem:[#allocation2 + $0x5a8] sm:$0xf] %v783_v35  ;;  %v787_v37 = vld [vmem:[%s6366_s3 + $0x578] sm:$0xf] }
 0x101   :  { %786 = vst [vmem:[#allocation2 + $0x5ac] sm:$0xf] %v785_v36  ;;  %v789_v38 = vld [vmem:[%s6366_s3 + $0x5d8] sm:$0xf]  ;;  %v791_v39 = vld [vmem:[%s6366_s3 + $0x57c] sm:$0xf] }
 0x102   :  { %788 = vst [vmem:[#allocation2 + $0x5b0] sm:$0xf] %v787_v37  ;;  %790 = vst [vmem:[#allocation2 + $0x5b4] sm:$0xf] %v789_v38  ;;  %v793_v40 = vld [vmem:[%s6366_s3 + $0x5dc] sm:$0xf] }
 0x103   :  { %792 = vst [vmem:[#allocation2 + $0x5b8] sm:$0xf] %v791_v39  ;;  %v795_v41 = vld [vmem:[%s6366_s3 + $0x580] sm:$0xf]  ;;  %794 = vst [vmem:[#allocation2 + $0x5bc] sm:$0xf] %v793_v40 }
 0x104   :  { %v797_v42 = vld [vmem:[%s6366_s3 + $0x5e0] sm:$0xf]  ;;  %796 = vst [vmem:[#allocation2 + $0x5c0] sm:$0xf] %v795_v41  ;;  %v799_v43 = vld [vmem:[%s6366_s3 + $0x584] sm:$0xf] }
 0x105   :  { %798 = vst [vmem:[#allocation2 + $0x5c4] sm:$0xf] %v797_v42  ;;  %v801_v44 = vld [vmem:[%s6366_s3 + $0x5e4] sm:$0xf]  ;;  %v803_v45 = vld [vmem:[%s6366_s3 + $0x588] sm:$0xf] }
 0x106   :  { %800 = vst [vmem:[#allocation2 + $0x5c8] sm:$0xf] %v799_v43  ;;  %802 = vst [vmem:[#allocation2 + $0x5cc] sm:$0xf] %v801_v44  ;;  %v805_v46 = vld [vmem:[%s6366_s3 + $0x5e8] sm:$0xf] }
 0x107   :  { %804 = vst [vmem:[#allocation2 + $0x5d0] sm:$0xf] %v803_v45  ;;  %v807_v47 = vld [vmem:[%s6366_s3 + $0x58c] sm:$0xf]  ;;  %806 = vst [vmem:[#allocation2 + $0x5d4] sm:$0xf] %v805_v46 }
 0x108   :  { %v809_v48 = vld [vmem:[%s6366_s3 + $0x5ec] sm:$0xf]  ;;  %808 = vst [vmem:[#allocation2 + $0x5d8] sm:$0xf] %v807_v47  ;;  %v811_v49 = vld [vmem:[%s6366_s3 + $0x590] sm:$0xf] }
 0x109   :  { %810 = vst [vmem:[#allocation2 + $0x5dc] sm:$0xf] %v809_v48  ;;  %v813_v50 = vld [vmem:[%s6366_s3 + $0x5f0] sm:$0xf]  ;;  %v815_v51 = vld [vmem:[%s6366_s3 + $0x594] sm:$0xf] }
 0x10a   :  { %812 = vst [vmem:[#allocation2 + $0x5e0] sm:$0xf] %v811_v49  ;;  %814 = vst [vmem:[#allocation2 + $0x5e4] sm:$0xf] %v813_v50  ;;  %v817_v52 = vld [vmem:[%s6366_s3 + $0x5f4] sm:$0xf] }
 0x10b   :  { %816 = vst [vmem:[#allocation2 + $0x5e8] sm:$0xf] %v815_v51  ;;  %v819_v53 = vld [vmem:[%s6366_s3 + $0x598] sm:$0xf]  ;;  %818 = vst [vmem:[#allocation2 + $0x5ec] sm:$0xf] %v817_v52 }
 0x10c   :  { %v821_v54 = vld [vmem:[%s6366_s3 + $0x5f8] sm:$0xf]  ;;  %820 = vst [vmem:[#allocation2 + $0x5f0] sm:$0xf] %v819_v53  ;;  %v823_v55 = vld [vmem:[%s6366_s3 + $0x59c] sm:$0xf] }
 0x10d   :  { %822 = vst [vmem:[#allocation2 + $0x5f4] sm:$0xf] %v821_v54  ;;  %v825_v56 = vld [vmem:[%s6366_s3 + $0x5fc] sm:$0xf]  ;;  %824 = vst [vmem:[#allocation2 + $0x5f8] sm:$0xf] %v823_v55 }
 0x10e   :  { %826 = vst [vmem:[#allocation2 + $0x5fc] sm:$0xf] %v825_v56 }
 0x10f   :  { %1625 = vsyncadd [#allocation4], 24576  ;;  %s1631_s24 = sld [smem:[#allocation0]]   ;;  %s4674_s25 = smov [#allocation3]   ;;  %v4683_v59 = vmov 0   ;;  %vm2559_vm0 = vcmask 1040384  }
 0x110   :  { %s1639_s26 = sshll.u32 %s4674_s25, 4  ;;  %s4675_s27 = smov 512   ;;  %1825 = vmatprep.mubr.bf16.mxu0 %v4683_v59  ;;  %1996 = vmatprep.mubr.bf16.mxu1 %v4683_v59  ;;  %s1640_s26 = int_to_ptr.vmem [resolvable:$true] %s1639_s26 }
 0x111   :  { %1643 = sst [smem:[#allocation11]] %s4675_s27  ;;  %s4676_s28 = smov 4  }
 0x112   :  { %1645 = sst [smem:[#allocation11 + $0x1]] %s4675_s27  ;;  %s4677_s29 = smov 64  }
 0x113   :  { %1647 = sst [smem:[#allocation11 + $0x2]] %s4676_s28  ;;  %s4678_s8 = smov 128  }
 0x114   :  { %1649 = sst [smem:[#allocation11 + $0x3]] %s4677_s29  ;;  %s4679_s10 = smov 2  }
 0x115   :  { %s4186_s30 = sshll.u32 %s1631_s24, 26  ;;  %1651 = sst [smem:[#allocation11 + $0x4]] %s4678_s8 }
 0x116   :  { %s4187_s9 = sadd.s32 134217728, %s4186_s30  ;;  %1653 = sst [smem:[#allocation11 + $0x5]] %s4679_s10 }
 0x117   :  { %s4680_s3 = smov 256   ;;  %1657 = sst [smem:[#allocation11 + $0x7]] %s4677_s29 }
 0x118   :  { %1655 = sst [smem:[#allocation11 + $0x6]] %s4680_s3  ;;  %s4681_s11 = smov [#allocation4 + $0x1]  }
 0x119   :  { %1659 = sst [smem:[#allocation11 + $0x8]] %s4676_s28  ;;  %s4682_s12 = smov [#allocation10]  }
 0x11a   :  { %1661 = dma.general %s6367_s4, 32768, %s1640_s26, %s4681_s11, %s4682_s12, [#allocation11], %s4187_s9, 0  }
 0x11b   :  { %v4523_v57 = vld [vmem:[#allocation5 + $0x4] ss:$24 sps:$4 sm:$0xff]   ;;  %v4527_v60 = vld [vmem:[#allocation5] ss:$24 sps:$4 sm:$0xff]   ;;  %v4529_v62 = vld [vmem:[#allocation5 + $0x34] ss:$24 sps:$4 sm:$0xff]  }
 0x11c   :  { %v4525_v58 = vld [vmem:[#allocation5 + $0xc] ss:$24 sps:$4 sm:$0xff]   ;;  %1793 = vmatprep.subr.bf16.mxu0 %v4523_v57  ;;  %v4528_v61 = vld [vmem:[#allocation5 + $0x8] ss:$24 sps:$4 sm:$0xff]   ;;  %v4531_v63 = vld [vmem:[#allocation5 + $0x3c] ss:$24 sps:$4 sm:$0xff]  }
 0x11d   :  { %1964 = vmatprep.subr.bf16.mxu1 %v4525_v58  ;;  %1794 = vmatpush1.bf16.msra.mxu0 %v4527_v60  ;;  %v4533_v0 = vld [vmem:[#allocation5 + $0x30] ss:$24 sps:$4 sm:$0xff]   ;;  %v4535_v2 = vld [vmem:[#allocation5 + $0x64] ss:$24 sps:$4 sm:$0xff]   ;;  %v4539_v4 = vld [vmem:[#allocation5 + $0x60] ss:$24 sps:$4 sm:$0xff]  }
 0x11e   :  { %1965 = vmatpush1.bf16.msra.mxu1 %v4528_v61  ;;  %1795 = vmatprep.subr.bf16.mxu0 %v4529_v62  ;;  %v4534_v1 = vld [vmem:[#allocation5 + $0x38] ss:$24 sps:$4 sm:$0xff]   ;;  %v4537_v3 = vld [vmem:[#allocation5 + $0x6c] ss:$24 sps:$4 sm:$0xff]   ;;  %v4540_v5 = vld [vmem:[#allocation5 + $0x68] ss:$24 sps:$4 sm:$0xff]  }
 0x11f   :  { %1966 = vmatprep.subr.bf16.mxu1 %v4531_v63  ;;  %v4541_v6 = vld [vmem:[#allocation5 + $0x94] ss:$24 sps:$4 sm:$0xff]   ;;  %v4545_v8 = vld [vmem:[#allocation5 + $0x90] ss:$24 sps:$4 sm:$0xff]   ;;  %v4547_v10 = vld [vmem:[#allocation5 + $0xc4] ss:$24 sps:$4 sm:$0xff]  }
 0x120   :  { %v4543_v7 = vld [vmem:[#allocation5 + $0x9c] ss:$24 sps:$4 sm:$0xff]   ;;  %v4546_v9 = vld [vmem:[#allocation5 + $0x98] ss:$24 sps:$4 sm:$0xff]   ;;  %v4549_v11 = vld [vmem:[#allocation5 + $0xcc] ss:$24 sps:$4 sm:$0xff]  }
 0x121   :  { %1796 = vmatpush1.bf16.msra.mxu0 %v4533_v0  ;;  %v4551_v12 = vld [vmem:[#allocation5 + $0xc0] ss:$24 sps:$4 sm:$0xff]   ;;  %v4553_v14 = vld [vmem:[#allocation5 + $0xf4] ss:$24 sps:$4 sm:$0xff]   ;;  %v4557_v16 = vld [vmem:[#allocation5 + $0xf0] ss:$24 sps:$4 sm:$0xff]  }
 0x122   :  { %1967 = vmatpush1.bf16.msra.mxu1 %v4534_v1  ;;  %1797 = vmatprep.subr.bf16.mxu0 %v4535_v2  ;;  %v4552_v13 = vld [vmem:[#allocation5 + $0xc8] ss:$24 sps:$4 sm:$0xff]   ;;  %v4555_v15 = vld [vmem:[#allocation5 + $0xfc] ss:$24 sps:$4 sm:$0xff]   ;;  %v4558_v17 = vld [vmem:[#allocation5 + $0xf8] ss:$24 sps:$4 sm:$0xff]  }
 0x123   :  { %1968 = vmatprep.subr.bf16.mxu1 %v4537_v3  ;;  %v4559_v18 = vld [vmem:[#allocation5 + $0x124] ss:$24 sps:$4 sm:$0xff]   ;;  %v4563_v20 = vld [vmem:[#allocation5 + $0x120] ss:$24 sps:$4 sm:$0xff]   ;;  %v4565_v22 = vld [vmem:[#allocation5 + $0x154] ss:$24 sps:$4 sm:$0xff]  }
 0x124   :  { %v4561_v19 = vld [vmem:[#allocation5 + $0x12c] ss:$24 sps:$4 sm:$0xff]   ;;  %v4564_v21 = vld [vmem:[#allocation5 + $0x128] ss:$24 sps:$4 sm:$0xff]   ;;  %v4567_v23 = vld [vmem:[#allocation5 + $0x15c] ss:$24 sps:$4 sm:$0xff]  }
 0x125   :  { %1798 = vmatpush1.bf16.msra.mxu0 %v4539_v4  ;;  %v4569_v24 = vld [vmem:[#allocation5 + $0x150] ss:$24 sps:$4 sm:$0xff]   ;;  %v4195_v28 = vld [vmem:[%s6363_s0 + $0x70] sm:$0xff]  ;;  %v4573_v30 = vld [vmem:[#allocation5 + $0x14] ss:$24 sps:$4 sm:$0xff]  }
 0x126   :  { %1969 = vmatpush1.bf16.msra.mxu1 %v4540_v5  ;;  %1799 = vmatprep.subr.bf16.mxu0 %v4541_v6  ;;  %v4570_v25 = vld [vmem:[#allocation5 + $0x158] ss:$24 sps:$4 sm:$0xff]   ;;  %v4188_v26 = vld [vmem:[%s6363_s0 + $0x38] sm:$0xff]  ;;  %v4576_v34 = vld [vmem:[#allocation5 + $0x44] ss:$24 sps:$4 sm:$0xff]  }
 0x127   :  { %1970 = vmatprep.subr.bf16.mxu1 %v4543_v7  ;;  %v4189_v27 = vld [vmem:[%s6363_s0 + $0x40] sm:$0xff]  ;;  %v4196_v29 = vld [vmem:[%s6363_s0 + $0x78] sm:$0xff]  ;;  %v4574_v35 = vld [vmem:[#allocation5 + $0x40] ss:$24 sps:$4 sm:$0xff]  }
 0x128   :  { %v1693_v31 = vpack.c.bf16 %v4189_v27, %v4188_v26  ;;  %v1864_v32 = vpack.c.bf16 %v4196_v29, %v4195_v28  ;;  %v4571_v33 = vld [vmem:[#allocation5 + $0x10] ss:$24 sps:$4 sm:$0xff]   ;;  %v4190_v36 = vld [vmem:[%s6363_s0 + $0x48] sm:$0xff]  ;;  %v4191_v37 = vld [vmem:[%s6363_s0 + $0x50] sm:$0xff] }
 0x129   :  { %1800 = vmatpush1.bf16.msra.mxu0 %v4545_v8  ;;  %v4197_v38 = vld [vmem:[%s6363_s0 + $0x80] sm:$0xff]  ;;  %v4198_v39 = vld [vmem:[%s6363_s0 + $0x88] sm:$0xff]  ;;  %v1694_v42 = vpack.c.bf16 %v4191_v37, %v4190_v36  ;;  %v4192_v46 = vld [vmem:[%s6363_s0 + $0x58] sm:$0xff] }
 0x12a   :  { %1971 = vmatpush1.bf16.msra.mxu1 %v4546_v9  ;;  %1801 = vmatprep.subr.bf16.mxu0 %v4547_v10  ;;  %v4579_v40 = vld [vmem:[#allocation5 + $0x74] ss:$24 sps:$4 sm:$0xff]   ;;  %v4577_v41 = vld [vmem:[#allocation5 + $0x70] ss:$24 sps:$4 sm:$0xff]   ;;  %v1865_v43 = vpack.c.bf16 %v4198_v39, %v4197_v38  ;;  %v4582_v44 = vld [vmem:[#allocation5 + $0xa4] ss:$24 sps:$4 sm:$0xff]  }
 0x12b   :  { %1972 = vmatprep.subr.bf16.mxu1 %v4549_v11  ;;  %v4580_v45 = vld [vmem:[#allocation5 + $0xa0] ss:$24 sps:$4 sm:$0xff]   ;;  %v4193_v47 = vld [vmem:[%s6363_s0 + $0x60] sm:$0xff]  ;;  %v4200_v49 = vld [vmem:[%s6363_s0 + $0x98] sm:$0xff] }
 0x12c   :  { %v4199_v48 = vld [vmem:[%s6363_s0 + $0x90] sm:$0xff]  ;;  %v4585_v50 = vld [vmem:[#allocation5 + $0xd4] ss:$24 sps:$4 sm:$0xff]   ;;  %v4583_v51 = vld [vmem:[#allocation5 + $0xd0] ss:$24 sps:$4 sm:$0xff]   ;;  %v1695_v52 = vpack.c.bf16 %v4193_v47, %v4192_v46 }
 0x12d   :  { %1802 = vmatpush1.bf16.msra.mxu0 %v4551_v12  ;;  %v1866_v53 = vpack.c.bf16 %v4200_v49, %v4199_v48  ;;  %v4588_v54 = vld [vmem:[#allocation5 + $0x104] ss:$24 sps:$4 sm:$0xff]   ;;  %v4586_v55 = vld [vmem:[#allocation5 + $0x100] ss:$24 sps:$4 sm:$0xff]   ;;  %v4201_v57 = vld [vmem:[%s6363_s0 + $0xa0] sm:$0x1] }
 0x12e   :  { %1973 = vmatpush1.bf16.msra.mxu1 %v4552_v13  ;;  %1803 = vmatprep.subr.bf16.mxu0 %v4553_v14  ;;  %v4194_v56 = vld [vmem:[%s6363_s0 + $0x68] sm:$0x1]  ;;  %v4591_v58 = vld [vmem:[#allocation5 + $0x134] ss:$24 sps:$4 sm:$0xff]   ;;  %v1867_v61 = vpack.c.bf16 %v4201_v57, %v4201_v57  ;;  %v4589_v62 = vld [vmem:[#allocation5 + $0x130] ss:$24 sps:$4 sm:$0xff]  }
 0x12f   :  { %1974 = vmatprep.subr.bf16.mxu1 %v4555_v15  ;;  %v1696_v60 = vpack.c.bf16 %v4194_v56, %v4194_v56  ;;  %v4594_v63 = vld [vmem:[#allocation5 + $0x164] ss:$24 sps:$4 sm:$0xff]   ;;  %v4592_v0 = vld [vmem:[#allocation5 + $0x160] ss:$24 sps:$4 sm:$0xff]   ;;  %v4204_v4 = vld [vmem:[%s6363_s0 + $0xb8] sm:$0xff] }
 0x130   :  { %v4202_v1 = vld [vmem:[%s6363_s0 + $0xa8] sm:$0xff]  ;;  %v4203_v2 = vld [vmem:[%s6363_s0 + $0xb0] sm:$0xff]  ;;  %v4205_v5 = vld [vmem:[%s6363_s0 + $0xc0] sm:$0xff] }
 0x131   :  { %1804 = vmatpush1.bf16.msra.mxu0 %v4557_v16  ;;  %v2077_v3 = vpack.c.bf16 %v4203_v2, %v4202_v1  ;;  %v2078_v6 = vpack.c.bf16 %v4205_v5, %v4204_v4  ;;  %v4206_v7 = vld [vmem:[%s6363_s0 + $0xc8] sm:$0xff]  ;;  %v4207_v8 = vld [vmem:[%s6363_s0 + $0xd0] sm:$0xff]  ;;  %v4208_v10 = vld [vmem:[%s6363_s0 + $0xd8] sm:$0x1] }
 0x132   :  { %1975 = vmatpush1.bf16.msra.mxu1 %v4558_v17  ;;  %1805 = vmatprep.subr.bf16.mxu0 %v4559_v18  ;;  %v2079_v9 = vpack.c.bf16 %v4207_v8, %v4206_v7  ;;  %v2080_v11 = vpack.c.bf16 %v4208_v10, %v4208_v10  ;;  %v4595_v12 = vld [vmem:[%s6365_s2 + $0x40] sm:$0xff]   ;;  %v4596_v13 = vld [vmem:[%s6365_s2 + $0x48] sm:$0xff]   ;;  %v4597_v14 = vld [vmem:[%s6365_s2 + $0x50] sm:$0xff]  }
 0x133   :  { %1976 = vmatprep.subr.bf16.mxu1 %v4561_v19  ;;  %v4598_v15 = vld [vmem:[%s6365_s2 + $0x58] sm:$0xff]   ;;  %v4599_v16 = vld [vmem:[%s6365_s2 + $0x60] sm:$0xff]   ;;  %v4600_v17 = vld [vmem:[%s6365_s2 + $0x68] sm:$0xff]  }
 0x134   :  { %v4601_v18 = vld [vmem:[%s6365_s2 + $0x70] sm:$0xff]   ;;  %v4602_v19 = vld [vmem:[%s6365_s2 + $0x78] sm:$0xff]  }
 0x135   :  { %1806 = vmatpush1.bf16.msra.mxu0 %v4563_v20  ;;  %v5973_v20 = vld [vmem:[%s6365_s2] sm:$0xff]  }
 0x136   :  { %1977 = vmatpush1.bf16.msra.mxu1 %v4564_v21  ;;  %1807 = vmatprep.subr.bf16.mxu0 %v4565_v22 }
 0x137   :  { %1978 = vmatprep.subr.bf16.mxu1 %v4567_v23 }
 0x139   :  { %1808 = vmatpush1.bf16.msra.mxu0 %v4569_v24 }
 0x13a   :  { %1979 = vmatpush1.bf16.msra.mxu1 %v4570_v25  ;;  %2177 = vmatprep.subr.bf16.mxu0 %v4573_v30 }
 0x13b   :  { %4369 = vmatprep.subr.bf16.mxu1 %v4595_v12 }
 0x13c   :  { %1826 = vmatmul.mubr.bf16.vlgmr.msra.gmra.mrb[0].mxu0 %v1693_v31 }
 0x13d   :  { %1997 = vmatmul.mubr.bf16.vlgmr.msra.gmra.mrb[0].mxu1 %v1864_v32  ;;  %2178 = vmatpush1.bf16.msra.mxu0 %v4571_v33 }
 0x13e   :  { %1835 = vmatprep.mubr.bf16.mxu0 %v4683_v59  ;;  %2179 = vmatprep.subr.bf16.mxu0 %v4576_v34 }
 0x13f   :  { %2006 = vmatprep.mubr.bf16.mxu1 %v4683_v59  ;;  %4370 = vmatpush3.bf16.msra.mxu1 %v4595_v12 }
 0x140   :  { %4371 = vmatprep.subr.bf16.mxu1 %v4596_v13 }
 0x141   :  { %2180 = vmatpush1.bf16.msra.mxu0 %v4574_v35 }
 0x142   :  { %2181 = vmatprep.subr.bf16.mxu0 %v4579_v40 }
 0x143   :  { %4372 = vmatpush3.bf16.msra.mxu1 %v4596_v13 }
 0x144   :  { %1836 = vmatmul.mubr.bf16.gmra.mrb[4].mxu0 %v1694_v42  ;;  %4373 = vmatprep.subr.bf16.mxu1 %v4597_v14 }
 0x145   :  { %2007 = vmatmul.mubr.bf16.gmra.mrb[4].mxu1 %v1865_v43  ;;  %2182 = vmatpush1.bf16.msra.mxu0 %v4577_v41 }
 0x146   :  { %1845 = vmatprep.mubr.bf16.mxu0 %v4683_v59  ;;  %2183 = vmatprep.subr.bf16.mxu0 %v4582_v44 }
 0x147   :  { %2016 = vmatprep.mubr.bf16.mxu1 %v4683_v59  ;;  %4374 = vmatpush3.bf16.msra.mxu1 %v4597_v14 }
 0x148   :  { %4375 = vmatprep.subr.bf16.mxu1 %v4598_v15 }
 0x149   :  { %2184 = vmatpush1.bf16.msra.mxu0 %v4580_v45 }
 0x14a   :  { %2185 = vmatprep.subr.bf16.mxu0 %v4585_v50 }
 0x14b   :  { %4376 = vmatpush3.bf16.msra.mxu1 %v4598_v15 }
 0x14c   :  { %1846 = vmatmul.mubr.bf16.gmra.mrb[8].mxu0 %v1695_v52  ;;  %4377 = vmatprep.subr.bf16.mxu1 %v4599_v16 }
 0x14d   :  { %2017 = vmatmul.mubr.bf16.gmra.mrb[8].mxu1 %v1866_v53  ;;  %2186 = vmatpush1.bf16.msra.mxu0 %v4583_v51 }
 0x14e   :  { %1855 = vmatprep.mubr.bf16.mxu0 %v4683_v59  ;;  %2187 = vmatprep.subr.bf16.mxu0 %v4588_v54 }
 0x14f   :  { %2026 = vmatprep.mubr.bf16.mxu1 %v4683_v59  ;;  %4378 = vmatpush3.bf16.msra.mxu1 %v4599_v16 }
 0x150   :  { %4379 = vmatprep.subr.bf16.mxu1 %v4600_v17 }
 0x151   :  { %2188 = vmatpush1.bf16.msra.mxu0 %v4586_v55 }
 0x152   :  { %2189 = vmatprep.subr.bf16.mxu0 %v4591_v58 }
 0x153   :  { %4380 = vmatpush3.bf16.msra.mxu1 %v4600_v17 }
 0x154   :  { %1856 = vmatmul.mubr.bf16.gmra.mrb[12].mxu0 %v1696_v60  ;;  %4381 = vmatprep.subr.bf16.mxu1 %v4601_v18 }
 0x155   :  { %2027 = vmatmul.mubr.bf16.gmra.mrb[12].mxu1 %v1867_v61  ;;  %2190 = vmatpush1.bf16.msra.mxu0 %v4589_v62 }
 0x156   :  { %2209 = vmatprep.mubr.bf16.mxu0 %v4683_v59  ;;  %2191 = vmatprep.subr.bf16.mxu0 %v4594_v63 }
 0x157   :  { %4382 = vmatpush3.bf16.msra.mxu1 %v4601_v18 }
 0x158   :  { %4383 = vmatprep.subr.bf16.mxu1 %v4602_v19 }
 0x159   :  { %2192 = vmatpush1.bf16.msra.mxu0 %v4592_v0 }
 0x15b   :  { %4384 = vmatpush3.bf16.msra.mxu1 %v4602_v19 }
 0x15c   :  { %2210 = vmatmul.mubr.bf16.vlgmr.msra.gmra.mrb[16].mxu0 %v2077_v3  ;;  %4393 = vmatprep.subr.bf16.mxu1 %v5973_v20 }
 0x15d   :  { %2219 = vmatprep.mubr.bf16.mxu0 %v4683_v59 }
 0x164   :  { %2220 = vmatmul.mubr.bf16.gmra.mrb[20].mxu0 %v2078_v6 }
 0x165   :  { %2229 = vmatprep.mubr.bf16.mxu0 %v4683_v59 }
 0x16c   :  { %2230 = vmatmul.mubr.bf16.gmra.mrb[24].mxu0 %v2079_v9 }
 0x16d   :  { %2239 = vmatprep.mubr.bf16.mxu0 %v4683_v59 }
 0x174   :  { %2240 = vmatmul.mubr.bf16.gmra.mrb[28].mxu0 %v2080_v11 }
 0x20f   :  { %v1827_v21 = vpop.f32.mrb[0].mxu0 }
 0x210   :  { %v1998_v22 = vpop.f32.mrb[0].mxu1  ;;  %v1829_v24 = vpop.f32.mrb[1].mxu0 }
 0x211   :  { %v2035_v23 = vmul.f32 %v1998_v22, %v1827_v21  ;;  %v2000_v25 = vpop.f32.mrb[1].mxu1  ;;  %v2063_v26 = vmul.f32 %v1998_v22, %v1829_v24  ;;  %v1831_v29 = vpop.f32.mrb[2].mxu0 }
 0x212   :  { %v2042_v27 = vmul.f32 %v2000_v25, %v1829_v24  ;;  %v2056_v28 = vmul.f32 %v2000_v25, %v1827_v21  ;;  %v2002_v30 = vpop.f32.mrb[2].mxu1  ;;  %v1833_v32 = vpop.f32.mrb[3].mxu0 }
 0x213   :  { %v2036_v31 = vmul.f32 %v2002_v30, %v1831_v29  ;;  %v2004_v33 = vpop.f32.mrb[3].mxu1  ;;  %v2064_v34 = vmul.f32 %v2002_v30, %v1833_v32 }
 0x214   :  { %v2043_v35 = vmul.f32 %v2004_v33, %v1833_v32  ;;  %v2057_v36 = vmul.f32 %v2004_v33, %v1831_v29  ;;  %v5976_v37 = vsub.f32 %v2035_v23, %v2042_v27  ;;  %v2070_v38 = vadd.f32 %v2063_v26, %v2056_v28 }
 0x216   :  { %v5978_v39 = vsub.f32 %v2036_v31, %v2043_v35  ;;  %v5980_v40 = vadd.f32 %v2064_v34, %v2057_v36 }
 0x217   :  { %v1837_v41 = vpop.f32.mrb[4].mxu0 }
 0x218   :  { %v2008_v42 = vpop.f32.mrb[4].mxu1  ;;  %v1839_v44 = vpop.f32.mrb[5].mxu0 }
 0x219   :  { %v2037_v43 = vmul.f32 %v2008_v42, %v1837_v41  ;;  %v2010_v45 = vpop.f32.mrb[5].mxu1  ;;  %v2065_v46 = vmul.f32 %v2008_v42, %v1839_v44  ;;  %v1841_v49 = vpop.f32.mrb[6].mxu0 }
 0x21a   :  { %v2044_v47 = vmul.f32 %v2010_v45, %v1839_v44  ;;  %v2058_v48 = vmul.f32 %v2010_v45, %v1837_v41  ;;  %v2012_v50 = vpop.f32.mrb[6].mxu1  ;;  %v1843_v52 = vpop.f32.mrb[7].mxu0 }
 0x21b   :  { %v2038_v51 = vmul.f32 %v2012_v50, %v1841_v49  ;;  %v2014_v53 = vpop.f32.mrb[7].mxu1  ;;  %v2066_v54 = vmul.f32 %v2012_v50, %v1843_v52 }
 0x21c   :  { %v2045_v55 = vmul.f32 %v2014_v53, %v1843_v52  ;;  %v2059_v56 = vmul.f32 %v2014_v53, %v1841_v49  ;;  %v2051_v57 = vsub.f32 %v2037_v43, %v2044_v47  ;;  %v2072_v58 = vadd.f32 %v2065_v46, %v2058_v48 }
 0x21e   :  { %v5982_v60 = vsub.f32 %v2038_v51, %v2045_v55  ;;  %v5984_v61 = vadd.f32 %v2066_v54, %v2059_v56 }
 0x21f   :  { %v1847_v62 = vpop.f32.mrb[8].mxu0 }
 0x220   :  { %v2018_v63 = vpop.f32.mrb[8].mxu1  ;;  %v1849_v1 = vpop.f32.mrb[9].mxu0 }
 0x221   :  { %v2039_v0 = vmul.f32 %v2018_v63, %v1847_v62  ;;  %v2020_v2 = vpop.f32.mrb[9].mxu1  ;;  %v2067_v3 = vmul.f32 %v2018_v63, %v1849_v1  ;;  %v1851_v6 = vpop.f32.mrb[10].mxu0 }
 0x222   :  { %v2046_v4 = vmul.f32 %v2020_v2, %v1849_v1  ;;  %v2060_v5 = vmul.f32 %v2020_v2, %v1847_v62  ;;  %v2022_v7 = vpop.f32.mrb[10].mxu1  ;;  %v1853_v9 = vpop.f32.mrb[11].mxu0 }
 0x223   :  { %v2040_v8 = vmul.f32 %v2022_v7, %v1851_v6  ;;  %v2024_v10 = vpop.f32.mrb[11].mxu1  ;;  %v2068_v11 = vmul.f32 %v2022_v7, %v1853_v9 }
 0x224   :  { %v2047_v12 = vmul.f32 %v2024_v10, %v1853_v9  ;;  %v2061_v13 = vmul.f32 %v2024_v10, %v1851_v6  ;;  %v2053_v14 = vsub.f32 %v2039_v0, %v2046_v4  ;;  %v2074_v15 = vadd.f32 %v2067_v3, %v2060_v5 }
 0x226   :  { %v5986_v16 = vsub.f32 %v2040_v8, %v2047_v12  ;;  %v5988_v17 = vadd.f32 %v2068_v11, %v2061_v13 }
 0x227   :  { %v1857_v18 = vpop.f32.mrb[12].mxu0 }
 0x228   :  { %v2028_v19 = vpop.f32.mrb[12].mxu1  ;;  %v1859_v22 = vpop.f32.mrb[13].mxu0 }
 0x229   :  { %v2041_v21 = vmul.f32 %v2028_v19, %v1857_v18  ;;  %v2030_v23 = vpop.f32.mrb[13].mxu1  ;;  %v2069_v24 = vmul.f32 %v2028_v19, %v1859_v22  ;;  %v1861_v27 = vpop.f32.mrb[14].mxu0 }
 0x22a   :  { %v2048_v25 = vmul.f32 %v2030_v23, %v1859_v22  ;;  %v2062_v26 = vmul.f32 %v2030_v23, %v1857_v18  ;;  %v2032_v28 = vpop.f32.mrb[14].mxu1  ;;  %v1862_v29 = vpop.f32.mrb[15].mxu0 }
 0x22b   :  { %v2033_v30 = vpop.f32.mrb[15].mxu1 }
 0x22c   :  { %v5990_v31 = vsub.f32 %v2041_v21, %v2048_v25  ;;  %v5992_v32 = vadd.f32 %v2069_v24, %v2062_v26 }
 0x22f   :  { %v2211_v33 = vpop.f32.mrb[16].mxu0 }
 0x230   :  { %v2248_v34 = vmul.f32 %v2211_v33, %v5976_v37  ;;  %v2276_v35 = vmul.f32 %v2211_v33, %v2070_v38  ;;  %v2213_v36 = vpop.f32.mrb[17].mxu0 }
 0x231   :  { %v2255_v41 = vmul.f32 %v2213_v36, %v2070_v38  ;;  %v2269_v42 = vmul.f32 %v2213_v36, %v5976_v37  ;;  %v2215_v43 = vpop.f32.mrb[18].mxu0 }
 0x232   :  { %v2249_v44 = vmul.f32 %v2215_v43, %v5978_v39  ;;  %v2277_v45 = vmul.f32 %v2215_v43, %v5980_v40  ;;  %v2217_v46 = vpop.f32.mrb[19].mxu0  ;;  %v4607_v43 = vld [vmem:[%s6365_s2 + $0x20] sm:$0xff]  }
 0x233   :  { %v2262_v47 = vsub.f32 %v2248_v34, %v2255_v41  ;;  %v2283_v48 = vadd.f32 %v2276_v35, %v2269_v42  ;;  %v2256_v49 = vmul.f32 %v2217_v46, %v5980_v40  ;;  %v2270_v50 = vmul.f32 %v2217_v46, %v5978_v39 }
 0x235   :  { %v2263_v51 = vsub.f32 %v2249_v44, %v2256_v49  ;;  %v2284_v52 = vadd.f32 %v2277_v45, %v2270_v50  ;;  %v4610_v45 = vld [vmem:[%s6365_s2 + $0x38] sm:$0xff]   ;;  %v1664_v49 = vld [vmem:[%s6363_s0 + $0x10] sm:$0xff] }
 0x237   :  { %v2221_v53 = vpop.f32.mrb[20].mxu0  ;;  %v2310_v54 = vpack.c.bf16 %v2284_v52, %v2283_v48  ;;  %v6000_v55 = vpack.c.bf16 %v2263_v51, %v2262_v47  ;;  %v1662_v47 = vld [vmem:[%s6363_s0] sm:$0xff]  ;;  %v1663_v48 = vld [vmem:[%s6363_s0 + $0x8] sm:$0xff]  ;;  %v1665_v51 = vld [vmem:[%s6363_s0 + $0x18] sm:$0xff] }
 0x238   :  { %v2250_v38 = vmul.f32 %v2221_v53, %v2051_v57  ;;  %v2278_v37 = vmul.f32 %v2221_v53, %v2072_v58  ;;  %v2223_v56 = vpop.f32.mrb[21].mxu0  ;;  %v2554_v50 = vadd.f32 %v1663_v48, %v1662_v47  ;;  %v1666_v53 = vld [vmem:[%s6363_s0 + $0x20] sm:$0xff] }
 0x239   :  { %v2257_v62 = vmul.f32 %v2223_v56, %v2072_v58  ;;  %v2271_v63 = vmul.f32 %v2223_v56, %v2051_v57  ;;  %v2225_v0 = vpop.f32.mrb[22].mxu0  ;;  %4385 = vmatprep.mubr.bf16.mxu1 %v2310_v54  ;;  %v4604_v57 = vld [vmem:[%s6365_s2 + $0x8] sm:$0xff]   ;;  %v1668_v54 = vld [vmem:[%s6363_s0 + $0x30] sm:$0x1] }
 0x23a   :  { %v2251_v1 = vmul.f32 %v2225_v0, %v5982_v60  ;;  %v2279_v2 = vmul.f32 %v2225_v0, %v5984_v61  ;;  %v2227_v40 = vpop.f32.mrb[23].mxu0  ;;  %v2555_v52 = vadd.f32 %v2554_v50, %v1664_v49  ;;  %v2560_v56 = vsel %vm2559_vm0, %v1668_v54, 0.0 }
 0x23b   :  { %v2264_v3 = vsub.f32 %v2250_v38, %v2257_v62  ;;  %v2285_v39 = vadd.f32 %v2278_v37, %v2271_v63  ;;  %v2258_v4 = vmul.f32 %v2227_v40, %v5984_v61  ;;  %v2272_v5 = vmul.f32 %v2227_v40, %v5982_v60  ;;  %v1667_v38 = vld [vmem:[%s6363_s0 + $0x28] sm:$0xff] }
 0x23d   :  { %v2265_v6 = vsub.f32 %v2251_v1, %v2258_v4  ;;  %v2286_v7 = vadd.f32 %v2279_v2, %v2272_v5 }
 0x23f   :  { %v2291_v8 = vpack.c.bf16 %v2265_v6, %v2264_v3  ;;  %v2311_v9 = vpack.c.bf16 %v2286_v7, %v2285_v39  ;;  %v2231_v10 = vpop.f32.mrb[24].mxu0 }
 0x240   :  { %v2252_v58 = vmul.f32 %v2231_v10, %v2053_v14  ;;  %v2280_v11 = vmul.f32 %v2231_v10, %v2074_v15  ;;  %v2233_v12 = vpop.f32.mrb[25].mxu0 }
 0x241   :  { %v2259_v13 = vmul.f32 %v2233_v12, %v2074_v15  ;;  %v2273_v18 = vmul.f32 %v2233_v12, %v2053_v14  ;;  %v2235_v19 = vpop.f32.mrb[26].mxu0  ;;  %4386 = vmatmul.mubr.bf16.vlgmr.msra.gmra.mrb[16].mxu1 %v2311_v9  ;;  %v4605_v14 = vld [vmem:[%s6365_s2 + $0x10] sm:$0xff]  }
 0x242   :  { %v2253_v61 = vmul.f32 %v2235_v19, %v5986_v16  ;;  %v2281_v60 = vmul.f32 %v2235_v19, %v5988_v17  ;;  %4394 = vmatpush3.bf16.msra.mxu1 %v5973_v20  ;;  %v2237_v21 = vpop.f32.mrb[27].mxu0  ;;  %v4606_v20 = vld [vmem:[%s6365_s2 + $0x18] sm:$0xff]  }
 0x243   :  { %v2266_v22 = vsub.f32 %v2252_v58, %v2259_v13  ;;  %v2287_v23 = vadd.f32 %v2280_v11, %v2273_v18  ;;  %v2260_v24 = vmul.f32 %v2237_v21, %v5988_v17  ;;  %v2274_v25 = vmul.f32 %v2237_v21, %v5986_v16  ;;  %4395 = vmatprep.subr.bf16.mxu1 %v4604_v57 }
 0x245   :  { %v2267_v15 = vsub.f32 %v2253_v61, %v2260_v24  ;;  %v2288_v26 = vadd.f32 %v2281_v60, %v2274_v25 }
 0x246   :  { %4396 = vmatpush3.bf16.msra.mxu1 %v4604_v57 }
 0x247   :  { %v2241_v27 = vpop.f32.mrb[28].mxu0  ;;  %4397 = vmatprep.subr.bf16.mxu1 %v4605_v14  ;;  %v2312_v28 = vpack.c.bf16 %v2288_v26, %v2287_v23  ;;  %v2292_v29 = vpack.c.bf16 %v2267_v15, %v2266_v22 }
 0x248   :  { %v2254_v17 = vmul.f32 %v2241_v27, %v5990_v31  ;;  %v2282_v16 = vmul.f32 %v2241_v27, %v5992_v32  ;;  %v2243_v30 = vpop.f32.mrb[29].mxu0 }
 0x249   :  { %v2261_v33 = vmul.f32 %v2243_v30, %v5992_v32  ;;  %v2275_v34 = vmul.f32 %v2243_v30, %v5990_v31  ;;  %4389 = vmatprep.mubr.bf16.mxu1 %v2312_v28  ;;  %v2245_v35 = vpop.f32.mrb[30].mxu0  ;;  %v4608_v32 = vld [vmem:[%s6365_s2 + $0x28] sm:$0xff]   ;;  %v4609_v31 = vld [vmem:[%s6365_s2 + $0x30] sm:$0xff]  }
 0x24a   :  { %4398 = vmatpush3.bf16.msra.mxu1 %v4605_v14  ;;  %v2246_v36 = vpop.f32.mrb[31].mxu0 }
 0x24b   :  { %v2268_v41 = vsub.f32 %v2254_v17, %v2261_v33  ;;  %v2289_v42 = vadd.f32 %v2282_v16, %v2275_v34  ;;  %4399 = vmatprep.subr.bf16.mxu1 %v4606_v20 }
 0x24d   :  { %v2313_v44 = vpack.c.bf16 %v2289_v42, %v2289_v42  ;;  %v2293_v46 = vpack.c.bf16 %v2268_v41, %v2268_v41 }
 0x24e   :  { %4400 = vmatpush3.bf16.msra.mxu1 %v4606_v20 }
 0x24f   :  { %4390 = vmatmul.mubr.bf16.gmra.mrb[20].mxu1 %v2313_v44  ;;  %4401 = vmatprep.subr.bf16.mxu1 %v4607_v43 }
 0x250   :  { %4409 = vmatprep.mubr.bf16.mxu1 %v6000_v55  ;;  %v2556_v55 = vadd.f32 %v2555_v52, %v1665_v51 }
 0x252   :  { %4402 = vmatpush3.bf16.msra.mxu1 %v4607_v43  ;;  %v2557_v37 = vadd.f32 %v2556_v55, %v1666_v53 }
 0x253   :  { %4403 = vmatprep.subr.bf16.mxu1 %v4608_v32 }
 0x254   :  { %v2558_v62 = vadd.f32 %v2557_v37, %v1667_v38 }
 0x256   :  { %4404 = vmatpush3.bf16.msra.mxu1 %v4608_v32  ;;  %v2561_v63 = vadd.f32 %v2560_v56, %v2558_v62 }
 0x257   :  { %4405 = vmatprep.subr.bf16.mxu1 %v4609_v31 }
 0x258   :  { %v2562_v0 = vrot.slane %v2561_v63, 4 }
 0x25a   :  { %4406 = vmatpush3.bf16.msra.mxu1 %v4609_v31  ;;  %v2563_v1 = vadd.f32 %v2562_v0, %v2561_v63 }
 0x25b   :  { %4407 = vmatprep.subr.bf16.mxu1 %v4610_v45 }
 0x25c   :  { %v2564_v2 = vrot.slane %v2563_v1, 2 }
 0x25e   :  { %4408 = vmatpush3.bf16.msra.mxu1 %v4610_v45  ;;  %v2565_v40 = vadd.f32 %v2564_v2, %v2563_v1 }
 0x260   :  { %v2566_v3 = vrot.slane %v2565_v40, 1 }
 0x261   :  { %4410 = vmatmul.mubr.bf16.vlgmr.msra.gmra.mrb[16].mxu1 %v2291_v8 }
 0x262   :  { %4413 = vmatprep.mubr.bf16.mxu1 %v2292_v29  ;;  %v2567_v39 = vadd.f32 %v2566_v3, %v2565_v40 }
 0x264   :  { %v6059_v4 = vmul.f32 0.020408163, %v2567_v39 }
 0x269   :  { %4414 = vmatmul.mubr.bf16.gmra.mrb[24].mxu1 %v2293_v46 }
 0x322   :  { %v4391_v5 = vpop.f32.mrb[20].mxu1 }
 0x323   :  { %v2428_v6 = vpop.f32.mrb[21].mxu1 }
 0x324   :  { %v4392_v7 = vpop.f32.mrb[22].mxu1 }
 0x325   :  { %v2431_v8 = vpop.f32.mrb[23].mxu1 }
 0x334   :  { %v4411_v9 = vpop.f32.mrb[16].mxu1 }
 0x335   :  { %v2524_v10 = vpop.f32.mrb[17].mxu1 }
 0x336   :  { %v4412_v57 = vpop.f32.mrb[18].mxu1 }
 0x337   :  { %v2527_v58 = vpop.f32.mrb[19].mxu1 }
 0x338   :  { %v2569_v11 = vadd.f32 %v2527_v58, %v2524_v10 }
 0x33a   :  { %v2570_v12 = vadd.f32 %v4411_v9, %v2569_v11 }
 0x33c   :  { %v4415_v13 = vpop.f32.mrb[24].mxu1  ;;  %v2571_v18 = vadd.f32 %v4412_v57, %v2570_v12 }
 0x33d   :  { %v2549_v19 = vadd.f32 %v4415_v13, %v4391_v5  ;;  %v2540_v61 = vpop.f32.mrb[25].mxu1 }
 0x33e   :  { %v2541_v60 = vadd.f32 %v2540_v61, %v2428_v6  ;;  %v4416_v21 = vpop.f32.mrb[26].mxu1 }
 0x33f   :  { %v2543_v22 = vpop.f32.mrb[27].mxu1  ;;  %v2574_v14 = vsel %vm2559_vm0, %v2549_v19, 0.0 }
 0x340   :  { %v2572_v23 = vadd.f32 %v2571_v18, %v2541_v60  ;;  %v2544_v24 = vadd.f32 %v2543_v22, %v2431_v8 }
 0x342   :  { %v2573_v25 = vadd.f32 %v2572_v23, %v2544_v24 }
 0x344   :  { %v2575_v15 = vadd.f32 %v2574_v14, %v2573_v25 }
 0x346   :  { %v2576_v26 = vrot.slane %v2575_v15, 4 }
 0x348   :  { %v2577_v27 = vadd.f32 %v2576_v26, %v2575_v15 }
 0x34a   :  { %v2578_v28 = vrot.slane %v2577_v27, 2 }
 0x34c   :  { %v2579_v20 = vadd.f32 %v2578_v28, %v2577_v27 }
 0x34e   :  { %v2580_v29 = vrot.slane %v2579_v20, 1 }
 0x350   :  { %v2581_v17 = vadd.f32 %v2580_v29, %v2579_v20 }
 0x352   :  { %v6062_v16 = vmul.f32 0.020408163, %v2581_v17 }
 0x353   :  { %4665 = dma.done.wait [#allocation4], 24576 }
 0x354   :  { %4666 = vsyncadd [#allocation4], 4294942720 }
 0x355   :  { %4667 = dma.done.wait [#allocation4 + $0x1], 32768 }
 0x356   :  { %4668 = vsyncadd [#allocation4 + $0x1], 4294934528  ;;  %2692 = vmatprep.mubr.bf16.mxu0 %v4683_v59  ;;  %2774 = vmatprep.mubr.bf16.mxu1 %v4683_v59  ;;  %v2597_v30 = vld [vmem:[#allocation2 + $0x8] sm:$0xff]  ;;  %v2596_v34 = vld [vmem:[#allocation2] sm:$0xff]  ;;  %v6068_v6 = vpack.c.bf16 %v6059_v4, %v6059_v4  ;;  %s4684_s14 = smov [#allocation8]   ;;  %vm4142_vm5 = vcmask 8192  }
 0x357   :  { %v2601_v33 = vld [vmem:[#allocation2 + $0x28] sm:$0xff]  ;;  %2660 = vmatprep.subr.bf16.mxu0 %v2597_v30  ;;  %v2600_v35 = vld [vmem:[#allocation2 + $0x20] sm:$0xff]  ;;  %v2599_v39 = vld [vmem:[#allocation2 + $0x18] sm:$0xff]  ;;  %s4150_s4 = sshll.u32 %s4684_s14, 4  ;;  %s4151_s4 = int_to_ptr.vmem [resolvable:$true] %s4150_s4 }
 0x358   :  { %2742 = vmatprep.subr.bf16.mxu1 %v2601_v33  ;;  %v2605_v36 = vld [vmem:[#allocation2 + $0xc8] sm:$0xff]  ;;  %2661 = vmatpush1.bf16.msra.mxu0 %v2596_v34  ;;  %v2604_v42 = vld [vmem:[#allocation2 + $0xc0] sm:$0xff]  ;;  %v2598_v7 = vld [vmem:[#allocation2 + $0x10] sm:$0xff]  ;;  %s4641_s15 = scalar_lea.vmem %s4151_s4, 16  ;;  %s4645_s2 = scalar_lea.vmem %s4151_s4, 32 }
 0x359   :  { %v2609_v41 = vld [vmem:[#allocation2 + $0xe8] sm:$0xff]  ;;  %2743 = vmatpush1.bf16.msra.mxu1 %v2600_v35  ;;  %2662 = vmatprep.subr.bf16.mxu0 %v2605_v36  ;;  %v2608_v43 = vld [vmem:[#allocation2 + $0xe0] sm:$0xff]  ;;  %v2607_v9 = vld [vmem:[#allocation2 + $0xd8] sm:$0xff]  ;;  %p4642_p8 = scmp.ne.s32.totalorder %s4151_s4, %s4641_s15  ;;  %p4646_p9 = scmp.lt.s32.totalorder %s4151_s4, %s4151_s4 }
 0x35a   :  { %2744 = vmatprep.subr.bf16.mxu1 %v2609_v41  ;;  %v2613_v44 = vld [vmem:[#allocation2 + $0x188] sm:$0xff]  ;;  %v2612_v31 = vld [vmem:[#allocation2 + $0x180] sm:$0xff]  ;;  %v2606_v57 = vld [vmem:[#allocation2 + $0xd0] sm:$0xff]  ;;  %v6076_v41 = vpack.c.bf16 %v6062_v16, %v6062_v16  ;;  %p4647_p10 = scmp.lt.s32.totalorder %s4645_s2, %s4641_s15 }
 0x35b   :  { %v2617_v32 = vld [vmem:[#allocation2 + $0x1a8] sm:$0xff]  ;;  %v2616_v45 = vld [vmem:[#allocation2 + $0x1a0] sm:$0xff]  ;;  %v2615_v4 = vld [vmem:[#allocation2 + $0x198] sm:$0xff] }
 0x35c   :  { %2663 = vmatpush1.bf16.msra.mxu0 %v2604_v42  ;;  %v2621_v46 = vld [vmem:[#allocation2 + $0x248] sm:$0xff]  ;;  %v2620_v48 = vld [vmem:[#allocation2 + $0x240] sm:$0xff]  ;;  %v2614_v12 = vld [vmem:[#allocation2 + $0x190] sm:$0xff]  ;;  %p4648_p11 = por %p4647_p10, %p4646_p9 }
 0x35d   :  { %2745 = vmatpush1.bf16.msra.mxu1 %v2608_v43  ;;  %2664 = vmatprep.subr.bf16.mxu0 %v2613_v44  ;;  %v2625_v47 = vld [vmem:[#allocation2 + $0x268] sm:$0xff]  ;;  %v2624_v49 = vld [vmem:[#allocation2 + $0x260] sm:$0xff]  ;;  %v2623_v18 = vld [vmem:[#allocation2 + $0x258] sm:$0xff] }
 0x35e   :  { %2746 = vmatprep.subr.bf16.mxu1 %v2617_v32  ;;  %v2629_v50 = vld [vmem:[#allocation2 + $0x308] sm:$0xff]  ;;  %v2628_v52 = vld [vmem:[#allocation2 + $0x300] sm:$0xff]  ;;  %v2622_v61 = vld [vmem:[#allocation2 + $0x250] sm:$0xff]  ;;  %p4649_p12 = pnand %p4648_p11, %p4642_p8 }
 0x35f   :  { %v2633_v51 = vld [vmem:[#allocation2 + $0x328] sm:$0xff]  ;;  %v2632_v53 = vld [vmem:[#allocation2 + $0x320] sm:$0xff]  ;;  %v2631_v21 = vld [vmem:[#allocation2 + $0x318] sm:$0xff] }
 0x360   :  { %2665 = vmatpush1.bf16.msra.mxu0 %v2612_v31  ;;  %v2637_v54 = vld [vmem:[#allocation2 + $0x3c8] sm:$0xff]  ;;  %v2636_v38 = vld [vmem:[#allocation2 + $0x3c0] sm:$0xff]  ;;  %v2630_v23 = vld [vmem:[#allocation2 + $0x310] sm:$0xff] }
 0x361   :  { %2747 = vmatpush1.bf16.msra.mxu1 %v2616_v45  ;;  %2666 = vmatprep.subr.bf16.mxu0 %v2621_v46  ;;  %v2641_v55 = vld [vmem:[#allocation2 + $0x3e8] sm:$0xff]  ;;  %v2640_v37 = vld [vmem:[#allocation2 + $0x3e0] sm:$0xff]  ;;  %v2639_v25 = vld [vmem:[#allocation2 + $0x3d8] sm:$0xff] }
 0x362   :  { %2748 = vmatprep.subr.bf16.mxu1 %v2625_v47  ;;  %v2645_v56 = vld [vmem:[#allocation2 + $0x488] sm:$0xff]  ;;  %v2644_v63 = vld [vmem:[#allocation2 + $0x480] sm:$0xff]  ;;  %v2638_v15 = vld [vmem:[#allocation2 + $0x3d0] sm:$0xff] }
 0x363   :  { %v2649_v62 = vld [vmem:[#allocation2 + $0x4a8] sm:$0xff]  ;;  %v2648_v0 = vld [vmem:[#allocation2 + $0x4a0] sm:$0xff]  ;;  %v2647_v27 = vld [vmem:[#allocation2 + $0x498] sm:$0xff] }
 0x364   :  { %2667 = vmatpush1.bf16.msra.mxu0 %v2620_v48  ;;  %v2653_v1 = vld [vmem:[#allocation2 + $0x548] sm:$0xff]  ;;  %v2652_v40 = vld [vmem:[#allocation2 + $0x540] sm:$0xff]  ;;  %v2646_v20 = vld [vmem:[#allocation2 + $0x490] sm:$0xff] }
 0x365   :  { %2749 = vmatpush1.bf16.msra.mxu1 %v2624_v49  ;;  %2668 = vmatprep.subr.bf16.mxu0 %v2629_v50  ;;  %v2657_v2 = vld [vmem:[#allocation2 + $0x568] sm:$0xff]  ;;  %v2656_v3 = vld [vmem:[#allocation2 + $0x560] sm:$0xff]  ;;  %v2655_v17 = vld [vmem:[#allocation2 + $0x558] sm:$0xff] }
 0x366   :  { %2750 = vmatprep.subr.bf16.mxu1 %v2633_v51  ;;  %v2826_v5 = vld [vmem:[#allocation2 + $0x48] sm:$0xff]  ;;  %v2825_v8 = vld [vmem:[#allocation2 + $0x40] sm:$0xff]  ;;  %v2654_v33 = vld [vmem:[#allocation2 + $0x550] sm:$0xff] }
 0x367   :  { %v2834_v10 = vld [vmem:[#allocation2 + $0x108] sm:$0xff]  ;;  %v2833_v58 = vld [vmem:[#allocation2 + $0x100] sm:$0xff]  ;;  %v2603_v35 = vld [vmem:[#allocation2 + $0x38] sm:$0xff] }
 0x368   :  { %2669 = vmatpush1.bf16.msra.mxu0 %v2628_v52  ;;  %v2842_v11 = vld [vmem:[#allocation2 + $0x1c8] sm:$0xff]  ;;  %v2841_v13 = vld [vmem:[#allocation2 + $0x1c0] sm:$0xff]  ;;  %v2602_v42 = vld [vmem:[#allocation2 + $0x30] sm:$0xff] }
 0x369   :  { %2751 = vmatpush1.bf16.msra.mxu1 %v2632_v53  ;;  %2670 = vmatprep.subr.bf16.mxu0 %v2637_v54  ;;  %v2850_v19 = vld [vmem:[#allocation2 + $0x288] sm:$0xff]  ;;  %v2849_v60 = vld [vmem:[#allocation2 + $0x280] sm:$0xff]  ;;  %v2611_v44 = vld [vmem:[#allocation2 + $0xf8] sm:$0xff] }
 0x36a   :  { %2752 = vmatprep.subr.bf16.mxu1 %v2641_v55  ;;  %v2858_v22 = vld [vmem:[#allocation2 + $0x348] sm:$0xff]  ;;  %v2857_v24 = vld [vmem:[#allocation2 + $0x340] sm:$0xff]  ;;  %v2610_v31 = vld [vmem:[#allocation2 + $0xf0] sm:$0xff] }
 0x36b   :  { %v2866_v14 = vld [vmem:[#allocation2 + $0x408] sm:$0xff]  ;;  %v2865_v26 = vld [vmem:[#allocation2 + $0x400] sm:$0xff]  ;;  %v2619_v16 = vld [vmem:[#allocation2 + $0x1b8] sm:$0xff] }
 0x36c   :  { %2671 = vmatpush1.bf16.msra.mxu0 %v2636_v38  ;;  %v2874_v28 = vld [vmem:[#allocation2 + $0x4c8] sm:$0xff]  ;;  %v2873_v29 = vld [vmem:[#allocation2 + $0x4c0] sm:$0xff]  ;;  %v2618_v47 = vld [vmem:[#allocation2 + $0x1b0] sm:$0xff] }
 0x36d   :  { %2753 = vmatpush1.bf16.msra.mxu1 %v2640_v37  ;;  %2672 = vmatprep.subr.bf16.mxu0 %v2645_v56  ;;  %v2882_v30 = vld [vmem:[#allocation2 + $0x588] sm:$0xff]  ;;  %v2881_v34 = vld [vmem:[#allocation2 + $0x580] sm:$0xff]  ;;  %v2627_v49 = vld [vmem:[#allocation2 + $0x278] sm:$0xff] }
 0x36e   :  { %2754 = vmatprep.subr.bf16.mxu1 %v2649_v62  ;;  %v2830_v36 = vld [vmem:[#allocation2 + $0x68] sm:$0xff]  ;;  %v2829_v43 = vld [vmem:[#allocation2 + $0x60] sm:$0xff]  ;;  %v2626_v51 = vld [vmem:[#allocation2 + $0x270] sm:$0xff] }
 0x36f   :  { %v2838_v32 = vld [vmem:[#allocation2 + $0x128] sm:$0xff]  ;;  %v2837_v45 = vld [vmem:[#allocation2 + $0x120] sm:$0xff]  ;;  %v2635_v53 = vld [vmem:[#allocation2 + $0x338] sm:$0xff] }
 0x370   :  { %2673 = vmatpush1.bf16.msra.mxu0 %v2644_v63  ;;  %v2846_v46 = vld [vmem:[#allocation2 + $0x1e8] sm:$0xff]  ;;  %v2845_v48 = vld [vmem:[#allocation2 + $0x1e0] sm:$0xff]  ;;  %v2634_v55 = vld [vmem:[#allocation2 + $0x330] sm:$0xff] }
 0x371   :  { %2755 = vmatpush1.bf16.msra.mxu1 %v2648_v0  ;;  %2674 = vmatprep.subr.bf16.mxu0 %v2653_v1  ;;  %v2854_v50 = vld [vmem:[#allocation2 + $0x2a8] sm:$0xff]  ;;  %v2853_v52 = vld [vmem:[#allocation2 + $0x2a0] sm:$0xff]  ;;  %v2643_v37 = vld [vmem:[#allocation2 + $0x3f8] sm:$0xff] }
 0x372   :  { %2756 = vmatprep.subr.bf16.mxu1 %v2657_v2  ;;  %v2862_v54 = vld [vmem:[#allocation2 + $0x368] sm:$0xff]  ;;  %v2861_v38 = vld [vmem:[#allocation2 + $0x360] sm:$0xff]  ;;  %v2642_v62 = vld [vmem:[#allocation2 + $0x3f0] sm:$0xff] }
 0x373   :  { %v2870_v56 = vld [vmem:[#allocation2 + $0x428] sm:$0xff]  ;;  %v2869_v63 = vld [vmem:[#allocation2 + $0x420] sm:$0xff]  ;;  %v2651_v0 = vld [vmem:[#allocation2 + $0x4b8] sm:$0xff] }
 0x374   :  { %2675 = vmatpush1.bf16.msra.mxu0 %v2652_v40  ;;  %v2878_v1 = vld [vmem:[#allocation2 + $0x4e8] sm:$0xff]  ;;  %v2650_v2 = vld [vmem:[#allocation2 + $0x4b0] sm:$0xff]  ;;  %v2877_v40 = vld [vmem:[#allocation2 + $0x4e0] sm:$0xff] }
 0x375   :  { %2757 = vmatpush1.bf16.msra.mxu1 %v2656_v3  ;;  %2701 = vmatprep.subr.bf16.mxu0 %v2599_v39  ;;  %v2659_v3 = vld [vmem:[#allocation2 + $0x578] sm:$0xff]  ;;  %v2886_v39 = vld [vmem:[#allocation2 + $0x5a8] sm:$0xff] }
 0x376   :  { %2889 = vmatprep.subr.bf16.mxu1 %v2826_v5  ;;  %v2658_v5 = vld [vmem:[#allocation2 + $0x570] sm:$0xff] }
 0x377   :  { %2693 = vmatmul.mubr.bf16.vlgmr.msra.gmra.mrb[32].mxu0 %v6068_v6 }
 0x378   :  { %2775 = vmatmul.mubr.bf16.vlgmr.msra.gmra.mrb[28].mxu1 %v6068_v6  ;;  %2702 = vmatpush1.bf16.msra.mxu0 %v2598_v7  ;;  %v2885_v7 = vld [vmem:[#allocation2 + $0x5a0] sm:$0xff] }
 0x379   :  { %2890 = vmatpush1.bf16.msra.mxu1 %v2825_v8  ;;  %2703 = vmatprep.subr.bf16.mxu0 %v2607_v9  ;;  %v2828_v8 = vld [vmem:[#allocation2 + $0x58] sm:$0xff]  ;;  %v3078_v9 = vld [vmem:[#allocation2 + $0x88] sm:$0xff] }
 0x37a   :  { %2891 = vmatprep.subr.bf16.mxu1 %v2834_v10  ;;  %2733 = vmatprep.mubr.bf16.mxu0 %v4683_v59  ;;  %v2827_v10 = vld [vmem:[#allocation2 + $0x50] sm:$0xff] }
 0x37b   :  { %2921 = vmatprep.mubr.bf16.mxu1 %v4683_v59 }
 0x37c   :  { %2704 = vmatpush1.bf16.msra.mxu0 %v2606_v57  ;;  %v3077_v57 = vld [vmem:[#allocation2 + $0x80] sm:$0xff] }
 0x37d   :  { %2892 = vmatpush1.bf16.msra.mxu1 %v2833_v58  ;;  %2705 = vmatprep.subr.bf16.mxu0 %v2615_v4  ;;  %v2836_v58 = vld [vmem:[#allocation2 + $0x118] sm:$0xff]  ;;  %v3086_v4 = vld [vmem:[#allocation2 + $0x148] sm:$0xff] }
 0x37e   :  { %2893 = vmatprep.subr.bf16.mxu1 %v2842_v11  ;;  %v2835_v11 = vld [vmem:[#allocation2 + $0x110] sm:$0xff] }
 0x380   :  { %2706 = vmatpush1.bf16.msra.mxu0 %v2614_v12  ;;  %v3085_v12 = vld [vmem:[#allocation2 + $0x140] sm:$0xff] }
 0x381   :  { %2894 = vmatpush1.bf16.msra.mxu1 %v2841_v13  ;;  %2707 = vmatprep.subr.bf16.mxu0 %v2623_v18  ;;  %v2844_v13 = vld [vmem:[#allocation2 + $0x1d8] sm:$0xff]  ;;  %v3094_v18 = vld [vmem:[#allocation2 + $0x208] sm:$0xff] }
 0x382   :  { %2895 = vmatprep.subr.bf16.mxu1 %v2850_v19  ;;  %v2843_v19 = vld [vmem:[#allocation2 + $0x1d0] sm:$0xff] }
 0x384   :  { %2708 = vmatpush1.bf16.msra.mxu0 %v2622_v61  ;;  %v3093_v61 = vld [vmem:[#allocation2 + $0x200] sm:$0xff] }
 0x385   :  { %2896 = vmatpush1.bf16.msra.mxu1 %v2849_v60  ;;  %2709 = vmatprep.subr.bf16.mxu0 %v2631_v21  ;;  %v2852_v60 = vld [vmem:[#allocation2 + $0x298] sm:$0xff]  ;;  %v3102_v21 = vld [vmem:[#allocation2 + $0x2c8] sm:$0xff] }
 0x386   :  { %2897 = vmatprep.subr.bf16.mxu1 %v2858_v22  ;;  %v2851_v22 = vld [vmem:[#allocation2 + $0x290] sm:$0xff] }
 0x388   :  { %2710 = vmatpush1.bf16.msra.mxu0 %v2630_v23  ;;  %v3101_v23 = vld [vmem:[#allocation2 + $0x2c0] sm:$0xff] }
 0x389   :  { %2898 = vmatpush1.bf16.msra.mxu1 %v2857_v24  ;;  %2711 = vmatprep.subr.bf16.mxu0 %v2639_v25  ;;  %v2860_v24 = vld [vmem:[#allocation2 + $0x358] sm:$0xff]  ;;  %v3110_v25 = vld [vmem:[#allocation2 + $0x388] sm:$0xff] }
 0x38a   :  { %2899 = vmatprep.subr.bf16.mxu1 %v2866_v14  ;;  %v2859_v14 = vld [vmem:[#allocation2 + $0x350] sm:$0xff] }
 0x38c   :  { %2712 = vmatpush1.bf16.msra.mxu0 %v2638_v15  ;;  %v3109_v15 = vld [vmem:[#allocation2 + $0x380] sm:$0xff] }
 0x38d   :  { %2900 = vmatpush1.bf16.msra.mxu1 %v2865_v26  ;;  %2713 = vmatprep.subr.bf16.mxu0 %v2647_v27  ;;  %v2868_v26 = vld [vmem:[#allocation2 + $0x418] sm:$0xff]  ;;  %v3118_v27 = vld [vmem:[#allocation2 + $0x448] sm:$0xff] }
 0x38e   :  { %2901 = vmatprep.subr.bf16.mxu1 %v2874_v28  ;;  %v2867_v28 = vld [vmem:[#allocation2 + $0x410] sm:$0xff] }
 0x390   :  { %2714 = vmatpush1.bf16.msra.mxu0 %v2646_v20  ;;  %v3117_v20 = vld [vmem:[#allocation2 + $0x440] sm:$0xff] }
 0x391   :  { %2902 = vmatpush1.bf16.msra.mxu1 %v2873_v29  ;;  %2715 = vmatprep.subr.bf16.mxu0 %v2655_v17  ;;  %v2876_v29 = vld [vmem:[#allocation2 + $0x4d8] sm:$0xff]  ;;  %v3126_v17 = vld [vmem:[#allocation2 + $0x508] sm:$0xff] }
 0x392   :  { %2903 = vmatprep.subr.bf16.mxu1 %v2882_v30  ;;  %v2875_v30 = vld [vmem:[#allocation2 + $0x4d0] sm:$0xff] }
 0x394   :  { %2716 = vmatpush1.bf16.msra.mxu0 %v2654_v33  ;;  %v3125_v33 = vld [vmem:[#allocation2 + $0x500] sm:$0xff] }
 0x395   :  { %2904 = vmatpush1.bf16.msra.mxu1 %v2881_v34  ;;  %2783 = vmatprep.subr.bf16.mxu0 %v2603_v35  ;;  %v2884_v34 = vld [vmem:[#allocation2 + $0x598] sm:$0xff]  ;;  %v3134_v35 = vld [vmem:[#allocation2 + $0x5c8] sm:$0xff] }
 0x396   :  { %2971 = vmatprep.subr.bf16.mxu1 %v2830_v36  ;;  %v2883_v36 = vld [vmem:[#allocation2 + $0x590] sm:$0xff] }
 0x397   :  { %2734 = vmatmul.mubr.bf16.vlgmr.msra.gmra.mrb[36].mxu0 %v6068_v6 }
 0x398   :  { %2922 = vmatmul.mubr.bf16.vlgmr.msra.gmra.mrb[32].mxu1 %v6076_v41  ;;  %2784 = vmatpush1.bf16.msra.mxu0 %v2602_v42  ;;  %v3133_v42 = vld [vmem:[#allocation2 + $0x5c0] sm:$0xff] }
 0x399   :  { %2972 = vmatpush1.bf16.msra.mxu1 %v2829_v43  ;;  %2785 = vmatprep.subr.bf16.mxu0 %v2611_v44  ;;  %v2832_v43 = vld [vmem:[#allocation2 + $0x78] sm:$0xff]  ;;  %v3082_v44 = vld [vmem:[#allocation2 + $0xa8] sm:$0xff] }
 0x39a   :  { %2973 = vmatprep.subr.bf16.mxu1 %v2838_v32  ;;  %2815 = vmatprep.mubr.bf16.mxu0 %v4683_v59  ;;  %v2831_v32 = vld [vmem:[#allocation2 + $0x70] sm:$0xff] }
 0x39b   :  { %3003 = vmatprep.mubr.bf16.mxu1 %v4683_v59 }
 0x39c   :  { %2786 = vmatpush1.bf16.msra.mxu0 %v2610_v31  ;;  %v3081_v31 = vld [vmem:[#allocation2 + $0xa0] sm:$0xff] }
 0x39d   :  { %2974 = vmatpush1.bf16.msra.mxu1 %v2837_v45  ;;  %2787 = vmatprep.subr.bf16.mxu0 %v2619_v16  ;;  %v2840_v45 = vld [vmem:[#allocation2 + $0x138] sm:$0xff]  ;;  %v3090_v16 = vld [vmem:[#allocation2 + $0x168] sm:$0xff] }
 0x39e   :  { %2975 = vmatprep.subr.bf16.mxu1 %v2846_v46  ;;  %v2839_v46 = vld [vmem:[#allocation2 + $0x130] sm:$0xff] }
 0x3a0   :  { %2788 = vmatpush1.bf16.msra.mxu0 %v2618_v47  ;;  %v3089_v47 = vld [vmem:[#allocation2 + $0x160] sm:$0xff] }
 0x3a1   :  { %2976 = vmatpush1.bf16.msra.mxu1 %v2845_v48  ;;  %2789 = vmatprep.subr.bf16.mxu0 %v2627_v49  ;;  %v2848_v48 = vld [vmem:[#allocation2 + $0x1f8] sm:$0xff]  ;;  %v3098_v49 = vld [vmem:[#allocation2 + $0x228] sm:$0xff] }
 0x3a2   :  { %2977 = vmatprep.subr.bf16.mxu1 %v2854_v50  ;;  %v2847_v50 = vld [vmem:[#allocation2 + $0x1f0] sm:$0xff] }
 0x3a4   :  { %2790 = vmatpush1.bf16.msra.mxu0 %v2626_v51  ;;  %v3097_v51 = vld [vmem:[#allocation2 + $0x220] sm:$0xff] }
 0x3a5   :  { %2978 = vmatpush1.bf16.msra.mxu1 %v2853_v52  ;;  %2791 = vmatprep.subr.bf16.mxu0 %v2635_v53  ;;  %v2856_v52 = vld [vmem:[#allocation2 + $0x2b8] sm:$0xff]  ;;  %v3106_v53 = vld [vmem:[#allocation2 + $0x2e8] sm:$0xff] }
 0x3a6   :  { %2979 = vmatprep.subr.bf16.mxu1 %v2862_v54  ;;  %v2855_v54 = vld [vmem:[#allocation2 + $0x2b0] sm:$0xff] }
 0x3a8   :  { %2792 = vmatpush1.bf16.msra.mxu0 %v2634_v55  ;;  %v3105_v55 = vld [vmem:[#allocation2 + $0x2e0] sm:$0xff] }
 0x3a9   :  { %2980 = vmatpush1.bf16.msra.mxu1 %v2861_v38  ;;  %2793 = vmatprep.subr.bf16.mxu0 %v2643_v37  ;;  %v2864_v38 = vld [vmem:[#allocation2 + $0x378] sm:$0xff]  ;;  %v3114_v37 = vld [vmem:[#allocation2 + $0x3a8] sm:$0xff] }
 0x3aa   :  { %2981 = vmatprep.subr.bf16.mxu1 %v2870_v56  ;;  %v2863_v56 = vld [vmem:[#allocation2 + $0x370] sm:$0xff] }
 0x3ac   :  { %2794 = vmatpush1.bf16.msra.mxu0 %v2642_v62  ;;  %v3113_v62 = vld [vmem:[#allocation2 + $0x3a0] sm:$0xff] }
 0x3ad   :  { %2982 = vmatpush1.bf16.msra.mxu1 %v2869_v63  ;;  %2795 = vmatprep.subr.bf16.mxu0 %v2651_v0  ;;  %v2872_v63 = vld [vmem:[#allocation2 + $0x438] sm:$0xff]  ;;  %v3122_v0 = vld [vmem:[#allocation2 + $0x468] sm:$0xff] }
 0x3ae   :  { %2983 = vmatprep.subr.bf16.mxu1 %v2878_v1  ;;  %v2871_v1 = vld [vmem:[#allocation2 + $0x430] sm:$0xff] }
 0x3b0   :  { %2796 = vmatpush1.bf16.msra.mxu0 %v2650_v2  ;;  %v3121_v2 = vld [vmem:[#allocation2 + $0x460] sm:$0xff] }
 0x3b1   :  { %2984 = vmatpush1.bf16.msra.mxu1 %v2877_v40  ;;  %2797 = vmatprep.subr.bf16.mxu0 %v2659_v3  ;;  %v2880_v40 = vld [vmem:[#allocation2 + $0x4f8] sm:$0xff]  ;;  %v3130_v3 = vld [vmem:[#allocation2 + $0x528] sm:$0xff] }
 0x3b2   :  { %2985 = vmatprep.subr.bf16.mxu1 %v2886_v39  ;;  %v2879_v39 = vld [vmem:[#allocation2 + $0x4f0] sm:$0xff] }
 0x3b4   :  { %2798 = vmatpush1.bf16.msra.mxu0 %v2658_v5  ;;  %v3129_v5 = vld [vmem:[#allocation2 + $0x520] sm:$0xff] }
 0x3b5   :  { %2986 = vmatpush1.bf16.msra.mxu1 %v2885_v7  ;;  %2930 = vmatprep.subr.bf16.mxu0 %v2828_v8  ;;  %v2888_v7 = vld [vmem:[#allocation2 + $0x5b8] sm:$0xff]  ;;  %v3138_v8 = vld [vmem:[#allocation2 + $0x5e8] sm:$0xff] }
 0x3b6   :  { %3141 = vmatprep.subr.bf16.mxu1 %v3078_v9  ;;  %v2887_v9 = vld [vmem:[#allocation2 + $0x5b0] sm:$0xff] }
 0x3b7   :  { %2816 = vmatmul.mubr.bf16.vlgmr.msra.gmra.mrb[40].mxu0 %v6068_v6 }
 0x3b8   :  { %3004 = vmatmul.mubr.bf16.vlgmr.msra.gmra.mrb[36].mxu1 %v6076_v41  ;;  %2931 = vmatpush1.bf16.msra.mxu0 %v2827_v10  ;;  %v3137_v10 = vld [vmem:[#allocation2 + $0x5e0] sm:$0xff] }
 0x3b9   :  { %3142 = vmatpush1.bf16.msra.mxu1 %v3077_v57  ;;  %2932 = vmatprep.subr.bf16.mxu0 %v2836_v58  ;;  %v3080_v57 = vld [vmem:[#allocation2 + $0x98] sm:$0xff]  ;;  %v3079_v58 = vld [vmem:[#allocation2 + $0x90] sm:$0xff] }
 0x3ba   :  { %3143 = vmatprep.subr.bf16.mxu1 %v3086_v4  ;;  %2962 = vmatprep.mubr.bf16.mxu0 %v4683_v59  ;;  %v3088_v4 = vld [vmem:[#allocation2 + $0x158] sm:$0xff] }
 0x3bb   :  { %3173 = vmatprep.mubr.bf16.mxu1 %v4683_v59 }
 0x3bc   :  { %2933 = vmatpush1.bf16.msra.mxu0 %v2835_v11  ;;  %v3087_v11 = vld [vmem:[#allocation2 + $0x150] sm:$0xff] }
 0x3bd   :  { %3144 = vmatpush1.bf16.msra.mxu1 %v3085_v12  ;;  %2934 = vmatprep.subr.bf16.mxu0 %v2844_v13  ;;  %v3096_v12 = vld [vmem:[#allocation2 + $0x218] sm:$0xff]  ;;  %v3095_v13 = vld [vmem:[#allocation2 + $0x210] sm:$0xff] }
 0x3be   :  { %3145 = vmatprep.subr.bf16.mxu1 %v3094_v18  ;;  %v3104_v18 = vld [vmem:[#allocation2 + $0x2d8] sm:$0xff] }
 0x3c0   :  { %2935 = vmatpush1.bf16.msra.mxu0 %v2843_v19  ;;  %v3103_v19 = vld [vmem:[#allocation2 + $0x2d0] sm:$0xff] }
 0x3c1   :  { %3146 = vmatpush1.bf16.msra.mxu1 %v3093_v61  ;;  %2936 = vmatprep.subr.bf16.mxu0 %v2852_v60  ;;  %v3112_v61 = vld [vmem:[#allocation2 + $0x398] sm:$0xff]  ;;  %v3111_v60 = vld [vmem:[#allocation2 + $0x390] sm:$0xff] }
 0x3c2   :  { %3147 = vmatprep.subr.bf16.mxu1 %v3102_v21  ;;  %v3119_v21 = vld [vmem:[#allocation2 + $0x450] sm:$0xff] }
 0x3c4   :  { %2937 = vmatpush1.bf16.msra.mxu0 %v2851_v22  ;;  %v3128_v22 = vld [vmem:[#allocation2 + $0x518] sm:$0xff] }
 0x3c5   :  { %3148 = vmatpush1.bf16.msra.mxu1 %v3101_v23  ;;  %2938 = vmatprep.subr.bf16.mxu0 %v2860_v24  ;;  %v3127_v23 = vld [vmem:[#allocation2 + $0x510] sm:$0xff]  ;;  %v3466_v24 = vld [vmem:[#allocation3 + $0x408] sm:$0xff] }
 0x3c6   :  { %3149 = vmatprep.subr.bf16.mxu1 %v3110_v25  ;;  %v3465_v25 = vld [vmem:[#allocation3 + $0x400] sm:$0xff] }
 0x3c8   :  { %2939 = vmatpush1.bf16.msra.mxu0 %v2859_v14  ;;  %v3136_v14 = vld [vmem:[#allocation2 + $0x5d8] sm:$0xff] }
 0x3c9   :  { %3150 = vmatpush1.bf16.msra.mxu1 %v3109_v15  ;;  %2940 = vmatprep.subr.bf16.mxu0 %v2868_v26  ;;  %v3470_v15 = vld [vmem:[#allocation3 + $0x428] sm:$0xff]  ;;  %v3469_v26 = vld [vmem:[#allocation3 + $0x420] sm:$0xff] }
 0x3ca   :  { %3151 = vmatprep.subr.bf16.mxu1 %v3118_v27  ;;  %v3135_v27 = vld [vmem:[#allocation2 + $0x5d0] sm:$0xff] }
 0x3cc   :  { %2941 = vmatpush1.bf16.msra.mxu0 %v2867_v28  ;;  %v3474_v28 = vld [vmem:[#allocation3 + $0x448] sm:$0xff] }
 0x3cd   :  { %3152 = vmatpush1.bf16.msra.mxu1 %v3117_v20  ;;  %2942 = vmatprep.subr.bf16.mxu0 %v2876_v29  ;;  %v3084_v20 = vld [vmem:[#allocation2 + $0xb8] sm:$0xff]  ;;  %v3473_v29 = vld [vmem:[#allocation3 + $0x440] sm:$0xff] }
 0x3ce   :  { %3153 = vmatprep.subr.bf16.mxu1 %v3126_v17  ;;  %v3083_v17 = vld [vmem:[#allocation2 + $0xb0] sm:$0xff] }
 0x3d0   :  { %2943 = vmatpush1.bf16.msra.mxu0 %v2875_v30  ;;  %v3092_v30 = vld [vmem:[#allocation2 + $0x178] sm:$0xff] }
 0x3d1   :  { %3154 = vmatpush1.bf16.msra.mxu1 %v3125_v33  ;;  %2944 = vmatprep.subr.bf16.mxu0 %v2884_v34  ;;  %v3478_v33 = vld [vmem:[#allocation3 + $0x468] sm:$0xff]  ;;  %v3477_v34 = vld [vmem:[#allocation3 + $0x460] sm:$0xff] }
 0x3d2   :  { %3155 = vmatprep.subr.bf16.mxu1 %v3134_v35  ;;  %v3091_v35 = vld [vmem:[#allocation2 + $0x170] sm:$0xff] }
 0x3d4   :  { %2945 = vmatpush1.bf16.msra.mxu0 %v2883_v36  ;;  %v3482_v36 = vld [vmem:[#allocation3 + $0x488] sm:$0xff] }
 0x3d5   :  { %3156 = vmatpush1.bf16.msra.mxu1 %v3133_v42  ;;  %3012 = vmatprep.subr.bf16.mxu0 %v2832_v43  ;;  %v3100_v42 = vld [vmem:[#allocation2 + $0x238] sm:$0xff]  ;;  %v3481_v43 = vld [vmem:[#allocation3 + $0x480] sm:$0xff] }
 0x3d6   :  { %3223 = vmatprep.subr.bf16.mxu1 %v3082_v44  ;;  %v3099_v44 = vld [vmem:[#allocation2 + $0x230] sm:$0xff] }
 0x3d7   :  { %2963 = vmatmul.mubr.bf16.vlgmr.msra.gmra.mrb[44].mxu0 %v6076_v41 }
 0x3d8   :  { %3174 = vmatmul.mubr.bf16.vlgmr.msra.gmra.mrb[40].mxu1 %v6068_v6  ;;  %3013 = vmatpush1.bf16.msra.mxu0 %v2831_v32  ;;  %v3486_v32 = vld [vmem:[#allocation3 + $0x4a8] sm:$0xff] }
 0x3d9   :  { %3224 = vmatpush1.bf16.msra.mxu1 %v3081_v31  ;;  %3014 = vmatprep.subr.bf16.mxu0 %v2840_v45  ;;  %v3108_v31 = vld [vmem:[#allocation2 + $0x2f8] sm:$0xff]  ;;  %v3485_v45 = vld [vmem:[#allocation3 + $0x4a0] sm:$0xff] }
 0x3da   :  { %3225 = vmatprep.subr.bf16.mxu1 %v3090_v16  ;;  %3044 = vmatprep.mubr.bf16.mxu0 %v4683_v59  ;;  %v3116_v16 = vld [vmem:[#allocation2 + $0x3b8] sm:$0xff] }
 0x3db   :  { %3255 = vmatprep.mubr.bf16.mxu1 %v4683_v59 }
 0x3dc   :  { %3015 = vmatpush1.bf16.msra.mxu0 %v2839_v46  ;;  %v3115_v46 = vld [vmem:[#allocation2 + $0x3b0] sm:$0xff] }
 0x3dd   :  { %3226 = vmatpush1.bf16.msra.mxu1 %v3089_v47  ;;  %3016 = vmatprep.subr.bf16.mxu0 %v2848_v48  ;;  %v3124_v47 = vld [vmem:[#allocation2 + $0x478] sm:$0xff]  ;;  %v3123_v48 = vld [vmem:[#allocation2 + $0x470] sm:$0xff] }
 0x3de   :  { %3227 = vmatprep.subr.bf16.mxu1 %v3098_v49  ;;  %v3490_v49 = vld [vmem:[#allocation3 + $0x4c8] sm:$0xff] }
 0x3e0   :  { %3017 = vmatpush1.bf16.msra.mxu0 %v2847_v50  ;;  %v3132_v50 = vld [vmem:[#allocation2 + $0x538] sm:$0xff] }
 0x3e1   :  { %3228 = vmatpush1.bf16.msra.mxu1 %v3097_v51  ;;  %3018 = vmatprep.subr.bf16.mxu0 %v2856_v52  ;;  %v3489_v51 = vld [vmem:[#allocation3 + $0x4c0] sm:$0xff]  ;;  %v3131_v52 = vld [vmem:[#allocation2 + $0x530] sm:$0xff] }
 0x3e2   :  { %3229 = vmatprep.subr.bf16.mxu1 %v3106_v53  ;;  %v3494_v53 = vld [vmem:[#allocation3 + $0x4e8] sm:$0xff] }
 0x3e4   :  { %3019 = vmatpush1.bf16.msra.mxu0 %v2855_v54  ;;  %v3493_v54 = vld [vmem:[#allocation3 + $0x4e0] sm:$0xff] }
 0x3e5   :  { %3230 = vmatpush1.bf16.msra.mxu1 %v3105_v55  ;;  %3020 = vmatprep.subr.bf16.mxu0 %v2864_v38  ;;  %v3140_v55 = vld [vmem:[#allocation2 + $0x5f8] sm:$0xff]  ;;  %v3498_v38 = vld [vmem:[#allocation3 + $0x508] sm:$0xff] }
 0x3e6   :  { %3231 = vmatprep.subr.bf16.mxu1 %v3114_v37  ;;  %v3497_v37 = vld [vmem:[#allocation3 + $0x500] sm:$0xff] }
 0x3e8   :  { %3021 = vmatpush1.bf16.msra.mxu0 %v2863_v56  ;;  %v3139_v56 = vld [vmem:[#allocation2 + $0x5f0] sm:$0xff] }
 0x3e9   :  { %3232 = vmatpush1.bf16.msra.mxu1 %v3113_v62  ;;  %3022 = vmatprep.subr.bf16.mxu0 %v2872_v63  ;;  %v3502_v62 = vld [vmem:[#allocation3 + $0x528] sm:$0xff]  ;;  %v3468_v63 = vld [vmem:[#allocation3 + $0x418] sm:$0xff] }
 0x3ea   :  { %3233 = vmatprep.subr.bf16.mxu1 %v3122_v0  ;;  %v3501_v0 = vld [vmem:[#allocation3 + $0x520] sm:$0xff] }
 0x3ec   :  { %3023 = vmatpush1.bf16.msra.mxu0 %v2871_v1  ;;  %v3467_v1 = vld [vmem:[#allocation3 + $0x410] sm:$0xff] }
 0x3ed   :  { %3234 = vmatpush1.bf16.msra.mxu1 %v3121_v2  ;;  %3024 = vmatprep.subr.bf16.mxu0 %v2880_v40  ;;  %v3506_v2 = vld [vmem:[#allocation3 + $0x548] sm:$0xff]  ;;  %v3472_v40 = vld [vmem:[#allocation3 + $0x438] sm:$0xff] }
 0x3ee   :  { %3235 = vmatprep.subr.bf16.mxu1 %v3130_v3  ;;  %v3505_v3 = vld [vmem:[#allocation3 + $0x540] sm:$0xff] }
 0x3f0   :  { %3025 = vmatpush1.bf16.msra.mxu0 %v2879_v39  ;;  %v3471_v39 = vld [vmem:[#allocation3 + $0x430] sm:$0xff] }
 0x3f1   :  { %3236 = vmatpush1.bf16.msra.mxu1 %v3129_v5  ;;  %3026 = vmatprep.subr.bf16.mxu0 %v2888_v7  ;;  %v3510_v5 = vld [vmem:[#allocation3 + $0x568] sm:$0xff]  ;;  %v3476_v7 = vld [vmem:[#allocation3 + $0x458] sm:$0xff] }
 0x3f2   :  { %3237 = vmatprep.subr.bf16.mxu1 %v3138_v8  ;;  %v3509_v8 = vld [vmem:[#allocation3 + $0x560] sm:$0xff] }
 0x3f4   :  { %3027 = vmatpush1.bf16.msra.mxu0 %v2887_v9  ;;  %v3475_v9 = vld [vmem:[#allocation3 + $0x450] sm:$0xff] }
 0x3f5   :  { %3238 = vmatpush1.bf16.msra.mxu1 %v3137_v10  ;;  %3182 = vmatprep.subr.bf16.mxu0 %v3080_v57  ;;  %v3514_v10 = vld [vmem:[#allocation3 + $0x588] sm:$0xff]  ;;  %v3480_v57 = vld [vmem:[#allocation3 + $0x478] sm:$0xff] }
 0x3f6   :  { %3593 = vmatprep.subr.bf16.mxu1 %v3466_v24 }
 0x3f7   :  { %3045 = vmatmul.mubr.bf16.vlgmr.msra.gmra.mrb[48].mxu0 %v6076_v41  ;;  %v3120_v41 = vld [vmem:[#allocation2 + $0x458] sm:$0xff] }
 0x3f8   :  { %3256 = vmatmul.mubr.bf16.vlgmr.msra.gmra.mrb[44].mxu1 %v6068_v6  ;;  %3183 = vmatpush1.bf16.msra.mxu0 %v3079_v58  ;;  %v3479_v58 = vld [vmem:[#allocation3 + $0x470] sm:$0xff] }
 0x3f9   :  { %3214 = vmatprep.mubr.bf16.mxu0 %v4683_v59  ;;  %3184 = vmatprep.subr.bf16.mxu0 %v3088_v4  ;;  %v3518_v4 = vld [vmem:[#allocation3 + $0x5a8] sm:$0xff] }
 0x3fa   :  { %3594 = vmatpush1.bf16.msra.mxu1 %v3465_v25 }
 0x3fb   :  { %3595 = vmatprep.subr.bf16.mxu1 %v3470_v15 }
 0x3fc   :  { %3185 = vmatpush1.bf16.msra.mxu0 %v3087_v11  ;;  %v3484_v11 = vld [vmem:[#allocation3 + $0x498] sm:$0xff] }
 0x3fd   :  { %3186 = vmatprep.subr.bf16.mxu0 %v3096_v12  ;;  %v3517_v12 = vld [vmem:[#allocation3 + $0x5a0] sm:$0xff] }
 0x3fe   :  { %3596 = vmatpush1.bf16.msra.mxu1 %v3469_v26 }
 0x3ff   :  { %3597 = vmatprep.subr.bf16.mxu1 %v3474_v28  ;;  %v3526_v28 = vld [vmem:[#allocation3 + $0x5e8] sm:$0xff] }
 0x400   :  { %3187 = vmatpush1.bf16.msra.mxu0 %v3095_v13  ;;  %v3483_v13 = vld [vmem:[#allocation3 + $0x490] sm:$0xff] }
 0x401   :  { %3188 = vmatprep.subr.bf16.mxu0 %v3104_v18  ;;  %v3488_v18 = vld [vmem:[#allocation3 + $0x4b8] sm:$0xff] }
 0x402   :  { %3598 = vmatpush1.bf16.msra.mxu1 %v3473_v29  ;;  %v3525_v29 = vld [vmem:[#allocation3 + $0x5e0] sm:$0xff] }
 0x403   :  { %3599 = vmatprep.subr.bf16.mxu1 %v3478_v33  ;;  %v3500_v33 = vld [vmem:[#allocation3 + $0x518] sm:$0xff] }
 0x404   :  { %3189 = vmatpush1.bf16.msra.mxu0 %v3103_v19  ;;  %v3487_v19 = vld [vmem:[#allocation3 + $0x4b0] sm:$0xff] }
 0x405   :  { %3190 = vmatprep.subr.bf16.mxu0 %v3112_v61  ;;  %v3522_v61 = vld [vmem:[#allocation3 + $0x5c8] sm:$0xff] }
 0x406   :  { %3600 = vmatpush1.bf16.msra.mxu1 %v3477_v34  ;;  %v3499_v34 = vld [vmem:[#allocation3 + $0x510] sm:$0xff] }
 0x407   :  { %3601 = vmatprep.subr.bf16.mxu1 %v3482_v36  ;;  %v3503_v36 = vld [vmem:[#allocation3 + $0x530] sm:$0xff] }
 0x408   :  { %3191 = vmatpush1.bf16.msra.mxu0 %v3111_v60 }
 0x409   :  { %3192 = vmatprep.subr.bf16.mxu0 %v3120_v41 }
 0x40a   :  { %3602 = vmatpush1.bf16.msra.mxu1 %v3481_v43  ;;  %v3507_v43 = vld [vmem:[#allocation3 + $0x550] sm:$0xff] }
 0x40b   :  { %3603 = vmatprep.subr.bf16.mxu1 %v3486_v32  ;;  %v3511_v32 = vld [vmem:[#allocation3 + $0x570] sm:$0xff] }
 0x40c   :  { %3193 = vmatpush1.bf16.msra.mxu0 %v3119_v21  ;;  %v3492_v21 = vld [vmem:[#allocation3 + $0x4d8] sm:$0xff] }
 0x40d   :  { %3194 = vmatprep.subr.bf16.mxu0 %v3128_v22  ;;  %v3521_v22 = vld [vmem:[#allocation3 + $0x5c0] sm:$0xff] }
 0x40e   :  { %3604 = vmatpush1.bf16.msra.mxu1 %v3485_v45  ;;  %v3515_v45 = vld [vmem:[#allocation3 + $0x590] sm:$0xff] }
 0x40f   :  { %3605 = vmatprep.subr.bf16.mxu1 %v3490_v49 }
 0x410   :  { %3195 = vmatpush1.bf16.msra.mxu0 %v3127_v23 }
 0x411   :  { %3196 = vmatprep.subr.bf16.mxu0 %v3136_v14 }
 0x412   :  { %3606 = vmatpush1.bf16.msra.mxu1 %v3489_v51 }
 0x413   :  { %3607 = vmatprep.subr.bf16.mxu1 %v3494_v53 }
 0x414   :  { %3197 = vmatpush1.bf16.msra.mxu0 %v3135_v27  ;;  %v3491_v27 = vld [vmem:[#allocation3 + $0x4d0] sm:$0xff] }
 0x415   :  { %3264 = vmatprep.subr.bf16.mxu0 %v3084_v20  ;;  %v3496_v20 = vld [vmem:[#allocation3 + $0x4f8] sm:$0xff] }
 0x416   :  { %3608 = vmatpush1.bf16.msra.mxu1 %v3493_v54 }
 0x417   :  { %3215 = vmatmul.mubr.bf16.vlgmr.msra.gmra.mrb[52].mxu0 %v6068_v6  ;;  %3609 = vmatprep.subr.bf16.mxu1 %v3498_v38 }
 0x418   :  { %3265 = vmatpush1.bf16.msra.mxu0 %v3083_v17  ;;  %3296 = vmatprep.mubr.bf16.mxu0 %v4683_v59  ;;  %v3107_v59 = vld [vmem:[#allocation2 + $0x2f0] sm:$0xff] }
 0x419   :  { %3266 = vmatprep.subr.bf16.mxu0 %v3092_v30  ;;  %v3495_v17 = vld [vmem:[#allocation3 + $0x4f0] sm:$0xff]  ;;  %v3530_v30 = vld [vmem:[#allocation3 + $0x608] sm:$0xff] }
 0x41a   :  { %3610 = vmatpush1.bf16.msra.mxu1 %v3497_v37 }
 0x41b   :  { %3611 = vmatprep.subr.bf16.mxu1 %v3502_v62  ;;  %v3523_v62 = vld [vmem:[#allocation3 + $0x5d0] sm:$0xff] }
 0x41c   :  { %3267 = vmatpush1.bf16.msra.mxu0 %v3091_v35  ;;  %v3504_v35 = vld [vmem:[#allocation3 + $0x538] sm:$0xff] }
 0x41d   :  { %3268 = vmatprep.subr.bf16.mxu0 %v3100_v42  ;;  %v3508_v42 = vld [vmem:[#allocation3 + $0x558] sm:$0xff] }
 0x41e   :  { %3612 = vmatpush1.bf16.msra.mxu1 %v3501_v0  ;;  %v3527_v0 = vld [vmem:[#allocation3 + $0x5f0] sm:$0xff] }
 0x41f   :  { %3613 = vmatprep.subr.bf16.mxu1 %v3506_v2 }
 0x420   :  { %3269 = vmatpush1.bf16.msra.mxu0 %v3099_v44  ;;  %v3512_v44 = vld [vmem:[#allocation3 + $0x578] sm:$0xff] }
 0x421   :  { %3270 = vmatprep.subr.bf16.mxu0 %v3108_v31  ;;  %v3516_v31 = vld [vmem:[#allocation3 + $0x598] sm:$0xff] }
 0x422   :  { %3614 = vmatpush1.bf16.msra.mxu1 %v3505_v3 }
 0x423   :  { %3615 = vmatprep.subr.bf16.mxu1 %v3510_v5 }
 0x424   :  { %3271 = vmatpush1.bf16.msra.mxu0 %v3107_v59  ;;  %v3520_v59 = vld [vmem:[#allocation3 + $0x5b8] sm:$0xff] }
 0x425   :  { %3272 = vmatprep.subr.bf16.mxu0 %v3116_v16  ;;  %v3519_v16 = vld [vmem:[#allocation3 + $0x5b0] sm:$0xff] }
 0x426   :  { %3616 = vmatpush1.bf16.msra.mxu1 %v3509_v8 }
 0x427   :  { %3617 = vmatprep.subr.bf16.mxu1 %v3514_v10 }
 0x428   :  { %3273 = vmatpush1.bf16.msra.mxu0 %v3115_v46 }
 0x429   :  { %3274 = vmatprep.subr.bf16.mxu0 %v3124_v47 }
 0x42c   :  { %3275 = vmatpush1.bf16.msra.mxu0 %v3123_v48  ;;  %v3524_v48 = vld [vmem:[#allocation3 + $0x5d8] sm:$0xff] }
 0x42d   :  { %3276 = vmatprep.subr.bf16.mxu0 %v3132_v50 }
 0x430   :  { %3277 = vmatpush1.bf16.msra.mxu0 %v3131_v52 }
 0x431   :  { %3278 = vmatprep.subr.bf16.mxu0 %v3140_v55 }
 0x434   :  { %3279 = vmatpush1.bf16.msra.mxu0 %v3139_v56 }
 0x435   :  { %3675 = vmatprep.subr.bf16.mxu0 %v3468_v63  ;;  %v3528_v63 = vld [vmem:[#allocation3 + $0x5f8] sm:$0xff] }
 0x437   :  { %3297 = vmatmul.mubr.bf16.vlgmr.msra.gmra.mrb[56].mxu0 %v6068_v6  ;;  %v3513_v6 = vld [vmem:[#allocation3 + $0x580] sm:$0xff] }
 0x438   :  { %3676 = vmatpush1.bf16.msra.mxu0 %v3467_v1  ;;  %3618 = vmatpush1.bf16.msra.mxu1 %v3513_v6  ;;  %v3532_v1 = vld [vmem:[#allocation3 + $0x618] sm:$0xff] }
 0x439   :  { %3677 = vmatprep.subr.bf16.mxu0 %v3472_v40  ;;  %3619 = vmatprep.subr.bf16.mxu1 %v3518_v4 }
 0x43c   :  { %3678 = vmatpush1.bf16.msra.mxu0 %v3471_v39  ;;  %3620 = vmatpush1.bf16.msra.mxu1 %v3517_v12 }
 0x43d   :  { %3679 = vmatprep.subr.bf16.mxu0 %v3476_v7  ;;  %3621 = vmatprep.subr.bf16.mxu1 %v3522_v61 }
 0x440   :  { %3680 = vmatpush1.bf16.msra.mxu0 %v3475_v9  ;;  %3622 = vmatpush1.bf16.msra.mxu1 %v3521_v22 }
 0x441   :  { %3681 = vmatprep.subr.bf16.mxu0 %v3480_v57  ;;  %3623 = vmatprep.subr.bf16.mxu1 %v3526_v28 }
 0x444   :  { %3682 = vmatpush1.bf16.msra.mxu0 %v3479_v58  ;;  %3624 = vmatpush1.bf16.msra.mxu1 %v3525_v29 }
 0x445   :  { %3683 = vmatprep.subr.bf16.mxu0 %v3484_v11  ;;  %3634 = vmatprep.subr.bf16.mxu1 %v3530_v30 }
 0x448   :  { %3684 = vmatpush1.bf16.msra.mxu0 %v3483_v13 }
 0x449   :  { %3685 = vmatprep.subr.bf16.mxu0 %v3488_v18 }
 0x44a   :  { %v6096_v60 = vpop.f32.mrb[32].mxu0 }
 0x44b   :  { %v6098_v41 = vpop.f32.mrb[28].mxu1  ;;  %v6100_v23 = vpop.f32.mrb[33].mxu0 }
 0x44c   :  { %v6102_v24 = vpop.f32.mrb[29].mxu1  ;;  %v2698_v25 = vpop.f32.mrb[34].mxu0  ;;  %3686 = vmatpush1.bf16.msra.mxu0 %v3487_v19 }
 0x44d   :  { %v2780_v14 = vpop.f32.mrb[30].mxu1  ;;  %v2699_v15 = vpop.f32.mrb[35].mxu0  ;;  %3687 = vmatprep.subr.bf16.mxu0 %v3492_v21 }
 0x44e   :  { %v2781_v26 = vpop.f32.mrb[31].mxu1 }
 0x450   :  { %3688 = vmatpush1.bf16.msra.mxu0 %v3491_v27 }
 0x451   :  { %3689 = vmatprep.subr.bf16.mxu0 %v3496_v20 }
 0x454   :  { %3690 = vmatpush1.bf16.msra.mxu0 %v3495_v17 }
 0x455   :  { %3691 = vmatprep.subr.bf16.mxu0 %v3500_v33 }
 0x458   :  { %3692 = vmatpush1.bf16.msra.mxu0 %v3499_v34 }
 0x459   :  { %3693 = vmatprep.subr.bf16.mxu0 %v3504_v35 }
 0x45c   :  { %3694 = vmatpush1.bf16.msra.mxu0 %v3503_v36 }
 0x45d   :  { %3695 = vmatprep.subr.bf16.mxu0 %v3508_v42 }
 0x460   :  { %3696 = vmatpush1.bf16.msra.mxu0 %v3507_v43 }
 0x461   :  { %3697 = vmatprep.subr.bf16.mxu0 %v3512_v44 }
 0x464   :  { %3698 = vmatpush1.bf16.msra.mxu0 %v3511_v32 }
 0x465   :  { %3699 = vmatprep.subr.bf16.mxu0 %v3516_v31 }
 0x468   :  { %3700 = vmatpush1.bf16.msra.mxu0 %v3515_v45 }
 0x469   :  { %3701 = vmatprep.subr.bf16.mxu0 %v3520_v59 }
 0x46a   :  { %v2735_v46 = vpop.f32.mrb[36].mxu0 }
 0x46b   :  { %v2923_v47 = vpop.f32.mrb[32].mxu1  ;;  %v2737_v51 = vpop.f32.mrb[37].mxu0 }
 0x46c   :  { %v3053_v49 = vmul.f32 %v2923_v47, %v6096_v60  ;;  %v3069_v50 = vmul.f32 %v2923_v47, %v6098_v41  ;;  %v2925_v52 = vpop.f32.mrb[33].mxu1  ;;  %v2739_v55 = vpop.f32.mrb[38].mxu0  ;;  %3702 = vmatpush1.bf16.msra.mxu0 %v3519_v16 }
 0x46d   :  { %v3054_v53 = vmul.f32 %v2925_v52, %v6100_v23  ;;  %v3070_v54 = vmul.f32 %v2925_v52, %v6102_v24  ;;  %v2927_v38 = vpop.f32.mrb[34].mxu1  ;;  %v2740_v37 = vpop.f32.mrb[39].mxu0  ;;  %3703 = vmatprep.subr.bf16.mxu0 %v3524_v48 }
 0x46e   :  { %v2928_v56 = vpop.f32.mrb[35].mxu1  ;;  %v3529_v37 = vld [vmem:[#allocation3 + $0x600] sm:$0xff] }
 0x46f   :  { %v3531_v56 = vld [vmem:[#allocation3 + $0x610] sm:$0xff] }
 0x470   :  { %3704 = vmatpush1.bf16.msra.mxu0 %v3523_v62  ;;  %v3534_v62 = vld [vmem:[#allocation3 + $0x628] sm:$0xff] }
 0x471   :  { %3705 = vmatprep.subr.bf16.mxu0 %v3528_v63  ;;  %v3536_v63 = vld [vmem:[#allocation3 + $0x638] sm:$0xff] }
 0x474   :  { %3706 = vmatpush1.bf16.msra.mxu0 %v3527_v0  ;;  %v3533_v0 = vld [vmem:[#allocation3 + $0x620] sm:$0xff] }
 0x475   :  { %3716 = vmatprep.subr.bf16.mxu0 %v3532_v1  ;;  %v3535_v1 = vld [vmem:[#allocation3 + $0x630] sm:$0xff] }
 0x48a   :  { %v2817_v2 = vpop.f32.mrb[40].mxu0 }
 0x48b   :  { %v3005_v40 = vpop.f32.mrb[36].mxu1  ;;  %v2819_v5 = vpop.f32.mrb[41].mxu0 }
 0x48c   :  { %v3057_v3 = vmul.f32 %v3005_v40, %v6098_v41  ;;  %v3065_v39 = vmul.f32 %v3005_v40, %v6096_v60  ;;  %v3007_v7 = vpop.f32.mrb[37].mxu1  ;;  %v2821_v10 = vpop.f32.mrb[42].mxu0  ;;  %v3540_v40 = vld [vmem:[#allocation3 + $0x658] sm:$0xff] }
 0x48d   :  { %v3058_v8 = vmul.f32 %v3007_v7, %v6102_v24  ;;  %v3066_v9 = vmul.f32 %v3007_v7, %v6100_v23  ;;  %v3009_v57 = vpop.f32.mrb[38].mxu1  ;;  %v2822_v6 = vpop.f32.mrb[43].mxu0  ;;  %v3544_v7 = vld [vmem:[#allocation3 + $0x678] sm:$0xff]  ;;  %v3546_v10 = vld [vmem:[#allocation3 + $0x688] sm:$0xff] }
 0x48e   :  { %v3010_v58 = vpop.f32.mrb[39].mxu1  ;;  %v3061_v4 = vsub.f32 %v3053_v49, %v3057_v3  ;;  %v3073_v11 = vadd.f32 %v3069_v50, %v3065_v39  ;;  %v3537_v3 = vld [vmem:[#allocation3 + $0x640] sm:$0xff]  ;;  %v3539_v39 = vld [vmem:[#allocation3 + $0x650] sm:$0xff]  ;;  %v3548_v57 = vld [vmem:[#allocation3 + $0x698] sm:$0xff] }
 0x48f   :  { %v3062_v12 = vsub.f32 %v3054_v53, %v3058_v8  ;;  %v3074_v13 = vadd.f32 %v3070_v54, %v3066_v9  ;;  %v3541_v8 = vld [vmem:[#allocation3 + $0x660] sm:$0xff]  ;;  %v3543_v9 = vld [vmem:[#allocation3 + $0x670] sm:$0xff] }
 0x490   :  { %v3545_v6 = vld [vmem:[#allocation3 + $0x680] sm:$0xff]  ;;  %v3547_v58 = vld [vmem:[#allocation3 + $0x690] sm:$0xff] }
 0x4aa   :  { %v2964_v18 = vpop.f32.mrb[44].mxu0 }
 0x4ab   :  { %v3175_v19 = vpop.f32.mrb[40].mxu1  ;;  %v3055_v61 = vmul.f32 %v2964_v18, %v2735_v46  ;;  %v3071_v41 = vmul.f32 %v2964_v18, %v2817_v2  ;;  %v2966_v22 = vpop.f32.mrb[45].mxu0  ;;  %v3554_v18 = vld [vmem:[#allocation3 + $0x6c8] sm:$0xff] }
 0x4ac   :  { %v3305_v21 = vmul.f32 %v3175_v19, %v3061_v4  ;;  %v3321_v60 = vmul.f32 %v3175_v19, %v3073_v11  ;;  %v3177_v25 = vpop.f32.mrb[41].mxu1  ;;  %v3056_v14 = vmul.f32 %v2966_v22, %v2737_v51  ;;  %v3072_v24 = vmul.f32 %v2966_v22, %v2819_v5  ;;  %v2968_v26 = vpop.f32.mrb[46].mxu0  ;;  %v3556_v19 = vld [vmem:[#allocation3 + $0x6d8] sm:$0xff] }
 0x4ad   :  { %v3306_v15 = vmul.f32 %v3177_v25, %v3062_v12  ;;  %v3322_v23 = vmul.f32 %v3177_v25, %v3074_v13  ;;  %v3179_v27 = vpop.f32.mrb[42].mxu1  ;;  %v2969_v28 = vpop.f32.mrb[47].mxu0  ;;  %v3560_v22 = vld [vmem:[#allocation3 + $0x6f8] sm:$0xff] }
 0x4ae   :  { %v3180_v20 = vpop.f32.mrb[43].mxu1  ;;  %v3557_v28 = vld [vmem:[#allocation3 + $0x6e0] sm:$0xff] }
 0x4af   :  { %v3559_v20 = vld [vmem:[#allocation3 + $0x6f0] sm:$0xff] }
 0x4ca   :  { %v3046_v29 = vpop.f32.mrb[48].mxu0 }
 0x4cb   :  { %v3257_v17 = vpop.f32.mrb[44].mxu1  ;;  %v3059_v30 = vmul.f32 %v3046_v29, %v2817_v2  ;;  %v3067_v33 = vmul.f32 %v3046_v29, %v2735_v46  ;;  %v3048_v36 = vpop.f32.mrb[49].mxu0  ;;  %v3538_v2 = vld [vmem:[#allocation3 + $0x648] sm:$0xff] }
 0x4cc   :  { %v3309_v34 = vmul.f32 %v3257_v17, %v3073_v11  ;;  %v3317_v35 = vmul.f32 %v3257_v17, %v3061_v4  ;;  %v3259_v42 = vpop.f32.mrb[45].mxu1  ;;  %v3060_v43 = vmul.f32 %v3048_v36, %v2819_v5  ;;  %v3068_v44 = vmul.f32 %v3048_v36, %v2737_v51  ;;  %v3050_v45 = vpop.f32.mrb[50].mxu0  ;;  %v3542_v5 = vld [vmem:[#allocation3 + $0x668] sm:$0xff]  ;;  %v3552_v11 = vld [vmem:[#allocation3 + $0x6b8] sm:$0xff]  ;;  %v3565_v36 = vld [vmem:[#allocation3 + $0x720] sm:$0xff] }
 0x4cd   :  { %v3310_v32 = vmul.f32 %v3259_v42, %v3074_v13  ;;  %v3318_v31 = vmul.f32 %v3259_v42, %v3062_v12  ;;  %v3261_v59 = vpop.f32.mrb[46].mxu1  ;;  %v3051_v48 = vpop.f32.mrb[51].mxu0  ;;  %v6114_v50 = vsub.f32 %v3055_v61, %v3059_v30  ;;  %v6116_v52 = vadd.f32 %v3071_v41, %v3067_v33  ;;  %v3550_v4 = vld [vmem:[#allocation3 + $0x6a8] sm:$0xff]  ;;  %v3549_v12 = vld [vmem:[#allocation3 + $0x6a0] sm:$0xff]  ;;  %v3551_v13 = vld [vmem:[#allocation3 + $0x6b0] sm:$0xff] }
 0x4ce   :  { %v6112_v16 = vsub.f32 %v3305_v21, %v3309_v34  ;;  %v3325_v47 = vadd.f32 %v3321_v60, %v3317_v35  ;;  %v3262_v49 = vpop.f32.mrb[47].mxu1  ;;  %v6120_v54 = vsub.f32 %v3056_v14, %v3060_v43  ;;  %v6122_v55 = vadd.f32 %v3072_v24, %v3068_v44  ;;  %v3553_v61 = vld [vmem:[#allocation3 + $0x6c0] sm:$0xff]  ;;  %v3555_v41 = vld [vmem:[#allocation3 + $0x6d0] sm:$0xff]  ;;  %v3558_v60 = vld [vmem:[#allocation3 + $0x6e8] sm:$0xff] }
 0x4cf   :  { %v6118_v46 = vsub.f32 %v3306_v15, %v3310_v32  ;;  %v3326_v53 = vadd.f32 %v3322_v23, %v3318_v31  ;;  %v3562_v29 = vld [vmem:[#allocation3 + $0x708] sm:$0xff]  ;;  %v3564_v17 = vld [vmem:[#allocation3 + $0x718] sm:$0xff]  ;;  %v3561_v30 = vld [vmem:[#allocation3 + $0x700] sm:$0xff] }
 0x4d0   :  { %v3461_v38 = vpack.c.bf16 %v3325_v47, %v3325_v47  ;;  %v3563_v33 = vld [vmem:[#allocation3 + $0x710] sm:$0xff]  ;;  %v3566_v34 = vld [vmem:[#allocation3 + $0x728] sm:$0xff]  ;;  %v3568_v35 = vld [vmem:[#allocation3 + $0x738] sm:$0xff] }
 0x4d1   :  { %v3462_v51 = vpack.c.bf16 %v3326_v53, %v3326_v53  ;;  %v3567_v42 = vld [vmem:[#allocation3 + $0x730] sm:$0xff]  ;;  %v3570_v43 = vld [vmem:[#allocation3 + $0x748] sm:$0xff]  ;;  %v3572_v44 = vld [vmem:[#allocation3 + $0x758] sm:$0xff] }
 0x4d2   :  { %v3569_v32 = vld [vmem:[#allocation3 + $0x740] sm:$0xff]  ;;  %v3571_v31 = vld [vmem:[#allocation3 + $0x750] sm:$0xff]  ;;  %v3574_v45 = vld [vmem:[#allocation3 + $0x768] sm:$0xff] }
 0x4d3   :  { %3625 = vmatprep.mubr.bf16.mxu1 %v3462_v51  ;;  %3707 = vmatprep.mubr.bf16.mxu0 %v3462_v51  ;;  %v3576_v59 = vld [vmem:[#allocation3 + $0x778] sm:$0xff]  ;;  %v3573_v47 = vld [vmem:[#allocation3 + $0x760] sm:$0xff]  ;;  %v3575_v48 = vld [vmem:[#allocation3 + $0x770] sm:$0xff] }
 0x4d4   :  { %3626 = vmatmul.mubr.bf16.vlgmr.msra.gmra.mrb[48].mxu1 %v3461_v38  ;;  %3708 = vmatmul.mubr.bf16.vlgmr.msra.gmra.mrb[60].mxu0 %v3461_v38  ;;  %v3578_v49 = vld [vmem:[#allocation3 + $0x788] sm:$0xff]  ;;  %v3580_v53 = vld [vmem:[#allocation3 + $0x798] sm:$0xff]  ;;  %v3577_v51 = vld [vmem:[#allocation3 + $0x780] sm:$0xff] }
 0x4d5   :  { %3635 = vmatpush1.bf16.msra.mxu1 %v3529_v37  ;;  %3717 = vmatpush1.bf16.msra.mxu0 %v3531_v56  ;;  %v3579_v38 = vld [vmem:[#allocation3 + $0x790] sm:$0xff]  ;;  %v3582_v37 = vld [vmem:[#allocation3 + $0x7a8] sm:$0xff]  ;;  %v3584_v56 = vld [vmem:[#allocation3 + $0x7b8] sm:$0xff] }
 0x4d6   :  { %3636 = vmatprep.subr.bf16.mxu1 %v3534_v62  ;;  %3718 = vmatprep.subr.bf16.mxu0 %v3536_v63  ;;  %v3581_v62 = vld [vmem:[#allocation3 + $0x7a0] sm:$0xff]  ;;  %v3583_v63 = vld [vmem:[#allocation3 + $0x7b0] sm:$0xff] }
 0x4d9   :  { %3637 = vmatpush1.bf16.msra.mxu1 %v3533_v0  ;;  %3719 = vmatpush1.bf16.msra.mxu0 %v3535_v1  ;;  %v3586_v0 = vld [vmem:[#allocation3 + $0x7c8] sm:$0xff]  ;;  %v3588_v1 = vld [vmem:[#allocation3 + $0x7d8] sm:$0xff] }
 0x4da   :  { %3638 = vmatprep.subr.bf16.mxu1 %v3538_v2  ;;  %3720 = vmatprep.subr.bf16.mxu0 %v3540_v40  ;;  %v3585_v2 = vld [vmem:[#allocation3 + $0x7c0] sm:$0xff]  ;;  %v3587_v40 = vld [vmem:[#allocation3 + $0x7d0] sm:$0xff] }
 0x4dd   :  { %3639 = vmatpush1.bf16.msra.mxu1 %v3537_v3  ;;  %3721 = vmatpush1.bf16.msra.mxu0 %v3539_v39  ;;  %v3590_v39 = vld [vmem:[#allocation3 + $0x7e8] sm:$0xff] }
 0x4de   :  { %3640 = vmatprep.subr.bf16.mxu1 %v3542_v5  ;;  %3722 = vmatprep.subr.bf16.mxu0 %v3544_v7  ;;  %v3592_v5 = vld [vmem:[#allocation3 + $0x7f8] sm:$0xff] }
 0x4e1   :  { %3641 = vmatpush1.bf16.msra.mxu1 %v3541_v8  ;;  %3723 = vmatpush1.bf16.msra.mxu0 %v3543_v9 }
 0x4e2   :  { %3642 = vmatprep.subr.bf16.mxu1 %v3546_v10  ;;  %3724 = vmatprep.subr.bf16.mxu0 %v3548_v57 }
 0x4e5   :  { %3643 = vmatpush1.bf16.msra.mxu1 %v3545_v6  ;;  %3725 = vmatpush1.bf16.msra.mxu0 %v3547_v58 }
 0x4e6   :  { %3644 = vmatprep.subr.bf16.mxu1 %v3550_v4  ;;  %3726 = vmatprep.subr.bf16.mxu0 %v3552_v11 }
 0x4e9   :  { %3645 = vmatpush1.bf16.msra.mxu1 %v3549_v12  ;;  %3727 = vmatpush1.bf16.msra.mxu0 %v3551_v13  ;;  %v3589_v12 = vld [vmem:[#allocation3 + $0x7e0] sm:$0xff]  ;;  %v3334_v13 = vld [vmem:[#allocation3 + $0x8] sm:$0xff] }
 0x4ea   :  { %3646 = vmatprep.subr.bf16.mxu1 %v3554_v18  ;;  %3728 = vmatprep.subr.bf16.mxu0 %v3556_v19  ;;  %v3216_v21 = vpop.f32.mrb[52].mxu0 }
 0x4eb   :  { %v6125_v25 = vmul.f32 %v3216_v21, %v6114_v50  ;;  %v6128_v14 = vmul.f32 %v3216_v21, %v6116_v52  ;;  %v3218_v24 = vpop.f32.mrb[53].mxu0  ;;  %v3330_v21 = vpack.c.bf16 %v6118_v46, %v6118_v46  ;;  %v3348_v46 = vld [vmem:[#allocation3 + $0x78] sm:$0xff] }
 0x4ec   :  { %v6131_v15 = vmul.f32 %v3218_v24, %v6120_v54  ;;  %v6134_v23 = vmul.f32 %v3218_v24, %v6122_v55  ;;  %v3220_v26 = vpop.f32.mrb[54].mxu0  ;;  %v3342_v24 = vld [vmem:[#allocation3 + $0x48] sm:$0xff] }
 0x4ed   :  { %3647 = vmatpush1.bf16.msra.mxu1 %v3553_v61  ;;  %3729 = vmatpush1.bf16.msra.mxu0 %v3555_v41  ;;  %v3221_v27 = vpop.f32.mrb[55].mxu0  ;;  %v3333_v61 = vld [vmem:[#allocation3] sm:$0xff]  ;;  %v3335_v41 = vld [vmem:[#allocation3 + $0x10] sm:$0xff] }
 0x4ee   :  { %3648 = vmatprep.subr.bf16.mxu1 %v3558_v60  ;;  %3730 = vmatprep.subr.bf16.mxu0 %v3560_v22  ;;  %v3338_v60 = vld [vmem:[#allocation3 + $0x28] sm:$0xff]  ;;  %v3340_v22 = vld [vmem:[#allocation3 + $0x38] sm:$0xff]  ;;  %v3343_v26 = vld [vmem:[#allocation3 + $0x50] sm:$0xff] }
 0x4ef   :  { %v3346_v27 = vld [vmem:[#allocation3 + $0x68] sm:$0xff] }
 0x4f1   :  { %3649 = vmatpush1.bf16.msra.mxu1 %v3557_v28  ;;  %3731 = vmatpush1.bf16.msra.mxu0 %v3559_v20  ;;  %v3345_v28 = vld [vmem:[#allocation3 + $0x60] sm:$0xff]  ;;  %v3347_v20 = vld [vmem:[#allocation3 + $0x70] sm:$0xff] }
 0x4f2   :  { %3650 = vmatprep.subr.bf16.mxu1 %v3562_v29  ;;  %3732 = vmatprep.subr.bf16.mxu0 %v3564_v17  ;;  %v3350_v29 = vld [vmem:[#allocation3 + $0x88] sm:$0xff]  ;;  %v3352_v17 = vld [vmem:[#allocation3 + $0x98] sm:$0xff] }
 0x4f5   :  { %3651 = vmatpush1.bf16.msra.mxu1 %v3561_v30  ;;  %3733 = vmatpush1.bf16.msra.mxu0 %v3563_v33  ;;  %v3349_v30 = vld [vmem:[#allocation3 + $0x80] sm:$0xff]  ;;  %v3351_v33 = vld [vmem:[#allocation3 + $0x90] sm:$0xff] }
 0x4f6   :  { %3652 = vmatprep.subr.bf16.mxu1 %v3566_v34  ;;  %3734 = vmatprep.subr.bf16.mxu0 %v3568_v35  ;;  %v3354_v34 = vld [vmem:[#allocation3 + $0xa8] sm:$0xff]  ;;  %v3356_v35 = vld [vmem:[#allocation3 + $0xb8] sm:$0xff] }
 0x4f9   :  { %3653 = vmatpush1.bf16.msra.mxu1 %v3565_v36  ;;  %3735 = vmatpush1.bf16.msra.mxu0 %v3567_v42  ;;  %v3353_v36 = vld [vmem:[#allocation3 + $0xa0] sm:$0xff]  ;;  %v3355_v42 = vld [vmem:[#allocation3 + $0xb0] sm:$0xff] }
 0x4fa   :  { %3654 = vmatprep.subr.bf16.mxu1 %v3570_v43  ;;  %3736 = vmatprep.subr.bf16.mxu0 %v3572_v44  ;;  %v3358_v43 = vld [vmem:[#allocation3 + $0xc8] sm:$0xff]  ;;  %v3360_v44 = vld [vmem:[#allocation3 + $0xd8] sm:$0xff] }
 0x4fd   :  { %3655 = vmatpush1.bf16.msra.mxu1 %v3569_v32  ;;  %3737 = vmatpush1.bf16.msra.mxu0 %v3571_v31  ;;  %v3357_v32 = vld [vmem:[#allocation3 + $0xc0] sm:$0xff]  ;;  %v3359_v31 = vld [vmem:[#allocation3 + $0xd0] sm:$0xff] }
 0x4fe   :  { %3656 = vmatprep.subr.bf16.mxu1 %v3574_v45  ;;  %3738 = vmatprep.subr.bf16.mxu0 %v3576_v59  ;;  %v3362_v45 = vld [vmem:[#allocation3 + $0xe8] sm:$0xff]  ;;  %v3364_v59 = vld [vmem:[#allocation3 + $0xf8] sm:$0xff] }
 0x501   :  { %3657 = vmatpush1.bf16.msra.mxu1 %v3573_v47  ;;  %3739 = vmatpush1.bf16.msra.mxu0 %v3575_v48  ;;  %v3361_v47 = vld [vmem:[#allocation3 + $0xe0] sm:$0xff]  ;;  %v3363_v48 = vld [vmem:[#allocation3 + $0xf0] sm:$0xff] }
 0x502   :  { %3658 = vmatprep.subr.bf16.mxu1 %v3578_v49  ;;  %3740 = vmatprep.subr.bf16.mxu0 %v3580_v53  ;;  %v3366_v49 = vld [vmem:[#allocation3 + $0x108] sm:$0xff]  ;;  %v3368_v53 = vld [vmem:[#allocation3 + $0x118] sm:$0xff] }
 0x505   :  { %3659 = vmatpush1.bf16.msra.mxu1 %v3577_v51  ;;  %3741 = vmatpush1.bf16.msra.mxu0 %v3579_v38  ;;  %v3365_v51 = vld [vmem:[#allocation3 + $0x100] sm:$0xff]  ;;  %v3367_v38 = vld [vmem:[#allocation3 + $0x110] sm:$0xff] }
 0x506   :  { %3660 = vmatprep.subr.bf16.mxu1 %v3582_v37  ;;  %3742 = vmatprep.subr.bf16.mxu0 %v3584_v56  ;;  %v3370_v37 = vld [vmem:[#allocation3 + $0x128] sm:$0xff]  ;;  %v3372_v56 = vld [vmem:[#allocation3 + $0x138] sm:$0xff] }
 0x509   :  { %3661 = vmatpush1.bf16.msra.mxu1 %v3581_v62  ;;  %3743 = vmatpush1.bf16.msra.mxu0 %v3583_v63  ;;  %v3369_v62 = vld [vmem:[#allocation3 + $0x120] sm:$0xff]  ;;  %v3371_v63 = vld [vmem:[#allocation3 + $0x130] sm:$0xff] }
 0x50a   :  { %3662 = vmatprep.subr.bf16.mxu1 %v3586_v0  ;;  %3744 = vmatprep.subr.bf16.mxu0 %v3588_v1  ;;  %v3298_v3 = vpop.f32.mrb[56].mxu0  ;;  %v3374_v0 = vld [vmem:[#allocation3 + $0x148] sm:$0xff]  ;;  %v3376_v1 = vld [vmem:[#allocation3 + $0x158] sm:$0xff] }
 0x50b   :  { %v3311_v7 = vmul.f32 %v3298_v3, %v6116_v52  ;;  %v3319_v8 = vmul.f32 %v3298_v3, %v6114_v50  ;;  %v3300_v9 = vpop.f32.mrb[57].mxu0  ;;  %v3591_v52 = vld [vmem:[#allocation3 + $0x7f0] sm:$0xff]  ;;  %v3378_v3 = vld [vmem:[#allocation3 + $0x168] sm:$0xff] }
 0x50c   :  { %v3312_v10 = vmul.f32 %v3300_v9, %v6122_v55  ;;  %v3320_v57 = vmul.f32 %v3300_v9, %v6120_v54  ;;  %v3302_v6 = vpop.f32.mrb[58].mxu0  ;;  %v3336_v54 = vld [vmem:[#allocation3 + $0x18] sm:$0xff] }
 0x50d   :  { %3663 = vmatpush1.bf16.msra.mxu1 %v3585_v2  ;;  %3745 = vmatpush1.bf16.msra.mxu0 %v3587_v40  ;;  %v6141_v58 = vsub.f32 %v6125_v25, %v3311_v7  ;;  %v3327_v4 = vadd.f32 %v6128_v14, %v3319_v8  ;;  %v3303_v11 = vpop.f32.mrb[59].mxu0  ;;  %v3337_v25 = vld [vmem:[#allocation3 + $0x20] sm:$0xff]  ;;  %v3339_v14 = vld [vmem:[#allocation3 + $0x30] sm:$0xff]  ;;  %v3382_v8 = vld [vmem:[#allocation3 + $0x188] sm:$0xff] }
 0x50e   :  { %3664 = vmatprep.subr.bf16.mxu1 %v3590_v39  ;;  %3746 = vmatprep.subr.bf16.mxu0 %v3592_v5  ;;  %v6145_v50 = vsub.f32 %v6131_v15, %v3312_v10  ;;  %v3328_v55 = vadd.f32 %v6134_v23, %v3320_v57  ;;  %v3344_v15 = vld [vmem:[#allocation3 + $0x58] sm:$0xff]  ;;  %v3341_v23 = vld [vmem:[#allocation3 + $0x40] sm:$0xff]  ;;  %v3375_v40 = vld [vmem:[#allocation3 + $0x150] sm:$0xff] }
 0x50f   :  { %v3463_v19 = vpack.c.bf16 %v3327_v4, %v3327_v4  ;;  %v3373_v2 = vld [vmem:[#allocation3 + $0x140] sm:$0xff]  ;;  %v3380_v39 = vld [vmem:[#allocation3 + $0x178] sm:$0xff]  ;;  %v3379_v7 = vld [vmem:[#allocation3 + $0x170] sm:$0xff] }
 0x510   :  { %v3464_v18 = vpack.c.bf16 %v3328_v55, %v3328_v55  ;;  %v3377_v5 = vld [vmem:[#allocation3 + $0x160] sm:$0xff]  ;;  %v3384_v9 = vld [vmem:[#allocation3 + $0x198] sm:$0xff]  ;;  %v3383_v57 = vld [vmem:[#allocation3 + $0x190] sm:$0xff] }
 0x511   :  { %3665 = vmatpush1.bf16.msra.mxu1 %v3589_v12  ;;  %3747 = vmatpush1.bf16.msra.mxu0 %v3591_v52  ;;  %v3381_v10 = vld [vmem:[#allocation3 + $0x180] sm:$0xff]  ;;  %v3386_v6 = vld [vmem:[#allocation3 + $0x1a8] sm:$0xff]  ;;  %v3388_v4 = vld [vmem:[#allocation3 + $0x1b8] sm:$0xff] }
 0x512   :  { %3757 = vmatprep.subr.bf16.mxu1 %v3334_v13  ;;  %3839 = vmatprep.subr.bf16.mxu0 %v3336_v54  ;;  %v3385_v11 = vld [vmem:[#allocation3 + $0x1a0] sm:$0xff]  ;;  %v3387_v12 = vld [vmem:[#allocation3 + $0x1b0] sm:$0xff]  ;;  %v3390_v52 = vld [vmem:[#allocation3 + $0x1c8] sm:$0xff] }
 0x513   :  { %3666 = vmatprep.mubr.bf16.mxu1 %v3464_v18  ;;  %3748 = vmatprep.mubr.bf16.mxu0 %v3464_v18  ;;  %v3392_v55 = vld [vmem:[#allocation3 + $0x1d8] sm:$0xff]  ;;  %v3389_v13 = vld [vmem:[#allocation3 + $0x1c0] sm:$0xff]  ;;  %v3391_v54 = vld [vmem:[#allocation3 + $0x1d0] sm:$0xff] }
 0x514   :  { %3667 = vmatmul.mubr.bf16.vlgmr.msra.gmra.mrb[48].mxu1 %v3463_v19  ;;  %3749 = vmatmul.mubr.bf16.vlgmr.msra.gmra.mrb[60].mxu0 %v3463_v19  ;;  %v3394_v18 = vld [vmem:[#allocation3 + $0x1e8] sm:$0xff]  ;;  %v3396_v19 = vld [vmem:[#allocation3 + $0x1f8] sm:$0xff] }
 0x515   :  { %3758 = vmatpush1.bf16.msra.mxu1 %v3333_v61  ;;  %3840 = vmatpush1.bf16.msra.mxu0 %v3335_v41  ;;  %v3393_v61 = vld [vmem:[#allocation3 + $0x1e0] sm:$0xff]  ;;  %v3395_v41 = vld [vmem:[#allocation3 + $0x1f0] sm:$0xff] }
 0x516   :  { %3789 = vmatprep.mubr.bf16.mxu1 %v3330_v21  ;;  %3871 = vmatprep.mubr.bf16.mxu0 %v3330_v21  ;;  %v3398_v21 = vld [vmem:[#allocation3 + $0x208] sm:$0xff] }
 0x517   :  { %3759 = vmatprep.subr.bf16.mxu1 %v3338_v60  ;;  %3841 = vmatprep.subr.bf16.mxu0 %v3340_v22  ;;  %v3400_v60 = vld [vmem:[#allocation3 + $0x218] sm:$0xff]  ;;  %v3329_v22 = vpack.c.bf16 %v6112_v16, %v6112_v16  ;;  %v3406_v16 = vld [vmem:[#allocation3 + $0x248] sm:$0xff] }
 0x519   :  { %3760 = vmatpush1.bf16.msra.mxu1 %v3337_v25  ;;  %3842 = vmatpush1.bf16.msra.mxu0 %v3339_v14  ;;  %v3397_v25 = vld [vmem:[#allocation3 + $0x200] sm:$0xff]  ;;  %v3332_v14 = vpack.c.bf16 %v6145_v50, %v6145_v50  ;;  %v3407_v50 = vld [vmem:[#allocation3 + $0x250] sm:$0xff] }
 0x51a   :  { %3761 = vmatprep.subr.bf16.mxu1 %v3342_v24  ;;  %3843 = vmatprep.subr.bf16.mxu0 %v3344_v15  ;;  %v3399_v24 = vld [vmem:[#allocation3 + $0x210] sm:$0xff]  ;;  %v3402_v15 = vld [vmem:[#allocation3 + $0x228] sm:$0xff] }
 0x51d   :  { %3762 = vmatpush1.bf16.msra.mxu1 %v3341_v23  ;;  %3844 = vmatpush1.bf16.msra.mxu0 %v3343_v26  ;;  %v3404_v23 = vld [vmem:[#allocation3 + $0x238] sm:$0xff]  ;;  %v3401_v26 = vld [vmem:[#allocation3 + $0x220] sm:$0xff] }
 0x51e   :  { %3763 = vmatprep.subr.bf16.mxu1 %v3346_v27  ;;  %3845 = vmatprep.subr.bf16.mxu0 %v3348_v46  ;;  %v3403_v27 = vld [vmem:[#allocation3 + $0x230] sm:$0xff]  ;;  %v3408_v46 = vld [vmem:[#allocation3 + $0x258] sm:$0xff] }
 0x521   :  { %3764 = vmatpush1.bf16.msra.mxu1 %v3345_v28  ;;  %3846 = vmatpush1.bf16.msra.mxu0 %v3347_v20  ;;  %v3405_v28 = vld [vmem:[#allocation3 + $0x240] sm:$0xff]  ;;  %v3410_v20 = vld [vmem:[#allocation3 + $0x268] sm:$0xff] }
 0x522   :  { %3765 = vmatprep.subr.bf16.mxu1 %v3350_v29  ;;  %3847 = vmatprep.subr.bf16.mxu0 %v3352_v17  ;;  %v3412_v29 = vld [vmem:[#allocation3 + $0x278] sm:$0xff]  ;;  %v3409_v17 = vld [vmem:[#allocation3 + $0x260] sm:$0xff] }
 0x525   :  { %3766 = vmatpush1.bf16.msra.mxu1 %v3349_v30  ;;  %3848 = vmatpush1.bf16.msra.mxu0 %v3351_v33  ;;  %v3411_v30 = vld [vmem:[#allocation3 + $0x270] sm:$0xff]  ;;  %v3414_v33 = vld [vmem:[#allocation3 + $0x288] sm:$0xff] }
 0x526   :  { %3767 = vmatprep.subr.bf16.mxu1 %v3354_v34  ;;  %3849 = vmatprep.subr.bf16.mxu0 %v3356_v35  ;;  %v3416_v34 = vld [vmem:[#allocation3 + $0x298] sm:$0xff]  ;;  %v3413_v35 = vld [vmem:[#allocation3 + $0x280] sm:$0xff] }
 0x529   :  { %3768 = vmatpush1.bf16.msra.mxu1 %v3353_v36  ;;  %3850 = vmatpush1.bf16.msra.mxu0 %v3355_v42  ;;  %v3415_v36 = vld [vmem:[#allocation3 + $0x290] sm:$0xff]  ;;  %v3418_v42 = vld [vmem:[#allocation3 + $0x2a8] sm:$0xff] }
 0x52a   :  { %3769 = vmatprep.subr.bf16.mxu1 %v3358_v43  ;;  %3851 = vmatprep.subr.bf16.mxu0 %v3360_v44  ;;  %v3420_v43 = vld [vmem:[#allocation3 + $0x2b8] sm:$0xff]  ;;  %v3417_v44 = vld [vmem:[#allocation3 + $0x2a0] sm:$0xff] }
 0x52d   :  { %3770 = vmatpush1.bf16.msra.mxu1 %v3357_v32  ;;  %3852 = vmatpush1.bf16.msra.mxu0 %v3359_v31  ;;  %v3419_v32 = vld [vmem:[#allocation3 + $0x2b0] sm:$0xff]  ;;  %v3422_v31 = vld [vmem:[#allocation3 + $0x2c8] sm:$0xff] }
 0x52e   :  { %3771 = vmatprep.subr.bf16.mxu1 %v3362_v45  ;;  %3853 = vmatprep.subr.bf16.mxu0 %v3364_v59  ;;  %v3424_v45 = vld [vmem:[#allocation3 + $0x2d8] sm:$0xff]  ;;  %v3421_v59 = vld [vmem:[#allocation3 + $0x2c0] sm:$0xff] }
 0x531   :  { %3772 = vmatpush1.bf16.msra.mxu1 %v3361_v47  ;;  %3854 = vmatpush1.bf16.msra.mxu0 %v3363_v48  ;;  %v3423_v47 = vld [vmem:[#allocation3 + $0x2d0] sm:$0xff]  ;;  %v3426_v48 = vld [vmem:[#allocation3 + $0x2e8] sm:$0xff] }
 0x532   :  { %3773 = vmatprep.subr.bf16.mxu1 %v3366_v49  ;;  %3855 = vmatprep.subr.bf16.mxu0 %v3368_v53  ;;  %v3428_v49 = vld [vmem:[#allocation3 + $0x2f8] sm:$0xff]  ;;  %v3425_v53 = vld [vmem:[#allocation3 + $0x2e0] sm:$0xff] }
 0x535   :  { %3774 = vmatpush1.bf16.msra.mxu1 %v3365_v51  ;;  %3856 = vmatpush1.bf16.msra.mxu0 %v3367_v38  ;;  %v3427_v51 = vld [vmem:[#allocation3 + $0x2f0] sm:$0xff]  ;;  %v3430_v38 = vld [vmem:[#allocation3 + $0x308] sm:$0xff] }
 0x536   :  { %3775 = vmatprep.subr.bf16.mxu1 %v3370_v37  ;;  %3857 = vmatprep.subr.bf16.mxu0 %v3372_v56  ;;  %v3432_v37 = vld [vmem:[#allocation3 + $0x318] sm:$0xff]  ;;  %v3429_v56 = vld [vmem:[#allocation3 + $0x300] sm:$0xff] }
 0x539   :  { %3776 = vmatpush1.bf16.msra.mxu1 %v3369_v62  ;;  %3858 = vmatpush1.bf16.msra.mxu0 %v3371_v63  ;;  %v3431_v62 = vld [vmem:[#allocation3 + $0x310] sm:$0xff]  ;;  %v3434_v63 = vld [vmem:[#allocation3 + $0x328] sm:$0xff] }
 0x53a   :  { %3777 = vmatprep.subr.bf16.mxu1 %v3374_v0  ;;  %3859 = vmatprep.subr.bf16.mxu0 %v3376_v1  ;;  %v3436_v0 = vld [vmem:[#allocation3 + $0x338] sm:$0xff]  ;;  %v3433_v1 = vld [vmem:[#allocation3 + $0x320] sm:$0xff] }
 0x53d   :  { %3778 = vmatpush1.bf16.msra.mxu1 %v3373_v2  ;;  %3860 = vmatpush1.bf16.msra.mxu0 %v3375_v40  ;;  %v3435_v2 = vld [vmem:[#allocation3 + $0x330] sm:$0xff]  ;;  %v3438_v40 = vld [vmem:[#allocation3 + $0x348] sm:$0xff] }
 0x53e   :  { %3779 = vmatprep.subr.bf16.mxu1 %v3378_v3  ;;  %3861 = vmatprep.subr.bf16.mxu0 %v3380_v39  ;;  %v3440_v3 = vld [vmem:[#allocation3 + $0x358] sm:$0xff]  ;;  %v3437_v39 = vld [vmem:[#allocation3 + $0x340] sm:$0xff] }
 0x541   :  { %3780 = vmatpush1.bf16.msra.mxu1 %v3377_v5  ;;  %3862 = vmatpush1.bf16.msra.mxu0 %v3379_v7  ;;  %v3439_v5 = vld [vmem:[#allocation3 + $0x350] sm:$0xff]  ;;  %v3442_v7 = vld [vmem:[#allocation3 + $0x368] sm:$0xff] }
 0x542   :  { %3781 = vmatprep.subr.bf16.mxu1 %v3382_v8  ;;  %3863 = vmatprep.subr.bf16.mxu0 %v3384_v9  ;;  %v3444_v8 = vld [vmem:[#allocation3 + $0x378] sm:$0xff]  ;;  %v3441_v9 = vld [vmem:[#allocation3 + $0x360] sm:$0xff] }
 0x545   :  { %3782 = vmatpush1.bf16.msra.mxu1 %v3381_v10  ;;  %3864 = vmatpush1.bf16.msra.mxu0 %v3383_v57  ;;  %v3443_v10 = vld [vmem:[#allocation3 + $0x370] sm:$0xff]  ;;  %v3446_v57 = vld [vmem:[#allocation3 + $0x388] sm:$0xff] }
 0x546   :  { %3783 = vmatprep.subr.bf16.mxu1 %v3386_v6  ;;  %3865 = vmatprep.subr.bf16.mxu0 %v3388_v4  ;;  %v3448_v6 = vld [vmem:[#allocation3 + $0x398] sm:$0xff]  ;;  %v3445_v4 = vld [vmem:[#allocation3 + $0x380] sm:$0xff] }
 0x549   :  { %3784 = vmatpush1.bf16.msra.mxu1 %v3385_v11  ;;  %3866 = vmatpush1.bf16.msra.mxu0 %v3387_v12  ;;  %v3447_v11 = vld [vmem:[#allocation3 + $0x390] sm:$0xff]  ;;  %v3450_v12 = vld [vmem:[#allocation3 + $0x3a8] sm:$0xff] }
 0x54a   :  { %3785 = vmatprep.subr.bf16.mxu1 %v3390_v52  ;;  %3867 = vmatprep.subr.bf16.mxu0 %v3392_v55  ;;  %v3452_v52 = vld [vmem:[#allocation3 + $0x3b8] sm:$0xff]  ;;  %v3449_v55 = vld [vmem:[#allocation3 + $0x3a0] sm:$0xff] }
 0x54d   :  { %3786 = vmatpush1.bf16.msra.mxu1 %v3389_v13  ;;  %3868 = vmatpush1.bf16.msra.mxu0 %v3391_v54  ;;  %v3451_v13 = vld [vmem:[#allocation3 + $0x3b0] sm:$0xff]  ;;  %v3454_v54 = vld [vmem:[#allocation3 + $0x3c8] sm:$0xff] }
 0x54e   :  { %3787 = vmatprep.subr.bf16.mxu1 %v3394_v18  ;;  %3869 = vmatprep.subr.bf16.mxu0 %v3396_v19  ;;  %v3456_v18 = vld [vmem:[#allocation3 + $0x3d8] sm:$0xff]  ;;  %v3453_v19 = vld [vmem:[#allocation3 + $0x3c0] sm:$0xff] }
 0x551   :  { %3788 = vmatpush1.bf16.msra.mxu1 %v3393_v61  ;;  %3870 = vmatpush1.bf16.msra.mxu0 %v3395_v41  ;;  %v3455_v61 = vld [vmem:[#allocation3 + $0x3d0] sm:$0xff]  ;;  %v3458_v41 = vld [vmem:[#allocation3 + $0x3e8] sm:$0xff] }
 0x552   :  { %3798 = vmatprep.subr.bf16.mxu1 %v3398_v21  ;;  %3880 = vmatprep.subr.bf16.mxu0 %v3400_v60  ;;  %v3953_v21 = vld [vmem:[%s6368_s5 + $0x80] sm:$0xff]  ;;  %v3954_v60 = vld [vmem:[%s6368_s5 + $0x88] sm:$0xff] }
 0x554   :  { %3790 = vmatmul.mubr.bf16.vlgmr.msra.gmra.mrb[48].mxu1 %v3329_v22  ;;  %3872 = vmatmul.mubr.bf16.vlgmr.msra.gmra.mrb[60].mxu0 %v3329_v22  ;;  %v3460_v22 = vld [vmem:[#allocation3 + $0x3f8] sm:$0xff] }
 0x555   :  { %3799 = vmatpush1.bf16.msra.mxu1 %v3397_v25  ;;  %3830 = vmatprep.mubr.bf16.mxu1 %v3332_v14  ;;  %v3985_v25 = vld [vmem:[%s6368_s5 + $0x180] sm:$0xff] }
 0x556   :  { %3881 = vmatpush1.bf16.msra.mxu0 %v3399_v24  ;;  %3912 = vmatprep.mubr.bf16.mxu0 %v3332_v14  ;;  %v3986_v14 = vld [vmem:[%s6368_s5 + $0x188] sm:$0xff]  ;;  %v3457_v24 = vld [vmem:[#allocation3 + $0x3e0] sm:$0xff] }
 0x557   :  { %3800 = vmatprep.subr.bf16.mxu1 %v3402_v15  ;;  %3882 = vmatprep.subr.bf16.mxu0 %v3404_v23  ;;  %v3459_v15 = vld [vmem:[#allocation3 + $0x3f0] sm:$0xff]  ;;  %v4417_v23 = vpack.c.bf16 %v3954_v60, %v3953_v21  ;;  %v3963_v21 = vld [vmem:[%s6368_s5 + $0xd0] sm:$0xff]  ;;  %v3964_v60 = vld [vmem:[%s6368_s5 + $0xd8] sm:$0xff] }
 0x559   :  { %3801 = vmatpush1.bf16.msra.mxu1 %v3401_v26  ;;  %v3937_v26 = vld [vmem:[%s6368_s5] sm:$0xff] }
 0x55a   :  { %3883 = vmatpush1.bf16.msra.mxu0 %v3403_v27  ;;  %3802 = vmatprep.subr.bf16.mxu1 %v3406_v16  ;;  %v3938_v27 = vld [vmem:[%s6368_s5 + $0x8] sm:$0xff]  ;;  %v3969_v16 = vld [vmem:[%s6368_s5 + $0x100] sm:$0xff] }
 0x55b   :  { %3884 = vmatprep.subr.bf16.mxu0 %v3408_v46  ;;  %v4449_v46 = vpack.c.bf16 %v3986_v14, %v3985_v25  ;;  %v4437_v25 = vpack.c.bf16 %v3964_v60, %v3963_v21  ;;  %v3996_v14 = vld [vmem:[%s6368_s5 + $0x1d8] sm:$0xff] }
 0x55d   :  { %3803 = vmatpush1.bf16.msra.mxu1 %v3405_v28  ;;  %v3970_v28 = vld [vmem:[%s6368_s5 + $0x108] sm:$0xff] }
 0x55e   :  { %3885 = vmatpush1.bf16.msra.mxu0 %v3407_v50  ;;  %3804 = vmatprep.subr.bf16.mxu1 %v3410_v20  ;;  %v3955_v50 = vld [vmem:[%s6368_s5 + $0x90] sm:$0xff]  ;;  %v3956_v20 = vld [vmem:[%s6368_s5 + $0x98] sm:$0xff] }
 0x55f   :  { %3886 = vmatprep.subr.bf16.mxu0 %v3412_v29  ;;  %v3987_v29 = vld [vmem:[%s6368_s5 + $0x190] sm:$0xff] }
 0x561   :  { %3805 = vmatpush1.bf16.msra.mxu1 %v3409_v17  ;;  %v3988_v17 = vld [vmem:[%s6368_s5 + $0x198] sm:$0xff] }
 0x562   :  { %3887 = vmatpush1.bf16.msra.mxu0 %v3411_v30  ;;  %3806 = vmatprep.subr.bf16.mxu1 %v3414_v33  ;;  %v4419_v30 = vpack.c.bf16 %v3938_v27, %v3937_v26  ;;  %v3331_v33 = vpack.c.bf16 %v6141_v58, %v6141_v58  ;;  %v3972_v58 = vld [vmem:[%s6368_s5 + $0x118] sm:$0xff]  ;;  %v3979_v27 = vld [vmem:[%s6368_s5 + $0x150] sm:$0xff] }
 0x563   :  { %3888 = vmatprep.subr.bf16.mxu0 %v3416_v34  ;;  %v4451_v34 = vpack.c.bf16 %v3970_v28, %v3969_v16  ;;  %v3980_v16 = vld [vmem:[%s6368_s5 + $0x158] sm:$0xff]  ;;  %v3965_v28 = vld [vmem:[%s6368_s5 + $0xe0] sm:$0xff] }
 0x565   :  { %3807 = vmatpush1.bf16.msra.mxu1 %v3413_v35  ;;  %v4421_v35 = vpack.c.bf16 %v3956_v20, %v3955_v50  ;;  %v3966_v50 = vld [vmem:[%s6368_s5 + $0xe8] sm:$0xff]  ;;  %v3997_v20 = vld [vmem:[%s6368_s5 + $0x1e0] sm:$0xff] }
 0x566   :  { %3889 = vmatpush1.bf16.msra.mxu0 %v3415_v36  ;;  %3808 = vmatprep.subr.bf16.mxu1 %v3418_v42  ;;  %v3939_v36 = vld [vmem:[%s6368_s5 + $0x10] sm:$0xff]  ;;  %v3940_v42 = vld [vmem:[%s6368_s5 + $0x18] sm:$0xff] }
 0x567   :  { %3890 = vmatprep.subr.bf16.mxu0 %v3420_v43  ;;  %v3971_v43 = vld [vmem:[%s6368_s5 + $0x110] sm:$0xff] }
 0x569   :  { %3809 = vmatpush1.bf16.msra.mxu1 %v3417_v44  ;;  %v4453_v44 = vpack.c.bf16 %v3988_v17, %v3987_v29  ;;  %v4441_v29 = vpack.c.bf16 %v3966_v50, %v3965_v28  ;;  %v3998_v17 = vld [vmem:[%s6368_s5 + $0x1e8] sm:$0xff] }
 0x56a   :  { %3891 = vmatpush1.bf16.msra.mxu0 %v3419_v32  ;;  %3810 = vmatprep.subr.bf16.mxu1 %v3422_v31  ;;  %v3957_v32 = vld [vmem:[%s6368_s5 + $0xa0] sm:$0xff]  ;;  %v3958_v31 = vld [vmem:[%s6368_s5 + $0xa8] sm:$0xff] }
 0x56b   :  { %3892 = vmatprep.subr.bf16.mxu0 %v3424_v45  ;;  %v3989_v45 = vld [vmem:[%s6368_s5 + $0x1a0] sm:$0xff] }
 0x56d   :  { %3811 = vmatpush1.bf16.msra.mxu1 %v3421_v59  ;;  %v3990_v59 = vld [vmem:[%s6368_s5 + $0x1a8] sm:$0xff] }
 0x56e   :  { %3893 = vmatpush1.bf16.msra.mxu0 %v3423_v47  ;;  %3812 = vmatprep.subr.bf16.mxu1 %v3426_v48  ;;  %v4423_v47 = vpack.c.bf16 %v3940_v42, %v3939_v36  ;;  %v4455_v48 = vpack.c.bf16 %v3972_v58, %v3971_v43  ;;  %v3981_v36 = vld [vmem:[%s6368_s5 + $0x160] sm:$0xff]  ;;  %v3982_v42 = vld [vmem:[%s6368_s5 + $0x168] sm:$0xff]  ;;  %v3967_v43 = vld [vmem:[%s6368_s5 + $0xf0] sm:$0xff] }
 0x56f   :  { %3894 = vmatprep.subr.bf16.mxu0 %v3428_v49  ;;  %v4425_v49 = vpack.c.bf16 %v3958_v31, %v3957_v32  ;;  %v3968_v58 = vld [vmem:[%s6368_s5 + $0xf8] sm:$0xff]  ;;  %v3999_v32 = vld [vmem:[%s6368_s5 + $0x1f0] sm:$0xff] }
 0x570   :  { %v4000_v31 = vld [vmem:[%s6368_s5 + $0x1f8] sm:$0xff] }
 0x571   :  { %3813 = vmatpush1.bf16.msra.mxu1 %v3425_v53  ;;  %v3941_v53 = vld [vmem:[%s6368_s5 + $0x20] sm:$0xff] }
 0x572   :  { %3895 = vmatpush1.bf16.msra.mxu0 %v3427_v51  ;;  %3814 = vmatprep.subr.bf16.mxu1 %v3430_v38  ;;  %v3942_v51 = vld [vmem:[%s6368_s5 + $0x28] sm:$0xff]  ;;  %v3973_v38 = vld [vmem:[%s6368_s5 + $0x120] sm:$0xff] }
 0x573   :  { %3896 = vmatprep.subr.bf16.mxu0 %v3432_v37  ;;  %v4457_v37 = vpack.c.bf16 %v3990_v59, %v3989_v45  ;;  %v4445_v45 = vpack.c.bf16 %v3968_v58, %v3967_v43  ;;  %v4477_v59 = vpack.c.bf16 %v4000_v31, %v3999_v32 }
 0x575   :  { %3815 = vmatpush1.bf16.msra.mxu1 %v3429_v56  ;;  %v3974_v56 = vld [vmem:[%s6368_s5 + $0x128] sm:$0xff] }
 0x576   :  { %3897 = vmatpush1.bf16.msra.mxu0 %v3431_v62  ;;  %3816 = vmatprep.subr.bf16.mxu1 %v3434_v63  ;;  %v3959_v62 = vld [vmem:[%s6368_s5 + $0xb0] sm:$0xff]  ;;  %v3960_v63 = vld [vmem:[%s6368_s5 + $0xb8] sm:$0xff] }
 0x577   :  { %3898 = vmatprep.subr.bf16.mxu0 %v3436_v0  ;;  %v3991_v0 = vld [vmem:[%s6368_s5 + $0x1b0] sm:$0xff] }
 0x579   :  { %3817 = vmatpush1.bf16.msra.mxu1 %v3433_v1  ;;  %v3992_v1 = vld [vmem:[%s6368_s5 + $0x1b8] sm:$0xff] }
 0x57a   :  { %3899 = vmatpush1.bf16.msra.mxu0 %v3435_v2  ;;  %3818 = vmatprep.subr.bf16.mxu1 %v3438_v40  ;;  %v4427_v2 = vpack.c.bf16 %v3942_v51, %v3941_v53  ;;  %v4459_v40 = vpack.c.bf16 %v3974_v56, %v3973_v38  ;;  %v3984_v51 = vld [vmem:[%s6368_s5 + $0x178] sm:$0xff] }
 0x57b   :  { %3900 = vmatprep.subr.bf16.mxu0 %v3440_v3  ;;  %v4429_v3 = vpack.c.bf16 %v3960_v63, %v3959_v62 }
 0x57d   :  { %3819 = vmatpush1.bf16.msra.mxu1 %v3437_v39  ;;  %v3943_v39 = vld [vmem:[%s6368_s5 + $0x30] sm:$0xff] }
 0x57e   :  { %3901 = vmatpush1.bf16.msra.mxu0 %v3439_v5  ;;  %3820 = vmatprep.subr.bf16.mxu1 %v3442_v7  ;;  %v3944_v5 = vld [vmem:[%s6368_s5 + $0x38] sm:$0xff]  ;;  %v4461_v7 = vpack.c.bf16 %v3992_v1, %v3991_v0 }
 0x57f   :  { %3902 = vmatprep.subr.bf16.mxu0 %v3444_v8  ;;  %v3975_v8 = vld [vmem:[%s6368_s5 + $0x130] sm:$0xff] }
 0x581   :  { %3821 = vmatpush1.bf16.msra.mxu1 %v3441_v9  ;;  %v3976_v9 = vld [vmem:[%s6368_s5 + $0x138] sm:$0xff] }
 0x582   :  { %3903 = vmatpush1.bf16.msra.mxu0 %v3443_v10  ;;  %3822 = vmatprep.subr.bf16.mxu1 %v3446_v57  ;;  %v4431_v10 = vpack.c.bf16 %v3944_v5, %v3943_v39  ;;  %v4463_v57 = vpack.c.bf16 %v3976_v9, %v3975_v8 }
 0x583   :  { %3904 = vmatprep.subr.bf16.mxu0 %v3448_v6  ;;  %v3961_v6 = vld [vmem:[%s6368_s5 + $0xc0] sm:$0xff] }
 0x585   :  { %3823 = vmatpush1.bf16.msra.mxu1 %v3445_v4  ;;  %v3962_v4 = vld [vmem:[%s6368_s5 + $0xc8] sm:$0xff] }
 0x586   :  { %3905 = vmatpush1.bf16.msra.mxu0 %v3447_v11  ;;  %3824 = vmatprep.subr.bf16.mxu1 %v3450_v12  ;;  %v3993_v11 = vld [vmem:[%s6368_s5 + $0x1c0] sm:$0xff]  ;;  %v4433_v12 = vpack.c.bf16 %v3962_v4, %v3961_v6 }
 0x587   :  { %3906 = vmatprep.subr.bf16.mxu0 %v3452_v52  ;;  %v3994_v52 = vld [vmem:[%s6368_s5 + $0x1c8] sm:$0xff] }
 0x589   :  { %3825 = vmatpush1.bf16.msra.mxu1 %v3449_v55  ;;  %v3945_v55 = vld [vmem:[%s6368_s5 + $0x40] sm:$0xff] }
 0x58a   :  { %3907 = vmatpush1.bf16.msra.mxu0 %v3451_v13  ;;  %3826 = vmatprep.subr.bf16.mxu1 %v3454_v54  ;;  %v3946_v13 = vld [vmem:[%s6368_s5 + $0x48] sm:$0xff]  ;;  %v4465_v54 = vpack.c.bf16 %v3994_v52, %v3993_v11 }
 0x58b   :  { %3908 = vmatprep.subr.bf16.mxu0 %v3456_v18  ;;  %v4435_v18 = vpack.c.bf16 %v3946_v13, %v3945_v55  ;;  %v4001_v55 = vld [vmem:[%s6369_s6] sm:$0x1] }
 0x58d   :  { %3827 = vmatpush1.bf16.msra.mxu1 %v3453_v19  ;;  %v3977_v19 = vld [vmem:[%s6368_s5 + $0x140] sm:$0xff] }
 0x58e   :  { %3909 = vmatpush1.bf16.msra.mxu0 %v3455_v61  ;;  %3828 = vmatprep.subr.bf16.mxu1 %v3458_v41  ;;  %v3978_v61 = vld [vmem:[%s6368_s5 + $0x148] sm:$0xff] }
 0x58f   :  { %3910 = vmatprep.subr.bf16.mxu0 %v3460_v22  ;;  %v4467_v41 = vpack.c.bf16 %v3978_v61, %v3977_v19  ;;  %v3995_v22 = vld [vmem:[%s6368_s5 + $0x1d0] sm:$0xff] }
 0x591   :  { %3829 = vmatpush1.bf16.msra.mxu1 %v3457_v24  ;;  %v3947_v24 = vld [vmem:[%s6368_s5 + $0x50] sm:$0xff] }
 0x592   :  { %3911 = vmatpush1.bf16.msra.mxu0 %v3459_v15  ;;  %4418 = vmatprep.subr.bf16.mxu1 %v4417_v23  ;;  %v3948_v15 = vld [vmem:[%s6368_s5 + $0x58] sm:$0xff]  ;;  %v4469_v23 = vpack.c.bf16 %v3996_v14, %v3995_v22 }
 0x593   :  { %4450 = vmatprep.subr.bf16.mxu0 %v4449_v46  ;;  %v4439_v26 = vpack.c.bf16 %v3948_v15, %v3947_v24  ;;  %v4471_v46 = vpack.c.bf16 %v3980_v16, %v3979_v27 }
 0x594   :  { %3831 = vmatmul.mubr.bf16.vlgmr.msra.gmra.mrb[48].mxu1 %v3331_v33 }
 0x595   :  { %3913 = vmatmul.mubr.bf16.vlgmr.msra.gmra.mrb[60].mxu0 %v3331_v33  ;;  %4420 = vmatpush3.bf16.msra.mxu1 %v4419_v30  ;;  %v3949_v30 = vld [vmem:[%s6368_s5 + $0x60] sm:$0xff]  ;;  %v3950_v33 = vld [vmem:[%s6368_s5 + $0x68] sm:$0xff] }
 0x596   :  { %4452 = vmatpush3.bf16.msra.mxu0 %v4451_v34  ;;  %4422 = vmatprep.subr.bf16.mxu1 %v4421_v35  ;;  %v4473_v34 = vpack.c.bf16 %v3998_v17, %v3997_v20  ;;  %v4443_v35 = vpack.c.bf16 %v3950_v33, %v3949_v30 }
 0x597   :  { %4454 = vmatprep.subr.bf16.mxu0 %v4453_v44  ;;  %v4475_v44 = vpack.c.bf16 %v3982_v42, %v3981_v36 }
 0x599   :  { %4424 = vmatpush3.bf16.msra.mxu1 %v4423_v47  ;;  %v3951_v47 = vld [vmem:[%s6368_s5 + $0x70] sm:$0xff] }
 0x59a   :  { %4456 = vmatpush3.bf16.msra.mxu0 %v4455_v48  ;;  %4426 = vmatprep.subr.bf16.mxu1 %v4425_v49  ;;  %v3952_v48 = vld [vmem:[%s6368_s5 + $0x78] sm:$0xff]  ;;  %v3983_v49 = vld [vmem:[%s6368_s5 + $0x170] sm:$0xff] }
 0x59b   :  { %4458 = vmatprep.subr.bf16.mxu0 %v4457_v37  ;;  %v4447_v53 = vpack.c.bf16 %v3952_v48, %v3951_v47  ;;  %v4479_v38 = vpack.c.bf16 %v3984_v51, %v3983_v49 }
 0x59d   :  { %4428 = vmatpush3.bf16.msra.mxu1 %v4427_v2 }
 0x59e   :  { %4460 = vmatpush3.bf16.msra.mxu0 %v4459_v40  ;;  %4430 = vmatprep.subr.bf16.mxu1 %v4429_v3 }
 0x59f   :  { %4462 = vmatprep.subr.bf16.mxu0 %v4461_v7 }
 0x5a1   :  { %4432 = vmatpush3.bf16.msra.mxu1 %v4431_v10 }
 0x5a2   :  { %4464 = vmatpush3.bf16.msra.mxu0 %v4463_v57  ;;  %4434 = vmatprep.subr.bf16.mxu1 %v4433_v12 }
 0x5a3   :  { %4466 = vmatprep.subr.bf16.mxu0 %v4465_v54 }
 0x5a5   :  { %4436 = vmatpush3.bf16.msra.mxu1 %v4435_v18 }
 0x5a6   :  { %4468 = vmatpush3.bf16.msra.mxu0 %v4467_v41  ;;  %4438 = vmatprep.subr.bf16.mxu1 %v4437_v25 }
 0x5a7   :  { %4470 = vmatprep.subr.bf16.mxu0 %v4469_v23 }
 0x5a9   :  { %4440 = vmatpush3.bf16.msra.mxu1 %v4439_v26 }
 0x5aa   :  { %4472 = vmatpush3.bf16.msra.mxu0 %v4471_v46  ;;  %4442 = vmatprep.subr.bf16.mxu1 %v4441_v29 }
 0x5ab   :  { %4474 = vmatprep.subr.bf16.mxu0 %v4473_v34 }
 0x5ad   :  { %4444 = vmatpush3.bf16.msra.mxu1 %v4443_v35 }
 0x5ae   :  { %4476 = vmatpush3.bf16.msra.mxu0 %v4475_v44  ;;  %4446 = vmatprep.subr.bf16.mxu1 %v4445_v45 }
 0x5af   :  { %4478 = vmatprep.subr.bf16.mxu0 %v4477_v59 }
 0x5b1   :  { %4448 = vmatpush3.bf16.msra.mxu1 %v4447_v53 }
 0x5b2   :  { %4480 = vmatpush3.bf16.msra.mxu0 %v4479_v38 }
 0x667   :  { %v3832_v37 = vpop.f32.mrb[48].mxu1 }
 0x668   :  { %vm3921_vm1 = vcmp.ge.f32.partialorder %v3832_v37, 0.0  ;;  %v3925_v56 = vmul.f32 0.01, %v3832_v37  ;;  %v3914_v62 = vpop.f32.mrb[60].mxu0  ;;  %v3834_v63 = vpop.f32.mrb[49].mxu1 }
 0x669   :  { %v3927_v0 = vmul.f32 0.01, %v3914_v62  ;;  %vm3922_vm2 = vcmp.ge.f32.partialorder %v3834_v63, 0.0  ;;  %v3926_v1 = vmul.f32 0.01, %v3834_v63  ;;  %vm3923_vm3 = vcmp.ge.f32.partialorder %v3914_v62, 0.0 }
 0x66a   :  { %v3916_v2 = vpop.f32.mrb[61].mxu0  ;;  %v3836_v40 = vpop.f32.mrb[50].mxu1  ;;  %v3929_v3 = vsel %vm3921_vm1, %v3832_v37, %v3925_v56 }
 0x66b   :  { %v3930_v39 = vsel %vm3922_vm2, %v3834_v63, %v3926_v1  ;;  %vm3924_vm4 = vcmp.ge.f32.partialorder %v3916_v2, 0.0  ;;  %v3918_v5 = vpop.f32.mrb[62].mxu0  ;;  %v3837_v7 = vpop.f32.mrb[51].mxu1  ;;  %v3928_v8 = vmul.f32 0.01, %v3916_v2  ;;  %v3931_v10 = vsel %vm3923_vm3, %v3914_v62, %v3927_v0 }
 0x66c   :  { %v3919_v9 = vpop.f32.mrb[63].mxu0  ;;  %4611 = vtanh.f32 %v3930_v39 }
 0x66d   :  { %4613 = vtanh.f32 %v3929_v3  ;;  %v3932_v57 = vsel %vm3924_vm4, %v3916_v2, %v3928_v8 }
 0x66e   :  { %4615 = vtanh.f32 %v3932_v57 }
 0x66f   :  { %4617 = vtanh.f32 %v3931_v10 }
 0x676   :  { %v4612_v6 = vpop.eup %4611 }
 0x677   :  { %v4614_v4 = vpop.eup %4613  ;;  %4066 = vmatprep.mubr.f32.mxu1 %v4612_v6 }
 0x678   :  { %v4616_v11 = vpop.eup %4615  ;;  %4067 = vmatmul.mubr.f32.vlgmr.msra.gmra.mrb[52].mxu1 %v4614_v4 }
 0x679   :  { %v4618_v12 = vpop.eup %4617  ;;  %4136 = vmatprep.mubr.f32.mxu0 %v4616_v11 }
 0x67a   :  { %4137 = vmatmul.mubr.f32.vlgmr.msra.gmra.mrb[64].mxu0 %v4618_v12 }
 0x74b   :  { %v4331_v52 = vpop.f32.mrb[52].mxu1 }
 0x74c   :  { %v4332_v13 = vpop.f32.mrb[53].mxu1 }
 0x74d   :  { %v4366_v54 = vpop.f32.mrb[64].mxu0  ;;  %v4333_v18 = vadd.f32 %v4332_v13, %v4331_v52 }
 0x74e   :  { %v4367_v19 = vpop.f32.mrb[65].mxu0 }
 0x74f   :  { %v4069_v61 = vadd.f32 %v4333_v18, %v4001_v55  ;;  %v4368_v41 = vadd.f32 %v4367_v19, %v4366_v54 }
 0x751   :  { %v4139_v21 = vadd.f32 %v4368_v41, %v4069_v61 }
 0x753   :  { %4143 = vst.msk [vmem:[#allocation8] sm:$0x1] %vm4142_vm5, %v4139_v21 }
 0x754   :  { %4652 = shalt.err (!%p4649_p12)
}
 0x755   :  { %s4653_s17 = scalar_lea.hbm %s6370_s7, 16 }
 0x756   :  { %p4654_p13 = scmp.ne.s32.totalorder %s6370_s7, %s4653_s17  ;;  %p4657_p0 = scmp.lt.u32.totalorder %s4653_s17, %s6370_s7 }
 0x758   :  { %p4659_p1 = pnand %p4657_p0, %p4654_p13 }
 0x75a   :  { %4662 = shalt.err (!%p4659_p1)
}
 0x75b   :  { %4153 = dma.vmem_to_hbm [thread:$0]  %s4151_s4, 16, %s6370_s7, [#allocation7]  }
 0x75c   :  { %4669 = dma.done.wait [#allocation7], 16  }
 0x75d   :  { %4670 = vsyncadd [#allocation7], 4294967280 }
 0x75e   :  { %4157 = vsyncpa [#allocation6], 1 }
 0x75f   :  { %4158 = vsyncpa [#allocation7], 1 }
 0x760   :  { %4159 = vsyncmov [#allocation4] }
 0x763   :  { %s4160_s1 = vpop.sfrf %4159 }
 0x764   :  { %p4273_p2 = scmp.ne.s32.totalorder %s4160_s1, 0 }
 0x766   :  { %4164 = shalt.err (%p4273_p2)  }
 0x767   :  { %4166 = vsyncmov [#allocation4 + $0x1] }
 0x76a   :  { %s4167_s23 = vpop.sfrf %4166 }
 0x76b   :  { %p4274_p3 = scmp.ne.s32.totalorder %s4167_s23, 0 }
 0x76d   :  { %4171 = shalt.err (%p4274_p3)  }

</bundles_post_ra>
